<compile_context>
chip_gen: v7x
topology: tpu7x:2x2x1
jax: 0.10.0
libtpu: 0.0.40
codegen_flags: <defaults>
</compile_context>

<pallas_src>
import functools

import jax
import jax.numpy as jnp
from jax.experimental import pallas as pl
from jax.experimental.pallas import tpu as pltpu


_NEG_INF = -1e30                 # large finite "masked" fill; exp() underflows to 0
_MXU_DTYPE = jnp.bfloat16        # operand dtype for all MXU matmuls (f32 accumulation)
_CONTRACT_LAST = (((1,), (1,)), ((), ()))   # contract last dim of lhs with last dim of rhs


# ---------------------------------------------------------------------------
# Fused Transformer-XL attention kernel.  Grid = (batch,), one step per batch element.
# ---------------------------------------------------------------------------
def _fused_mhaxl_kernel(*refs, n_heads, d_head, prev_seq, has_user_mask):
    """Per-batch step.

    refs (in order):
      x_ref    : (J, d_in)    bf16  memory+input rows of this batch element
      pos_ref  : (J, d_in)    bf16  positional embeddings (shared)
      wkv_ref  : (d_in, 2Hd)  bf16  linear_kv weight, (in, out) layout
      wq_ref   : (d_in, Hd)   bf16  linear_q weight * scale, (in, out) layout
      wp_ref   : (d_in, Hd)   bf16  linear_p weight, (in, out) layout
      wout_ref : (Hd, d_in)   bf16  lout weight, (in, out) layout
      bias_ref : (2H, Hd)     bf16  block-diag [u; v] * scale (score-bias lhs)
      mask_ref : (cs, J) int8       (only if has_user_mask) nonzero == masked
      o_ref    : (cs, d_in)   f32   output rows for this batch element
      awv_ref  : (cs, Hd)     f32   VMEM scratch for per-head AV results
    """
    if has_user_mask:
        (x_ref, pos_ref, wkv_ref, wq_ref, wp_ref, wout_ref,
         bias_ref, mask_ref, o_ref, awv_ref) = refs
    else:
        (x_ref, pos_ref, wkv_ref, wq_ref, wp_ref, wout_ref,
         bias_ref, o_ref, awv_ref) = refs
        mask_ref = None

    J = x_ref.shape[0]
    Hd = n_heads * d_head
    cs = o_ref.shape[0]

    x = x_ref[...]                                                         # (J, d_in) bf16

    # ---- projections: bf16 operands, f32 MXU accumulation (weights already (in, out)) ----
    kv = jnp.dot(x, wkv_ref[...], preferred_element_type=jnp.float32)      # (J, 2Hd) f32
    q16 = jnp.dot(x[prev_seq:, :], wq_ref[...],                            # scale folded into w_q
                  preferred_element_type=jnp.float32).astype(_MXU_DTYPE)   # (cs, Hd)
    p16 = jnp.dot(pos_ref[...], wp_ref[...],
                  preferred_element_type=jnp.float32).astype(_MXU_DTYPE)   # (J, Hd)
    k16 = kv[:, :Hd].astype(_MXU_DTYPE)                                    # (J, Hd)
    v16 = kv[:, Hd:].astype(_MXU_DTYPE)                                    # (J, Hd)
    kp16 = jnp.concatenate([k16, p16], axis=0)                             # (2J, Hd)

    # Query-row-invariant score biases, one matmul for all heads:
    #   bias_sc[h,      j] = scale * u_h . k_j   (content bias, columns [:J])
    #   bias_sc[H + h, J+j] = scale * v_h . p_j  (position bias, columns [J:])
    bias_sc = jax.lax.dot_general(bias_ref[...], kp16, _CONTRACT_LAST,
                                  preferred_element_type=jnp.float32)      # (2H, 2J)

    # Standard Transformer-XL causal mask (also removes the mod-J wrapped rel-shift entries).
    row = jax.lax.broadcasted_iota(jnp.int32, (cs, J), 0)
    col = jax.lax.broadcasted_iota(jnp.int32, (cs, J), 1)
    masked = col > (row + prev_seq)
    if mask_ref is not None:
        masked = jnp.logical_or(masked, mask_ref[...] != 0)

    const_shift = (J - (cs - 1)) % J

    for h in range(n_heads):                                               # static, unrolled
        sl = slice(h * d_head, (h + 1) * d_head)

        # One fused (cs, d) x (d, 2J) matmul: columns [:J] -> content, [J:] -> position.
        sc = jax.lax.dot_general(q16[:, sl], kp16[:, sl], _CONTRACT_LAST,
                                 preferred_element_type=jnp.float32)       # (cs, 2J)
        content = sc[:, :J] + bias_sc[h:h + 1, :J]
        position = sc[:, J:] + bias_sc[n_heads + h:n_heads + h + 1, J:]

        # Transformer-XL relative shift, entirely in VMEM with XLU rotates:
        #   shifted[i, j] = position[i, (j + cs - 1 - i) mod J]
        # Bias is added BEFORE the shift so it is shifted along with the scores.
        # Wrapped (mod-J) entries only occur where j > i + prev_seq, which the causal
        # mask above removes, so they never survive the softmax.
        position = pltpu.roll(position, const_shift, 1)                    # constant lane roll
        position = pltpu.roll(position, 0, 1, stride=1, stride_axis=0)     # + i per query row

        attn = content + position                                          # already * scale
        attn = jnp.where(masked, _NEG_INF, attn)
        m = jnp.max(attn, axis=-1, keepdims=True)
        e = jnp.exp(attn - m)
        l = jnp.sum(e, axis=-1, keepdims=True)
        probs = (e * pl.reciprocal(l, approx=True)).astype(_MXU_DTYPE)     # (cs, J)

        awv_ref[:, sl] = jnp.dot(probs, v16[:, sl],
                                 preferred_element_type=jnp.float32)       # (cs, d)

    # Output projection from the lane-dense (cs, Hd) scratch slab.
    o_ref[...] = jnp.dot(awv_ref[...].astype(_MXU_DTYPE), wout_ref[...],
                         preferred_element_type=jnp.float32).astype(o_ref.dtype)


# ---------------------------------------------------------------------------
# Full forward pass.  Params keep the PyTorch nn.Linear layout (out_features, in_features).
# ---------------------------------------------------------------------------
def multi_head_attention_xl(params, input_, pos_embs, memory, u, v, mask=None):
    H, d = u.shape
    cs, bs, d_input = input_.shape
    ps = memory.shape[0]
    J = cs + ps
    Hd = H * d
    if pos_embs.shape[0] != J or pos_embs.shape[1] != 1:
        raise ValueError("pos_embs must have shape (cur_seq + prev_seq, 1, d_input)")
    if d_input % 128 != 0:
        raise ValueError("d_input must be a multiple of 128 (TPU lane width)")
    scale = 1.0 / (d ** 0.5)

    # ---- one-time layout glue on raw inputs only (free reshapes, no HBM transposes) ----
    x_flat = (jnp.concatenate([memory, input_], axis=0)          # (J, bs, d_in)
              .astype(_MXU_DTYPE)
              .reshape(J, bs * d_input))                         # batch addressed through lanes
    pos16 = pos_embs[:, 0, :].astype(_MXU_DTYPE)                 # (J, d_in)

    # Weights: one-time bf16 cast + transpose to (in, out); scale folded into w_q.
    wkv_t = params["w_kv"].T.astype(_MXU_DTYPE)                  # (d_in, 2Hd)
    wq_t = (params["w_q"].T * scale).astype(_MXU_DTYPE)          # (d_in, Hd)
    wp_t = params["w_p"].T.astype(_MXU_DTYPE)                    # (d_in, Hd)
    wout_t = params["w_out"].T.astype(_MXU_DTYPE)                # (Hd, d_in)

    # Block-diagonal (2H, Hd) lhs producing the per-head u.k^T / v.p^T score biases.
    eye = jnp.eye(H, dtype=jnp.float32)
    ublk = (eye[:, :, None] * u[None, :, :].astype(jnp.float32)).reshape(H, Hd)
    vblk = (eye[:, :, None] * v[None, :, :].astype(jnp.float32)).reshape(H, Hd)
    bias_lhs = (jnp.concatenate([ublk, vblk], axis=0) * scale).astype(_MXU_DTYPE)   # (2H, Hd)

    kernel = functools.partial(_fused_mhaxl_kernel, n_heads=H, d_head=d,
                               prev_seq=ps, has_user_mask=mask is not None)

    invariant = lambda b: (0, 0)
    # Note: the grid-invariant inputs below could use pipeline_mode=pl.Buffered(1) to halve
    # their resident VMEM (~hundreds of KiB here); left at the default for lowering safety.
    in_specs = [
        pl.BlockSpec((J, d_input), lambda b: (0, b)),            # x rows of batch b (strided DMA)
        pl.BlockSpec((J, d_input), invariant),                   # pos embeddings
        pl.BlockSpec((d_input, 2 * Hd), invariant),              # w_kv^T
        pl.BlockSpec((d_input, Hd), invariant),                  # w_q^T * scale
        pl.BlockSpec((d_input, Hd), invariant),                  # w_p^T
        pl.BlockSpec((Hd, d_input), invariant),                  # w_out^T
        pl.BlockSpec((2 * H, Hd), invariant),                    # block-diag bias lhs
    ]
    args = [x_flat, pos16, wkv_t, wq_t, wp_t, wout_t, bias_lhs]
    if mask is not None:
        in_specs.append(pl.BlockSpec((cs, J), invariant))        # user mask (int8)
        args.append(mask.reshape(cs, J).astype(jnp.int8))

    out_flat = pl.pallas_call(
        kernel,
        out_shape=jax.ShapeDtypeStruct((cs, bs * d_input), jnp.float32),
        grid=(bs,),
        in_specs=in_specs,
        out_specs=pl.BlockSpec((cs, d_input), lambda b: (0, b)),
        scratch_shapes=[pltpu.VMEM((cs, Hd), jnp.float32)],
        compiler_params=pltpu.CompilerParams(
            dimension_semantics=("parallel",),                   # bs >= 2 -> both TCs on v7x
            vmem_limit_bytes=32 * 1024 * 1024),
    )(*args)

    return out_flat.reshape(cs, bs, d_input)                     # free reshape: (cs, bs, d_in)


# ---------------------------------------------------------------------------
# Pure-JAX reference mirroring the PyTorch module (for the correctness check).
# ---------------------------------------------------------------------------
def reference_forward(params, input_, pos_embs, memory, u, v, mask):
    H, d = u.shape
    cs, bs, d_input = input_.shape
    ps = memory.shape[0]
    J = cs + ps
    scale = 1.0 / (d ** 0.5)
    x = jnp.concatenate([memory, input_], axis=0)
    kv = x @ params["w_kv"].T
    k_t, v_t = kv[..., :H * d], kv[..., H * d:]
    q_t = input_ @ params["w_q"].T
    p_t = (pos_embs @ params["w_p"].T).reshape(J, H, d)
    qh = q_t.reshape(cs, bs, H, d)
    kh = k_t.reshape(J, bs, H, d)
    vh = v_t.reshape(J, bs, H, d)
    content = jnp.einsum('ibhd,jbhd->ijbh', qh + u, kh)
    position = jnp.einsum('ibhd,jhd->ijbh', qh + v, p_t)
    zero = jnp.zeros((cs, 1, bs, H), position.dtype)
    y = jnp.concatenate([zero, position], axis=1)
    position = y.reshape(J + 1, cs, bs, H)[1:].reshape(cs, J, bs, H)   # exact _rel_shift
    attn = content + position
    if mask is not None:
        attn = jnp.where(mask[..., None], -jnp.inf, attn)
    attn = jax.nn.softmax(attn * scale, axis=1)
    awv = jnp.einsum('ijbh,jbhd->ibhd', attn, vh).reshape(cs, bs, H * d)
    return awv @ params["w_out"].T


if __name__ == "__main__":
    # Small but lane/sublane-aligned sizes: H*d = d_input = 128, J = 128, cs = ps = 64.
    d_input, d_inner, n_heads = 128, 32, 4
    cs, ps, bs = 64, 64, 2
    J = cs + ps

    key = jax.random.PRNGKey(0)
    ks = jax.random.split(key, 9)
    wscale = 1.0 / (d_input ** 0.5)
    params = {
        "w_kv": jax.random.normal(ks[0], (2 * n_heads * d_inner, d_input), jnp.float32) * wscale,
        "w_q": jax.random.normal(ks[1], (n_heads * d_inner, d_input), jnp.float32) * wscale,
        "w_p": jax.random.normal(ks[2], (n_heads * d_inner, d_input), jnp.float32) * wscale,
        "w_out": jax.random.normal(ks[3], (d_input, n_heads * d_inner), jnp.float32) * wscale,
    }
    input_ = jax.random.normal(ks[4], (cs, bs, d_input), jnp.float32)
    memory = jax.random.normal(ks[5], (ps, bs, d_input), jnp.float32)
    pos_embs = jax.random.normal(ks[6], (J, 1, d_input), jnp.float32)
    u = jax.random.normal(ks[7], (n_heads, d_inner), jnp.float32) * 0.1
    v = jax.random.normal(ks[8], (n_heads, d_inner), jnp.float32) * 0.1

    # Standard Transformer-XL causal mask: query i may not attend to keys beyond i + prev_seq.
    i_idx = jnp.arange(cs)[:, None]
    j_idx = jnp.arange(J)[None, :]
    mask = (j_idx > (i_idx + ps))[:, :, None]            # (cs, J, 1) bool

    out = jax.jit(multi_head_attention_xl)(params, input_, pos_embs, memory, u, v, mask)
    out = jax.block_until_ready(out)

    ref = reference_forward(params, input_, pos_embs, memory, u, v, mask)
    if out.shape != (cs, bs, d_input):
        raise AssertionError(f"bad output shape {out.shape}")
    if not jnp.allclose(out, ref, rtol=5e-2, atol=5e-2):
        max_err = float(jnp.max(jnp.abs(out - ref)))
        raise AssertionError(f"Pallas output does not match JAX reference (max abs err {max_err})")
    print("KERNEL_OK")
</pallas_src>

<mosaic_0001>
module attributes {stable_mosaic.version = 11 : i64} {
  func.func @_fused_mhaxl_kernel(%arg0: i32, %arg1: memref<128x128xbf16, #tpu.memory_space<vmem>>, %arg2: memref<128x128xbf16, #tpu.memory_space<vmem>>, %arg3: memref<128x256xbf16, #tpu.memory_space<vmem>>, %arg4: memref<128x128xbf16, #tpu.memory_space<vmem>>, %arg5: memref<128x128xbf16, #tpu.memory_space<vmem>>, %arg6: memref<128x128xbf16, #tpu.memory_space<vmem>>, %arg7: memref<8x128xbf16, #tpu.memory_space<vmem>>, %arg8: memref<64x128xi8, #tpu.memory_space<vmem>>, %arg9: memref<64x128xf32, #tpu.memory_space<vmem>>, %arg10: memref<64x128xf32, #tpu.memory_space<vmem>>) attributes {dimension_semantics = [#tpu.dimension_semantics<parallel>], iteration_bounds = array<i64: 2>, scalar_prefetch = 0 : i64, scratch_operands = 1 : i64, tpu.core_type = #tpu.core_type<tc>, window_params = [{transform_indices = @transform_0, window_bounds = array<i64: 128, 128>}, {pipeline_mode = #tpu.pipeline_mode<synchronous>, transform_indices = @transform_1, window_bounds = array<i64: 128, 128>}, {pipeline_mode = #tpu.pipeline_mode<synchronous>, transform_indices = @transform_2, window_bounds = array<i64: 128, 256>}, {pipeline_mode = #tpu.pipeline_mode<synchronous>, transform_indices = @transform_3, window_bounds = array<i64: 128, 128>}, {pipeline_mode = #tpu.pipeline_mode<synchronous>, transform_indices = @transform_4, window_bounds = array<i64: 128, 128>}, {pipeline_mode = #tpu.pipeline_mode<synchronous>, transform_indices = @transform_5, window_bounds = array<i64: 128, 128>}, {pipeline_mode = #tpu.pipeline_mode<synchronous>, transform_indices = @transform_6, window_bounds = array<i64: 8, 128>}, {pipeline_mode = #tpu.pipeline_mode<synchronous>, transform_indices = @transform_7, window_bounds = array<i64: 64, 128>}, {transform_indices = @transform_8, window_bounds = array<i64: 64, 128>}]} {
    %c0 = arith.constant 0 : index
    %c0_0 = arith.constant 0 : index
    %0 = vector.load %arg1[%c0, %c0_0] : memref<128x128xbf16, #tpu.memory_space<vmem>>, vector<128x128xbf16>
    %c0_1 = arith.constant 0 : index
    %c0_2 = arith.constant 0 : index
    %1 = vector.load %arg3[%c0_1, %c0_2] : memref<128x256xbf16, #tpu.memory_space<vmem>>, vector<128x256xbf16>
    %cst = arith.constant dense<0.000000e+00> : vector<128x256xf32>
    %2 = tpu.matmul %0, %1, %cst {dimension_numbers = #tpu.dot_dimension_numbers<[1], [0], [0], [1], [0, 0, 1, 1], [], []>} : vector<128x128xbf16>, vector<128x256xbf16>, vector<128x256xf32> -> vector<128x256xf32>
    %3 = vector.extract_strided_slice %0 {offsets = [64, 0], sizes = [64, 128], strides = [1, 1]} : vector<128x128xbf16> to vector<64x128xbf16>
    %c0_3 = arith.constant 0 : index
    %c0_4 = arith.constant 0 : index
    %4 = vector.load %arg4[%c0_3, %c0_4] : memref<128x128xbf16, #tpu.memory_space<vmem>>, vector<128x128xbf16>
    %cst_5 = arith.constant dense<0.000000e+00> : vector<64x128xf32>
    %5 = tpu.matmul %3, %4, %cst_5 {dimension_numbers = #tpu.dot_dimension_numbers<[1], [0], [0], [1], [0, 0, 1, 1], [], []>} : vector<64x128xbf16>, vector<128x128xbf16>, vector<64x128xf32> -> vector<64x128xf32>
    %6 = arith.truncf %5 : vector<64x128xf32> to vector<64x128xbf16>
    %c0_6 = arith.constant 0 : index
    %c0_7 = arith.constant 0 : index
    %7 = vector.load %arg2[%c0_6, %c0_7] : memref<128x128xbf16, #tpu.memory_space<vmem>>, vector<128x128xbf16>
    %c0_8 = arith.constant 0 : index
    %c0_9 = arith.constant 0 : index
    %8 = vector.load %arg5[%c0_8, %c0_9] : memref<128x128xbf16, #tpu.memory_space<vmem>>, vector<128x128xbf16>
    %cst_10 = arith.constant dense<0.000000e+00> : vector<128x128xf32>
    %9 = tpu.matmul %7, %8, %cst_10 {dimension_numbers = #tpu.dot_dimension_numbers<[1], [0], [0], [1], [0, 0, 1, 1], [], []>} : vector<128x128xbf16>, vector<128x128xbf16>, vector<128x128xf32> -> vector<128x128xf32>
    %10 = arith.truncf %9 : vector<128x128xf32> to vector<128x128xbf16>
    %11 = vector.extract_strided_slice %2 {offsets = [0, 0], sizes = [128, 128], strides = [1, 1]} : vector<128x256xf32> to vector<128x128xf32>
    %12 = arith.truncf %11 : vector<128x128xf32> to vector<128x128xbf16>
    %13 = vector.extract_strided_slice %2 {offsets = [0, 128], sizes = [128, 128], strides = [1, 1]} : vector<128x256xf32> to vector<128x128xf32>
    %14 = arith.truncf %13 : vector<128x128xf32> to vector<128x128xbf16>
    %15 = tpu.concatenate %12, %10 in 0 : vector<128x128xbf16>, vector<128x128xbf16> -> vector<256x128xbf16>
    %c0_11 = arith.constant 0 : index
    %c0_12 = arith.constant 0 : index
    %16 = vector.load %arg7[%c0_11, %c0_12] : memref<8x128xbf16, #tpu.memory_space<vmem>>, vector<8x128xbf16>
    %cst_13 = arith.constant dense<0.000000e+00> : vector<8x256xf32>
    %17 = tpu.matmul %16, %15, %cst_13 {dimension_numbers = #tpu.dot_dimension_numbers<[1], [1], [0], [0], [0, 0, 1, 0], [], []>} : vector<8x128xbf16>, vector<256x128xbf16>, vector<8x256xf32> -> vector<8x256xf32>
    %18 = tpu.iota {dimensions = array<i32: 0>} : vector<64x128xi32>
    %19 = tpu.iota {dimensions = array<i32: 1>} : vector<64x128xi32>
    %c64_i32 = arith.constant 64 : i32
    %20 = vector.broadcast %c64_i32 : i32 to vector<64x128xi32>
    %21 = arith.addi %18, %20 : vector<64x128xi32>
    %22 = arith.cmpi sgt, %19, %21 : vector<64x128xi32>
    %c0_14 = arith.constant 0 : index
    %c0_15 = arith.constant 0 : index
    %23 = vector.load %arg8[%c0_14, %c0_15] : memref<64x128xi8, #tpu.memory_space<vmem>>, vector<64x128xi8>
    %c0_i8 = arith.constant 0 : i8
    %24 = vector.broadcast %c0_i8 : i8 to vector<64x128xi8>
    %25 = arith.cmpi ne, %23, %24 : vector<64x128xi8>
    %26 = arith.ori %22, %25 : vector<64x128xi1>
    %27 = vector.extract_strided_slice %6 {offsets = [0, 0], sizes = [64, 32], strides = [1, 1]} : vector<64x128xbf16> to vector<64x32xbf16>
    %28 = vector.extract_strided_slice %15 {offsets = [0, 0], sizes = [256, 32], strides = [1, 1]} : vector<256x128xbf16> to vector<256x32xbf16>
    %cst_16 = arith.constant dense<0.000000e+00> : vector<64x256xf32>
    %29 = tpu.matmul %27, %28, %cst_16 {dimension_numbers = #tpu.dot_dimension_numbers<[1], [1], [0], [0], [0, 0, 1, 0], [], []>} : vector<64x32xbf16>, vector<256x32xbf16>, vector<64x256xf32> -> vector<64x256xf32>
    %30 = vector.extract_strided_slice %29 {offsets = [0, 0], sizes = [64, 128], strides = [1, 1]} : vector<64x256xf32> to vector<64x128xf32>
    %31 = vector.extract_strided_slice %17 {offsets = [0, 0], sizes = [1, 128], strides = [1, 1]} : vector<8x256xf32> to vector<1x128xf32>
    %32 = vector.broadcast %31 : vector<1x128xf32> to vector<64x128xf32>
    %33 = arith.addf %30, %32 : vector<64x128xf32>
    %34 = vector.extract_strided_slice %29 {offsets = [0, 128], sizes = [64, 128], strides = [1, 1]} : vector<64x256xf32> to vector<64x128xf32>
    %35 = vector.extract_strided_slice %17 {offsets = [4, 128], sizes = [1, 128], strides = [1, 1]} : vector<8x256xf32> to vector<1x128xf32>
    %36 = vector.broadcast %35 : vector<1x128xf32> to vector<64x128xf32>
    %37 = arith.addf %34, %36 : vector<64x128xf32>
    %c65_i32 = arith.constant 65 : i32
    %38 = tpu.dynamic_rotate %37 by %c65_i32 dim 1 : vector<64x128xf32>, i32 -> vector<64x128xf32>
    %c0_i32 = arith.constant 0 : i32
    %39 = tpu.dynamic_rotate %38 by %c0_i32 dim 1 {stride = 1 : si32, stride_dimension = 0 : si32} : vector<64x128xf32>, i32 -> vector<64x128xf32>
    %40 = arith.addf %33, %39 : vector<64x128xf32>
    %cst_17 = arith.constant -1.000000e+30 : f32
    %41 = vector.broadcast %cst_17 : f32 to vector<64x128xf32>
    %42 = arith.select %26, %41, %40 : vector<64x128xi1>, vector<64x128xf32>
    %cst_18 = arith.constant dense<0xFF800000> : vector<64xf32>
    %43 = vector.multi_reduction <maximumf>, %42, %cst_18 [1] : vector<64x128xf32> to vector<64xf32>
    %44 = vector.shape_cast %43 : vector<64xf32> to vector<64x1xf32>
    %45 = vector.broadcast %44 : vector<64x1xf32> to vector<64x128xf32>
    %46 = arith.subf %42, %45 : vector<64x128xf32>
    %47 = math.exp %46 : vector<64x128xf32>
    %cst_19 = arith.constant dense<0.000000e+00> : vector<64xf32>
    %48 = vector.multi_reduction <add>, %47, %cst_19 [1] : vector<64x128xf32> to vector<64xf32>
    %49 = vector.shape_cast %48 : vector<64xf32> to vector<64x1xf32>
    %50 = tpu.reciprocal %49 {approx = true} : vector<64x1xf32> -> vector<64x1xf32>
    %51 = vector.broadcast %50 : vector<64x1xf32> to vector<64x128xf32>
    %52 = arith.mulf %47, %51 : vector<64x128xf32>
    %53 = arith.truncf %52 : vector<64x128xf32> to vector<64x128xbf16>
    %54 = vector.extract_strided_slice %14 {offsets = [0, 0], sizes = [128, 32], strides = [1, 1]} : vector<128x128xbf16> to vector<128x32xbf16>
    %cst_20 = arith.constant dense<0.000000e+00> : vector<64x32xf32>
    %55 = tpu.matmul %53, %54, %cst_20 {dimension_numbers = #tpu.dot_dimension_numbers<[1], [0], [0], [1], [0, 0, 1, 1], [], []>} : vector<64x128xbf16>, vector<128x32xbf16>, vector<64x32xf32> -> vector<64x32xf32>
    %c0_21 = arith.constant 0 : index
    %c0_22 = arith.constant 0 : index
    %56 = vector.load %arg10[%c0_21, %c0_22] : memref<64x128xf32, #tpu.memory_space<vmem>>, vector<64x32xf32>
    tpu.vector_store %arg10[%c0_21, %c0_22], %55 {strides = array<i32>} : memref<64x128xf32, #tpu.memory_space<vmem>>, vector<64x32xf32>,
    %57 = vector.extract_strided_slice %6 {offsets = [0, 32], sizes = [64, 32], strides = [1, 1]} : vector<64x128xbf16> to vector<64x32xbf16>
    %58 = vector.extract_strided_slice %15 {offsets = [0, 32], sizes = [256, 32], strides = [1, 1]} : vector<256x128xbf16> to vector<256x32xbf16>
    %cst_23 = arith.constant dense<0.000000e+00> : vector<64x256xf32>
    %59 = tpu.matmul %57, %58, %cst_23 {dimension_numbers = #tpu.dot_dimension_numbers<[1], [1], [0], [0], [0, 0, 1, 0], [], []>} : vector<64x32xbf16>, vector<256x32xbf16>, vector<64x256xf32> -> vector<64x256xf32>
    %60 = vector.extract_strided_slice %59 {offsets = [0, 0], sizes = [64, 128], strides = [1, 1]} : vector<64x256xf32> to vector<64x128xf32>
    %61 = vector.extract_strided_slice %17 {offsets = [1, 0], sizes = [1, 128], strides = [1, 1]} : vector<8x256xf32> to vector<1x128xf32>
    %62 = vector.broadcast %61 : vector<1x128xf32> to vector<64x128xf32>
    %63 = arith.addf %60, %62 : vector<64x128xf32>
    %64 = vector.extract_strided_slice %59 {offsets = [0, 128], sizes = [64, 128], strides = [1, 1]} : vector<64x256xf32> to vector<64x128xf32>
    %65 = vector.extract_strided_slice %17 {offsets = [5, 128], sizes = [1, 128], strides = [1, 1]} : vector<8x256xf32> to vector<1x128xf32>
    %66 = vector.broadcast %65 : vector<1x128xf32> to vector<64x128xf32>
    %67 = arith.addf %64, %66 : vector<64x128xf32>
    %c65_i32_24 = arith.constant 65 : i32
    %68 = tpu.dynamic_rotate %67 by %c65_i32_24 dim 1 : vector<64x128xf32>, i32 -> vector<64x128xf32>
    %c0_i32_25 = arith.constant 0 : i32
    %69 = tpu.dynamic_rotate %68 by %c0_i32_25 dim 1 {stride = 1 : si32, stride_dimension = 0 : si32} : vector<64x128xf32>, i32 -> vector<64x128xf32>
    %70 = arith.addf %63, %69 : vector<64x128xf32>
    %cst_26 = arith.constant -1.000000e+30 : f32
    %71 = vector.broadcast %cst_26 : f32 to vector<64x128xf32>
    %72 = arith.select %26, %71, %70 : vector<64x128xi1>, vector<64x128xf32>
    %cst_27 = arith.constant dense<0xFF800000> : vector<64xf32>
    %73 = vector.multi_reduction <maximumf>, %72, %cst_27 [1] : vector<64x128xf32> to vector<64xf32>
    %74 = vector.shape_cast %73 : vector<64xf32> to vector<64x1xf32>
    %75 = vector.broadcast %74 : vector<64x1xf32> to vector<64x128xf32>
    %76 = arith.subf %72, %75 : vector<64x128xf32>
    %77 = math.exp %76 : vector<64x128xf32>
    %cst_28 = arith.constant dense<0.000000e+00> : vector<64xf32>
    %78 = vector.multi_reduction <add>, %77, %cst_28 [1] : vector<64x128xf32> to vector<64xf32>
    %79 = vector.shape_cast %78 : vector<64xf32> to vector<64x1xf32>
    %80 = tpu.reciprocal %79 {approx = true} : vector<64x1xf32> -> vector<64x1xf32>
    %81 = vector.broadcast %80 : vector<64x1xf32> to vector<64x128xf32>
    %82 = arith.mulf %77, %81 : vector<64x128xf32>
    %83 = arith.truncf %82 : vector<64x128xf32> to vector<64x128xbf16>
    %84 = vector.extract_strided_slice %14 {offsets = [0, 32], sizes = [128, 32], strides = [1, 1]} : vector<128x128xbf16> to vector<128x32xbf16>
    %cst_29 = arith.constant dense<0.000000e+00> : vector<64x32xf32>
    %85 = tpu.matmul %83, %84, %cst_29 {dimension_numbers = #tpu.dot_dimension_numbers<[1], [0], [0], [1], [0, 0, 1, 1], [], []>} : vector<64x128xbf16>, vector<128x32xbf16>, vector<64x32xf32> -> vector<64x32xf32>
    %c0_30 = arith.constant 0 : index
    %c32 = arith.constant 32 : index
    %86 = vector.load %arg10[%c0_30, %c32] : memref<64x128xf32, #tpu.memory_space<vmem>>, vector<64x32xf32>
    tpu.vector_store %arg10[%c0_30, %c32], %85 {strides = array<i32>} : memref<64x128xf32, #tpu.memory_space<vmem>>, vector<64x32xf32>,
    %87 = vector.extract_strided_slice %6 {offsets = [0, 64], sizes = [64, 32], strides = [1, 1]} : vector<64x128xbf16> to vector<64x32xbf16>
    %88 = vector.extract_strided_slice %15 {offsets = [0, 64], sizes = [256, 32], strides = [1, 1]} : vector<256x128xbf16> to vector<256x32xbf16>
    %cst_31 = arith.constant dense<0.000000e+00> : vector<64x256xf32>
    %89 = tpu.matmul %87, %88, %cst_31 {dimension_numbers = #tpu.dot_dimension_numbers<[1], [1], [0], [0], [0, 0, 1, 0], [], []>} : vector<64x32xbf16>, vector<256x32xbf16>, vector<64x256xf32> -> vector<64x256xf32>
    %90 = vector.extract_strided_slice %89 {offsets = [0, 0], sizes = [64, 128], strides = [1, 1]} : vector<64x256xf32> to vector<64x128xf32>
    %91 = vector.extract_strided_slice %17 {offsets = [2, 0], sizes = [1, 128], strides = [1, 1]} : vector<8x256xf32> to vector<1x128xf32>
    %92 = vector.broadcast %91 : vector<1x128xf32> to vector<64x128xf32>
    %93 = arith.addf %90, %92 : vector<64x128xf32>
    %94 = vector.extract_strided_slice %89 {offsets = [0, 128], sizes = [64, 128], strides = [1, 1]} : vector<64x256xf32> to vector<64x128xf32>
    %95 = vector.extract_strided_slice %17 {offsets = [6, 128], sizes = [1, 128], strides = [1, 1]} : vector<8x256xf32> to vector<1x128xf32>
    %96 = vector.broadcast %95 : vector<1x128xf32> to vector<64x128xf32>
    %97 = arith.addf %94, %96 : vector<64x128xf32>
    %c65_i32_32 = arith.constant 65 : i32
    %98 = tpu.dynamic_rotate %97 by %c65_i32_32 dim 1 : vector<64x128xf32>, i32 -> vector<64x128xf32>
    %c0_i32_33 = arith.constant 0 : i32
    %99 = tpu.dynamic_rotate %98 by %c0_i32_33 dim 1 {stride = 1 : si32, stride_dimension = 0 : si32} : vector<64x128xf32>, i32 -> vector<64x128xf32>
    %100 = arith.addf %93, %99 : vector<64x128xf32>
    %cst_34 = arith.constant -1.000000e+30 : f32
    %101 = vector.broadcast %cst_34 : f32 to vector<64x128xf32>
    %102 = arith.select %26, %101, %100 : vector<64x128xi1>, vector<64x128xf32>
    %cst_35 = arith.constant dense<0xFF800000> : vector<64xf32>
    %103 = vector.multi_reduction <maximumf>, %102, %cst_35 [1] : vector<64x128xf32> to vector<64xf32>
    %104 = vector.shape_cast %103 : vector<64xf32> to vector<64x1xf32>
    %105 = vector.broadcast %104 : vector<64x1xf32> to vector<64x128xf32>
    %106 = arith.subf %102, %105 : vector<64x128xf32>
    %107 = math.exp %106 : vector<64x128xf32>
    %cst_36 = arith.constant dense<0.000000e+00> : vector<64xf32>
    %108 = vector.multi_reduction <add>, %107, %cst_36 [1] : vector<64x128xf32> to vector<64xf32>
    %109 = vector.shape_cast %108 : vector<64xf32> to vector<64x1xf32>
    %110 = tpu.reciprocal %109 {approx = true} : vector<64x1xf32> -> vector<64x1xf32>
    %111 = vector.broadcast %110 : vector<64x1xf32> to vector<64x128xf32>
    %112 = arith.mulf %107, %111 : vector<64x128xf32>
    %113 = arith.truncf %112 : vector<64x128xf32> to vector<64x128xbf16>
    %114 = vector.extract_strided_slice %14 {offsets = [0, 64], sizes = [128, 32], strides = [1, 1]} : vector<128x128xbf16> to vector<128x32xbf16>
    %cst_37 = arith.constant dense<0.000000e+00> : vector<64x32xf32>
    %115 = tpu.matmul %113, %114, %cst_37 {dimension_numbers = #tpu.dot_dimension_numbers<[1], [0], [0], [1], [0, 0, 1, 1], [], []>} : vector<64x128xbf16>, vector<128x32xbf16>, vector<64x32xf32> -> vector<64x32xf32>
    %c0_38 = arith.constant 0 : index
    %c64 = arith.constant 64 : index
    %116 = vector.load %arg10[%c0_38, %c64] : memref<64x128xf32, #tpu.memory_space<vmem>>, vector<64x32xf32>
    tpu.vector_store %arg10[%c0_38, %c64], %115 {strides = array<i32>} : memref<64x128xf32, #tpu.memory_space<vmem>>, vector<64x32xf32>,
    %117 = vector.extract_strided_slice %6 {offsets = [0, 96], sizes = [64, 32], strides = [1, 1]} : vector<64x128xbf16> to vector<64x32xbf16>
    %118 = vector.extract_strided_slice %15 {offsets = [0, 96], sizes = [256, 32], strides = [1, 1]} : vector<256x128xbf16> to vector<256x32xbf16>
    %cst_39 = arith.constant dense<0.000000e+00> : vector<64x256xf32>
    %119 = tpu.matmul %117, %118, %cst_39 {dimension_numbers = #tpu.dot_dimension_numbers<[1], [1], [0], [0], [0, 0, 1, 0], [], []>} : vector<64x32xbf16>, vector<256x32xbf16>, vector<64x256xf32> -> vector<64x256xf32>
    %120 = vector.extract_strided_slice %119 {offsets = [0, 0], sizes = [64, 128], strides = [1, 1]} : vector<64x256xf32> to vector<64x128xf32>
    %121 = vector.extract_strided_slice %17 {offsets = [3, 0], sizes = [1, 128], strides = [1, 1]} : vector<8x256xf32> to vector<1x128xf32>
    %122 = vector.broadcast %121 : vector<1x128xf32> to vector<64x128xf32>
    %123 = arith.addf %120, %122 : vector<64x128xf32>
    %124 = vector.extract_strided_slice %119 {offsets = [0, 128], sizes = [64, 128], strides = [1, 1]} : vector<64x256xf32> to vector<64x128xf32>
    %125 = vector.extract_strided_slice %17 {offsets = [7, 128], sizes = [1, 128], strides = [1, 1]} : vector<8x256xf32> to vector<1x128xf32>
    %126 = vector.broadcast %125 : vector<1x128xf32> to vector<64x128xf32>
    %127 = arith.addf %124, %126 : vector<64x128xf32>
    %c65_i32_40 = arith.constant 65 : i32
    %128 = tpu.dynamic_rotate %127 by %c65_i32_40 dim 1 : vector<64x128xf32>, i32 -> vector<64x128xf32>
    %c0_i32_41 = arith.constant 0 : i32
    %129 = tpu.dynamic_rotate %128 by %c0_i32_41 dim 1 {stride = 1 : si32, stride_dimension = 0 : si32} : vector<64x128xf32>, i32 -> vector<64x128xf32>
    %130 = arith.addf %123, %129 : vector<64x128xf32>
    %cst_42 = arith.constant -1.000000e+30 : f32
    %131 = vector.broadcast %cst_42 : f32 to vector<64x128xf32>
    %132 = arith.select %26, %131, %130 : vector<64x128xi1>, vector<64x128xf32>
    %cst_43 = arith.constant dense<0xFF800000> : vector<64xf32>
    %133 = vector.multi_reduction <maximumf>, %132, %cst_43 [1] : vector<64x128xf32> to vector<64xf32>
    %134 = vector.shape_cast %133 : vector<64xf32> to vector<64x1xf32>
    %135 = vector.broadcast %134 : vector<64x1xf32> to vector<64x128xf32>
    %136 = arith.subf %132, %135 : vector<64x128xf32>
    %137 = math.exp %136 : vector<64x128xf32>
    %cst_44 = arith.constant dense<0.000000e+00> : vector<64xf32>
    %138 = vector.multi_reduction <add>, %137, %cst_44 [1] : vector<64x128xf32> to vector<64xf32>
    %139 = vector.shape_cast %138 : vector<64xf32> to vector<64x1xf32>
    %140 = tpu.reciprocal %139 {approx = true} : vector<64x1xf32> -> vector<64x1xf32>
    %141 = vector.broadcast %140 : vector<64x1xf32> to vector<64x128xf32>
    %142 = arith.mulf %137, %141 : vector<64x128xf32>
    %143 = arith.truncf %142 : vector<64x128xf32> to vector<64x128xbf16>
    %144 = vector.extract_strided_slice %14 {offsets = [0, 96], sizes = [128, 32], strides = [1, 1]} : vector<128x128xbf16> to vector<128x32xbf16>
    %cst_45 = arith.constant dense<0.000000e+00> : vector<64x32xf32>
    %145 = tpu.matmul %143, %144, %cst_45 {dimension_numbers = #tpu.dot_dimension_numbers<[1], [0], [0], [1], [0, 0, 1, 1], [], []>} : vector<64x128xbf16>, vector<128x32xbf16>, vector<64x32xf32> -> vector<64x32xf32>
    %c0_46 = arith.constant 0 : index
    %c96 = arith.constant 96 : index
    %146 = vector.load %arg10[%c0_46, %c96] : memref<64x128xf32, #tpu.memory_space<vmem>>, vector<64x32xf32>
    tpu.vector_store %arg10[%c0_46, %c96], %145 {strides = array<i32>} : memref<64x128xf32, #tpu.memory_space<vmem>>, vector<64x32xf32>,
    %c0_47 = arith.constant 0 : index
    %c0_48 = arith.constant 0 : index
    %147 = vector.load %arg10[%c0_47, %c0_48] : memref<64x128xf32, #tpu.memory_space<vmem>>, vector<64x128xf32>
    %148 = arith.truncf %147 : vector<64x128xf32> to vector<64x128xbf16>
    %c0_49 = arith.constant 0 : index
    %c0_50 = arith.constant 0 : index
    %149 = vector.load %arg6[%c0_49, %c0_50] : memref<128x128xbf16, #tpu.memory_space<vmem>>, vector<128x128xbf16>
    %cst_51 = arith.constant dense<0.000000e+00> : vector<64x128xf32>
    %150 = tpu.matmul %148, %149, %cst_51 {dimension_numbers = #tpu.dot_dimension_numbers<[1], [0], [0], [1], [0, 0, 1, 1], [], []>} : vector<64x128xbf16>, vector<128x128xbf16>, vector<64x128xf32> -> vector<64x128xf32>
    %c0_52 = arith.constant 0 : index
    %c0_53 = arith.constant 0 : index
    %151 = vector.load %arg9[%c0_52, %c0_53] : memref<64x128xf32, #tpu.memory_space<vmem>>, vector<64x128xf32>
    tpu.vector_store %arg9[%c0_52, %c0_53], %150 {strides = array<i32>} : memref<64x128xf32, #tpu.memory_space<vmem>>, vector<64x128xf32>,
    return
  }
  func.func @transform_0(%arg0: i32) -> (i32, i32) {
    %c0_i32 = arith.constant 0 : i32
    %c0_i32_0 = arith.constant 0 : i32
    return %c0_i32, %arg0 : i32, i32
  }
  func.func @transform_1(%arg0: i32) -> (i32, i32) {
    %c0_i32 = arith.constant 0 : i32
    %c0_i32_0 = arith.constant 0 : i32
    %c0_i32_1 = arith.constant 0 : i32
    return %c0_i32, %c0_i32_0 : i32, i32
  }
  func.func @transform_2(%arg0: i32) -> (i32, i32) {
    %c0_i32 = arith.constant 0 : i32
    %c0_i32_0 = arith.constant 0 : i32
    %c0_i32_1 = arith.constant 0 : i32
    return %c0_i32, %c0_i32_0 : i32, i32
  }
  func.func @transform_3(%arg0: i32) -> (i32, i32) {
    %c0_i32 = arith.constant 0 : i32
    %c0_i32_0 = arith.constant 0 : i32
    %c0_i32_1 = arith.constant 0 : i32
    return %c0_i32, %c0_i32_0 : i32, i32
  }
  func.func @transform_4(%arg0: i32) -> (i32, i32) {
    %c0_i32 = arith.constant 0 : i32
    %c0_i32_0 = arith.constant 0 : i32
    %c0_i32_1 = arith.constant 0 : i32
    return %c0_i32, %c0_i32_0 : i32, i32
  }
  func.func @transform_5(%arg0: i32) -> (i32, i32) {
    %c0_i32 = arith.constant 0 : i32
    %c0_i32_0 = arith.constant 0 : i32
    %c0_i32_1 = arith.constant 0 : i32
    return %c0_i32, %c0_i32_0 : i32, i32
  }
  func.func @transform_6(%arg0: i32) -> (i32, i32) {
    %c0_i32 = arith.constant 0 : i32
    %c0_i32_0 = arith.constant 0 : i32
    %c0_i32_1 = arith.constant 0 : i32
    return %c0_i32, %c0_i32_0 : i32, i32
  }
  func.func @transform_7(%arg0: i32) -> (i32, i32) {
    %c0_i32 = arith.constant 0 : i32
    %c0_i32_0 = arith.constant 0 : i32
    %c0_i32_1 = arith.constant 0 : i32
    return %c0_i32, %c0_i32_0 : i32, i32
  }
  func.func @transform_8(%arg0: i32) -> (i32, i32) {
    %c0_i32 = arith.constant 0 : i32
    %c0_i32_0 = arith.constant 0 : i32
    return %c0_i32, %arg0 : i32, i32
  }
}

</mosaic_0001>

<bundles_post_ra>
// kernel: multi_head_attention_xl.1
= control target key start
LH: loop header
LB: loop body
LE: loop exit
PB: predicated region body
PF: predicated region fallthrough
CT: control target
= control target key end

     0   :  { %s4074_s27 = smov 0   ;;  %s4076_s28 = smov 0   ;;  %s5283_s0 = inlined_call_operand.vmem [shape: bf16[128,256], index: 0, kind: input, shape index: {}]   ;;  %s5284_s1 = inlined_call_operand.vmem [shape: bf16[128,128], index: 1, kind: input, shape index: {}]   ;;  %s5285_s2 = inlined_call_operand.vmem [shape: bf16[128,256], index: 2, kind: input, shape index: {}]   ;;  %s5286_s3 = inlined_call_operand.vmem [shape: bf16[128,128], index: 3, kind: input, shape index: {}]   ;;  %s5287_s4 = inlined_call_operand.vmem [shape: bf16[128,128], index: 4, kind: input, shape index: {}]   ;;  %s5288_s5 = inlined_call_operand.vmem [shape: bf16[128,128], index: 5, kind: input, shape index: {}]   ;;  %s5289_s6 = inlined_call_operand.vmem [shape: bf16[8,128], index: 6, kind: input, shape index: {}]   ;;  %s5290_s7 = inlined_call_operand.vmem [shape: s8[64,128], index: 7, kind: input, shape index: {}]   ;;  %s5291_s8 = inlined_call_operand.vmem [shape: f32[64,256], index: 8, kind: output, shape index: {}]  }
   0x1   :  { %s4078_s29 = smov 0  }
   0x2 LB: > { %s3268_s30 = sadd.s32 4294967295, %s4014_s29   ;;  %s4091_s9 = sadd.s32 1, %s4014_s29   ;;  %s4014_s29 = sphi %s4078_s29, %s5359_s29   ;;  %s4010_s28 = sphi %s4076_s28, %s5358_s28   ;;  %s4006_s27 = sphi %s4074_s27, %s5357_s27  }
   0x3   : > { %s22_s10 = ssub.s32 %s4014_s29, %s4091_s9  ;;  %s25_s11 = sadd.s32 1, %s4010_s28 }
   0x4   : > { %p23_p0 = scmp.eq.s32.totalorder %s22_s10, 0  ;;  %p32_p1 = scmp.ne.s32.totalorder %s4010_s28, %s4006_s27 }
   0x5   : > { %p33_p2 = scmp.eq.s32.totalorder %s4014_s29, 0  ;;  %p209_p3 = scmp.eq.s32.totalorder %s3268_s30, 1 }
   0x6   : > { %s4102_s12 = scalar_select %p23_p0, %s4010_s28, %s25_s11  }
   0x7   : > { %p34_p4 = por %p33_p2, %p32_p1  ;;  %p4104_p5 = por %p209_p3, %p32_p1 }
   0x8   : > { %p3271_p6 = scmp.ge.s32.totalorder %s4014_s29, 2 }
   0xa   : > { %252 = sbr.rel (%p3271_p6) target bundleno = 31 (0x1f), region = 44 }
  0x11   : > { %255 = sbr.rel (!%p34_p4) target bundleno = 31 (0x1f), region = 48  ;;  %s257_s14 = sand.u32 (%p34_p4), 1, %s4010_s28  }
  0x12   : > { %s3273_s15 = sshll.u32 (%p34_p4), %s4014_s29, 2  ;;  %s3272_s16 = sshll.u32 (%p34_p4), %s257_s14, 6 }
  0x13   : > { %s4114_s19 = scalar_lea.vmem (%p34_p4), %s5283_s0, %s3273_s15  ;;  %s259_s20 = scalar_lea.vmem (%p34_p4), [#allocation3], %s3272_s16 }
  0x14   : > { %v277_v0 = vld [vmem:[%s4114_s19] sm:$0xf] (%p34_p4)  ;;  %v279_v1 = vld [vmem:[%s4114_s19 + $0x8] sm:$0xf] (%p34_p4)  ;;  %v281_v2 = vld [vmem:[%s4114_s19 + $0x10] sm:$0xf] (%p34_p4) }
  0x15   : > { %278 = vst [vmem:[%s259_s20] sm:$0xf] (%p34_p4), %v277_v0  ;;  %280 = vst [vmem:[%s259_s20 + $0x4] sm:$0xf] (%p34_p4), %v279_v1  ;;  %v283_v3 = vld [vmem:[%s4114_s19 + $0x18] sm:$0xf] (%p34_p4) }
  0x16   : > { %v285_v4 = vld [vmem:[%s4114_s19 + $0x20] sm:$0xf] (%p34_p4)  ;;  %282 = vst [vmem:[%s259_s20 + $0x8] sm:$0xf] (%p34_p4), %v281_v2  ;;  %284 = vst [vmem:[%s259_s20 + $0xc] sm:$0xf] (%p34_p4), %v283_v3 }
  0x17   : > { %286 = vst [vmem:[%s259_s20 + $0x10] sm:$0xf] (%p34_p4), %v285_v4  ;;  %v287_v5 = vld [vmem:[%s4114_s19 + $0x28] sm:$0xf] (%p34_p4)  ;;  %v289_v6 = vld [vmem:[%s4114_s19 + $0x30] sm:$0xf] (%p34_p4) }
  0x18   : > { %v291_v7 = vld [vmem:[%s4114_s19 + $0x38] sm:$0xf]  ;;  %288 = vst [vmem:[%s259_s20 + $0x14] sm:$0xf] %v287_v5  ;;  %290 = vst [vmem:[%s259_s20 + $0x18] sm:$0xf] %v289_v6 }
  0x19   : > { %292 = vst [vmem:[%s259_s20 + $0x1c] sm:$0xf] %v291_v7  ;;  %v293_v8 = vld [vmem:[%s4114_s19 + $0x40] sm:$0xf]  ;;  %v295_v9 = vld [vmem:[%s4114_s19 + $0x48] sm:$0xf] }
  0x1a   : > { %v297_v10 = vld [vmem:[%s4114_s19 + $0x50] sm:$0xf]  ;;  %294 = vst [vmem:[%s259_s20 + $0x20] sm:$0xf] %v293_v8  ;;  %296 = vst [vmem:[%s259_s20 + $0x24] sm:$0xf] %v295_v9 }
  0x1b   : > { %298 = vst [vmem:[%s259_s20 + $0x28] sm:$0xf] %v297_v10  ;;  %v299_v11 = vld [vmem:[%s4114_s19 + $0x58] sm:$0xf]  ;;  %v301_v12 = vld [vmem:[%s4114_s19 + $0x60] sm:$0xf] }
  0x1c   : > { %v303_v13 = vld [vmem:[%s4114_s19 + $0x68] sm:$0xf]  ;;  %300 = vst [vmem:[%s259_s20 + $0x2c] sm:$0xf] %v299_v11  ;;  %302 = vst [vmem:[%s259_s20 + $0x30] sm:$0xf] %v301_v12 }
  0x1d   : > { %304 = vst [vmem:[%s259_s20 + $0x34] sm:$0xf] %v303_v13  ;;  %v305_v14 = vld [vmem:[%s4114_s19 + $0x70] sm:$0xf]  ;;  %v307_v15 = vld [vmem:[%s4114_s19 + $0x78] sm:$0xf] }
  0x1e   : > { %306 = vst [vmem:[%s259_s20 + $0x38] sm:$0xf] %v305_v14  ;;  %308 = vst [vmem:[%s259_s20 + $0x3c] sm:$0xf] %v307_v15 }
  0x1f PF: > { %p3274_p7 = scmp.ge.s32.totalorder %s4014_s29, 1  ;;  %p362_p8 = scmp.lt.s32.totalorder %s4014_s29, 3 }
  0x21   : > { %p363_p9 = pnand %p3274_p7, %p362_p8 }
  0x23   : > { %366 = sbr.rel (%p363_p9) target bundleno = 4328 (0x10e8), region = 89 }
  0x2a   : > { %v3800_v16 = vld [vmem:[%s5286_s3] sm:$0xff]   ;;  %v3801_v17 = vld [vmem:[%s5286_s3 + $0x8] sm:$0xff]   ;;  %s369_s25 = sand.u32 1, %s4006_s27   ;;  %v3802_v18 = vld [vmem:[%s5286_s3 + $0x10] sm:$0xff]   ;;  %v4016_v19 = vmov 0   ;;  %vm1198_vm0 = vcmask 261120  }
  0x2b   : > { %3555 = vmatprep.subr.bf16.mxu1 %v3800_v16  ;;  %s4144_s11 = sshll.u32 %s369_s25, 6  ;;  %596 = vmatprep.mubr.bf16.mxu0 %v4016_v19  ;;  %v3803_v20 = vld [vmem:[%s5286_s3 + $0x18] sm:$0xff]   ;;  %v3808_v21 = vld [vmem:[%s5285_s2 + $0x4] ss:$8 sps:$4 sm:$0xff]   ;;  %v3810_v22 = vld [vmem:[%s5285_s2] ss:$8 sps:$4 sm:$0xff]  }
  0x2c   : > { %3556 = vmatpush3.bf16.msra.mxu1 %v3800_v16  ;;  %s4157_s19 = scalar_lea.vmem [#allocation3], %s4144_s11  ;;  %564 = vmatprep.subr.bf16.mxu0 %v3808_v21  ;;  %v3804_v24 = vld [vmem:[%s5286_s3 + $0x20] sm:$0xff]   ;;  %v3814_v25 = vld [vmem:[%s5285_s2 + $0x14] ss:$8 sps:$4 sm:$0xff]   ;;  %v3816_v26 = vld [vmem:[%s5285_s2 + $0x10] ss:$8 sps:$4 sm:$0xff]  }
  0x2d   : > { %3557 = vmatprep.subr.bf16.mxu1 %v3801_v17  ;;  %v4160_v23 = vld [vmem:[%s4157_s19 + $0x20] sm:$0xff]   ;;  %565 = vmatpush1.bf16.msra.mxu0 %v3810_v22  ;;  %v3805_v27 = vld [vmem:[%s5286_s3 + $0x28] sm:$0xff]   ;;  %v3822_v30 = vld [vmem:[%s5285_s2 + $0x34] ss:$8 sps:$4 sm:$0xff]   ;;  %s4017_s18 = smov 65   ;;  %s4018_s20 = smov 96  }
  0x2e   : > { %3571 = vmatprep.mubr.bf16.mxu1 %v4160_v23  ;;  %566 = vmatprep.subr.bf16.mxu0 %v3814_v25  ;;  %v3818_v28 = vld [vmem:[%s5285_s2 + $0x24] ss:$8 sps:$4 sm:$0xff]   ;;  %v3820_v29 = vld [vmem:[%s5285_s2 + $0x20] ss:$8 sps:$4 sm:$0xff]   ;;  %v3806_v31 = vld [vmem:[%s5286_s3 + $0x30] sm:$0xff]   ;;  %s4019_s21 = smov 256  }
  0x2f   : > { %v3824_v32 = vld [vmem:[%s5285_s2 + $0x30] ss:$8 sps:$4 sm:$0xff]   ;;  %v3826_v33 = vld [vmem:[%s5285_s2 + $0x44] ss:$8 sps:$4 sm:$0xff]   ;;  %v3828_v35 = vld [vmem:[%s5285_s2 + $0x40] ss:$8 sps:$4 sm:$0xff]  }
  0x30   : > { %3558 = vmatpush3.bf16.msra.mxu1 %v3801_v17  ;;  %v3807_v34 = vld [vmem:[%s5286_s3 + $0x38] sm:$0xff]   ;;  %v3813_v37 = vld [vmem:[%s5287_s4] sm:$0xff]   ;;  %v4209_v39 = vld [vmem:[%s4157_s19 + $0x28] sm:$0xff]   ;;  %s4020_s22 = smov 264   ;;  %s4021_s23 = smov 272  }
  0x31   : > { %3559 = vmatprep.subr.bf16.mxu1 %v3802_v18  ;;  %567 = vmatpush1.bf16.msra.mxu0 %v3816_v26  ;;  %v3830_v36 = vld [vmem:[%s5285_s2 + $0x54] ss:$8 sps:$4 sm:$0xff]   ;;  %v3832_v38 = vld [vmem:[%s5285_s2 + $0x50] ss:$8 sps:$4 sm:$0xff]   ;;  %v3836_v40 = vld [vmem:[%s5285_s2 + $0x64] ss:$8 sps:$4 sm:$0xff]  }
  0x32   : > { %568 = vmatprep.subr.bf16.mxu0 %v3818_v28  ;;  %v3817_v41 = vld [vmem:[%s5287_s4 + $0x8] sm:$0xff]   ;;  %v4218_v42 = vld [vmem:[%s4157_s19 + $0x30] sm:$0xff]   ;;  %v3825_v47 = vld [vmem:[%s5287_s4 + $0x18] sm:$0xff]   ;;  %s4022_s24 = smov 280   ;;  %s4023_s25 = smov 288  }
  0x33   : > { %v3838_v43 = vld [vmem:[%s5285_s2 + $0x60] ss:$8 sps:$4 sm:$0xff]   ;;  %v3840_v44 = vld [vmem:[%s5285_s2 + $0x74] ss:$8 sps:$4 sm:$0xff]   ;;  %v3842_v46 = vld [vmem:[%s5285_s2 + $0x70] ss:$8 sps:$4 sm:$0xff]  }
  0x34   : > { %3560 = vmatpush3.bf16.msra.mxu1 %v3802_v18  ;;  %v3821_v45 = vld [vmem:[%s5287_s4 + $0x10] sm:$0xff]   ;;  %v3835_v48 = vld [vmem:[%s4157_s19 + $0x38] sm:$0xff]   ;;  %v3844_v49 = vld [vmem:[%s4157_s19] sm:$0xff]   ;;  %s4025_s26 = smov 296   ;;  %s4026_s10 = smov 312  }
  0x35   : > { %3561 = vmatprep.subr.bf16.mxu1 %v3803_v20  ;;  %569 = vmatpush1.bf16.msra.mxu0 %v3820_v29  ;;  %v3845_v50 = vld [vmem:[%s5284_s1] sm:$0xff]   ;;  %v3847_v52 = vld [vmem:[%s4157_s19 + $0x8] sm:$0xff]   ;;  %v3839_v54 = vld [vmem:[%s5287_s4 + $0x30] sm:$0xff]   ;;  %s4027_s17 = smov 64   ;;  %s4028_s14 = smov 32  }
  0x36   : > { %570 = vmatprep.subr.bf16.mxu0 %v3822_v30  ;;  %v3829_v51 = vld [vmem:[%s5287_s4 + $0x20] sm:$0xff]   ;;  %v3834_v53 = vld [vmem:[%s5287_s4 + $0x28] sm:$0xff]   ;;  %v3850_v55 = vld [vmem:[%s4157_s19 + $0x10] sm:$0xff]  }
  0x37   : > { %v3843_v56 = vld [vmem:[%s5287_s4 + $0x38] sm:$0xff]   ;;  %v3846_v57 = vld [vmem:[%s5284_s1 + $0x8] sm:$0xff]   ;;  %v3848_v58 = vld [vmem:[%s5284_s1 + $0x10] sm:$0xff]  }
  0x38   : > { %3562 = vmatpush3.bf16.msra.mxu1 %v3803_v20  ;;  %v3851_v59 = vld [vmem:[%s4157_s19 + $0x18] sm:$0xff]   ;;  %v3852_v61 = vld [vmem:[%s5284_s1 + $0x20] sm:$0xff]   ;;  %v3853_v62 = vld [vmem:[%s5284_s1 + $0x28] sm:$0xff]   ;;  %s4024_s19 = smov 304  }
  0x39   : > { %3563 = vmatprep.subr.bf16.mxu1 %v3804_v24  ;;  %571 = vmatpush1.bf16.msra.mxu0 %v3824_v32  ;;  %v3849_v60 = vld [vmem:[%s5284_s1 + $0x18] sm:$0xff]   ;;  %v3854_v63 = vld [vmem:[%s5284_s1 + $0x30] sm:$0xff]   ;;  %v4291_v1 = vld [vmem:[%s5289_s6] sm:$0xf] }
  0x3a   : > { %572 = vmatprep.subr.bf16.mxu0 %v3826_v33  ;;  %v3855_v0 = vld [vmem:[%s5284_s1 + $0x38] sm:$0xff]  }
  0x3c   : > { %3564 = vmatpush3.bf16.msra.mxu1 %v3804_v24 }
  0x3d   : > { %3565 = vmatprep.subr.bf16.mxu1 %v3805_v27  ;;  %573 = vmatpush1.bf16.msra.mxu0 %v3828_v35 }
  0x3e   : > { %574 = vmatprep.subr.bf16.mxu0 %v3830_v36 }
  0x40   : > { %3566 = vmatpush3.bf16.msra.mxu1 %v3805_v27 }
  0x41   : > { %3567 = vmatprep.subr.bf16.mxu1 %v3806_v31  ;;  %575 = vmatpush1.bf16.msra.mxu0 %v3832_v38 }
  0x42   : > { %576 = vmatprep.subr.bf16.mxu0 %v3836_v40 }
  0x44   : > { %3568 = vmatpush3.bf16.msra.mxu1 %v3806_v31 }
  0x45   : > { %3569 = vmatprep.subr.bf16.mxu1 %v3807_v34  ;;  %577 = vmatpush1.bf16.msra.mxu0 %v3838_v43 }
  0x46   : > { %578 = vmatprep.subr.bf16.mxu0 %v3840_v44 }
  0x48   : > { %3570 = vmatpush3.bf16.msra.mxu1 %v3807_v34 }
  0x49   : > { %3579 = vmatprep.subr.bf16.mxu1 %v3813_v37  ;;  %579 = vmatpush1.bf16.msra.mxu0 %v3842_v46 }
  0x4b   : > { %3572 = vmatmul.mubr.bf16.vlgmr.msra.gmra.mrb[0].mxu1 %v4209_v39 }
  0x4c   : > { %3580 = vmatpush3.bf16.msra.mxu1 %v3813_v37  ;;  %3575 = vmatprep.mubr.bf16.mxu1 %v4218_v42 }
  0x4d   : > { %3581 = vmatprep.subr.bf16.mxu1 %v3817_v41  ;;  %597 = vmatmul.mubr.bf16.vlgmr.msra.gmra.mrb[0].mxu0 %v3844_v49 }
  0x4e   : > { %606 = vmatprep.mubr.bf16.mxu0 %v4016_v19 }
  0x50   : > { %3582 = vmatpush3.bf16.msra.mxu1 %v3817_v41 }
  0x51   : > { %3583 = vmatprep.subr.bf16.mxu1 %v3821_v45 }
  0x53   : > { %3576 = vmatmul.mubr.bf16.gmra.mrb[4].mxu1 %v3835_v48 }
  0x54   : > { %3584 = vmatpush3.bf16.msra.mxu1 %v3821_v45  ;;  %3595 = vmatprep.mubr.bf16.mxu1 %v3845_v50 }
  0x55   : > { %3585 = vmatprep.subr.bf16.mxu1 %v3825_v47  ;;  %607 = vmatmul.mubr.bf16.gmra.mrb[4].mxu0 %v3847_v52 }
  0x56   : > { %616 = vmatprep.mubr.bf16.mxu0 %v4016_v19 }
  0x58   : > { %3586 = vmatpush3.bf16.msra.mxu1 %v3825_v47 }
  0x59   : > { %3587 = vmatprep.subr.bf16.mxu1 %v3829_v51 }
  0x5c   : > { %3588 = vmatpush3.bf16.msra.mxu1 %v3829_v51 }
  0x5d   : > { %3589 = vmatprep.subr.bf16.mxu1 %v3834_v53  ;;  %617 = vmatmul.mubr.bf16.gmra.mrb[8].mxu0 %v3850_v55 }
  0x5e   : > { %626 = vmatprep.mubr.bf16.mxu0 %v4016_v19 }
  0x60   : > { %3590 = vmatpush3.bf16.msra.mxu1 %v3834_v53 }
  0x61   : > { %3591 = vmatprep.subr.bf16.mxu1 %v3839_v54 }
  0x64   : > { %3592 = vmatpush3.bf16.msra.mxu1 %v3839_v54 }
  0x65   : > { %3593 = vmatprep.subr.bf16.mxu1 %v3843_v56  ;;  %627 = vmatmul.mubr.bf16.gmra.mrb[12].mxu0 %v3851_v59 }
  0x66   : > { %636 = vmatprep.mubr.bf16.mxu0 %v4016_v19 }
  0x68   : > { %3594 = vmatpush3.bf16.msra.mxu1 %v3843_v56 }
  0x6b   : > { %3596 = vmatmul.mubr.bf16.vlgmr.msra.gmra.mrb[8].mxu1 %v3846_v57 }
  0x6c   : > { %3599 = vmatprep.mubr.bf16.mxu1 %v3848_v58 }
  0x6d   : > { %637 = vmatmul.mubr.bf16.gmra.mrb[16].mxu0 %v4160_v23 }
  0x6e   : > { %646 = vmatprep.mubr.bf16.mxu0 %v4016_v19 }
  0x73   : > { %3600 = vmatmul.mubr.bf16.gmra.mrb[12].mxu1 %v3849_v60 }
  0x74   : > { %3603 = vmatprep.mubr.bf16.mxu1 %v3852_v61 }
  0x75   : > { %647 = vmatmul.mubr.bf16.gmra.mrb[20].mxu0 %v4209_v39 }
  0x76   : > { %656 = vmatprep.mubr.bf16.mxu0 %v4016_v19 }
  0x7b   : > { %3604 = vmatmul.mubr.bf16.gmra.mrb[16].mxu1 %v3853_v62 }
  0x7c   : > { %3607 = vmatprep.mubr.bf16.mxu1 %v3854_v63 }
  0x7d   : > { %657 = vmatmul.mubr.bf16.gmra.mrb[24].mxu0 %v4218_v42 }
  0x7e   : > { %666 = vmatprep.mubr.bf16.mxu0 %v4016_v19 }
  0x83   : > { %3608 = vmatmul.mubr.bf16.gmra.mrb[20].mxu1 %v3855_v0 }
  0x85   : > { %667 = vmatmul.mubr.bf16.gmra.mrb[28].mxu0 %v3835_v48 }
  0x86   : > { %3397 = vmatprep.mubr.bf16.mxu0 %v4291_v1 }
 0x11e   : > { %v3573_v2 = vpop.f32.mrb[0].mxu1 }
 0x11f   : > { %v775_v3 = vpop.f32.mrb[1].mxu1 }
 0x120   : > { %v3574_v4 = vpop.f32.mrb[2].mxu1  ;;  %v598_v10 = vpop.f32.mrb[0].mxu0 }
 0x121   : > { %v4294_v5 = vpack.c.bf16 %v3574_v4, %v3573_v2  ;;  %v778_v6 = vpop.f32.mrb[3].mxu1  ;;  %v600_v12 = vpop.f32.mrb[1].mxu0 }
 0x122   : > { %v4296_v7 = vpack.c.bf16 %v778_v6, %v775_v3  ;;  %v602_v15 = vpop.f32.mrb[2].mxu0 }
 0x123   : > { %5313 = vst [vmem:[#allocation5_spill] sm:$0xff] %v4294_v5  ;;  %v4304_v17 = vpack.c.bf16 %v602_v15, %v598_v10  ;;  %v604_v18 = vpop.f32.mrb[3].mxu0 }
 0x124   : > { %5314 = vst [vmem:[#allocation6_spill] sm:$0xff] %v4296_v7  ;;  %3415 = vmatprep.mubr.msk.bf16.mxu1 %vm1198_vm0, %v4296_v7  ;;  %v4306_v20 = vpack.c.bf16 %v604_v18, %v600_v12 }
 0x125   : > { %v1212_v45 = vsel %vm1198_vm0, %v4304_v17, 0 }
 0x126   : > { %v3577_v8 = vpop.f32.mrb[4].mxu1 }
 0x127   : > { %v791_v9 = vpop.f32.mrb[5].mxu1 }
 0x128   : > { %v3578_v11 = vpop.f32.mrb[6].mxu1  ;;  %v608_v21 = vpop.f32.mrb[4].mxu0 }
 0x129   : > { %v4300_v13 = vpack.c.bf16 %v3578_v11, %v3577_v8  ;;  %v794_v14 = vpop.f32.mrb[7].mxu1  ;;  %v610_v22 = vpop.f32.mrb[5].mxu0 }
 0x12a   : > { %v4302_v16 = vpack.c.bf16 %v794_v14, %v791_v9  ;;  %v612_v23 = vpop.f32.mrb[6].mxu0 }
 0x12b   : > { %5315 = vst [vmem:[#allocation7_spill] sm:$0xff] %v4300_v13  ;;  %v4308_v24 = vpack.c.bf16 %v612_v23, %v608_v21  ;;  %v614_v25 = vpop.f32.mrb[7].mxu0 }
 0x12c   : > { %5316 = vst [vmem:[#allocation8_spill] sm:$0xff] %v4302_v16  ;;  %v4310_v26 = vpack.c.bf16 %v614_v25, %v610_v22 }
 0x12d   : > { %v1215_v58 = vsel %vm1198_vm0, %v4308_v24, 0 }
 0x130   : > { %v618_v27 = vpop.f32.mrb[8].mxu0 }
 0x131   : > { %v620_v28 = vpop.f32.mrb[9].mxu0 }
 0x132   : > { %v622_v29 = vpop.f32.mrb[10].mxu0 }
 0x133   : > { %v4312_v30 = vpack.c.bf16 %v622_v29, %v618_v27  ;;  %v624_v31 = vpop.f32.mrb[11].mxu0 }
 0x134   : > { %v4314_v32 = vpack.c.bf16 %v624_v31, %v620_v28 }
 0x135   : > { %v1218_v10 = vsel %vm1198_vm0, %v4312_v30, 0 }
 0x138   : > { %v628_v35 = vpop.f32.mrb[12].mxu0 }
 0x139   : > { %v630_v37 = vpop.f32.mrb[13].mxu0 }
 0x13a   : > { %v632_v40 = vpop.f32.mrb[14].mxu0 }
 0x13b   : > { %v4320_v42 = vpack.c.bf16 %v632_v40, %v628_v35  ;;  %v634_v43 = vpop.f32.mrb[15].mxu0 }
 0x13c   : > { %v4322_v44 = vpack.c.bf16 %v634_v43, %v630_v37 }
 0x13d   : > { %5317 = vst [vmem:[#allocation9_spill] sm:$0xff] %v4320_v42  ;;  %v1221_v31 = vsel %vm1198_vm0, %v4320_v42, 0 }
 0x13e   : > { %v3597_v33 = vpop.f32.mrb[8].mxu1 }
 0x13f   : > { %v972_v34 = vpop.f32.mrb[9].mxu1 }
 0x140   : > { %v3598_v36 = vpop.f32.mrb[10].mxu1  ;;  %v638_v48 = vpop.f32.mrb[16].mxu0 }
 0x141   : > { %v4316_v38 = vpack.c.bf16 %v3598_v36, %v3597_v33  ;;  %v975_v39 = vpop.f32.mrb[11].mxu1  ;;  %v640_v50 = vpop.f32.mrb[17].mxu0 }
 0x142   : > { %v4318_v41 = vpack.c.bf16 %v975_v39, %v972_v34  ;;  %v642_v53 = vpop.f32.mrb[18].mxu0 }
 0x143   : > { %v4337_v55 = vpack.c.bf16 %v642_v53, %v638_v48  ;;  %v644_v56 = vpop.f32.mrb[19].mxu0 }
 0x144   : > { %3381 = vmatprep.subr.bf16.mxu0 %v4318_v41  ;;  %3731 = vmatprep.subr.msk.bf16.mxu1 %vm1198_vm0, %v4318_v41  ;;  %v4339_v57 = vpack.c.bf16 %v644_v56, %v640_v50 }
 0x145   : > { %3382 = vmatpush3.bf16.xpose.msra.mxu0 %v4304_v17  ;;  %3400 = vmatpush3.bf16.xpose.msra.mxu1 %v1212_v45  ;;  %5319 = vst [vmem:[#allocation11_spill] sm:$0xff] %v4337_v55  ;;  %v1224_v40 = vsel %vm1198_vm0, %v4337_v55, 0 }
 0x146   : > { %3383 = vmatprep.subr.bf16.mxu0 %v4316_v38  ;;  %3732 = vmatprep.subr.msk.bf16.mxu1 %vm1198_vm0, %v4316_v38  ;;  %v3601_v46 = vpop.f32.mrb[12].mxu1 }
 0x147   : > { %v988_v47 = vpop.f32.mrb[13].mxu1 }
 0x148   : > { %v3602_v49 = vpop.f32.mrb[14].mxu1  ;;  %v648_v61 = vpop.f32.mrb[20].mxu0 }
 0x149   : > { %v4333_v51 = vpack.c.bf16 %v3602_v49, %v3601_v46  ;;  %v991_v52 = vpop.f32.mrb[15].mxu1  ;;  %v650_v63 = vpop.f32.mrb[21].mxu0 }
 0x14a   : > { %v4335_v54 = vpack.c.bf16 %v991_v52, %v988_v47  ;;  %v652_v3 = vpop.f32.mrb[22].mxu0 }
 0x14b   : > { %5318 = vst [vmem:[#allocation10_spill] sm:$0xff] %v4333_v51  ;;  %v4351_v6 = vpack.c.bf16 %v652_v3, %v648_v61  ;;  %v654_v8 = vpop.f32.mrb[23].mxu0 }
 0x14c   : > { %v4353_v9 = vpack.c.bf16 %v654_v8, %v650_v63 }
 0x14d   : > { %3384 = vmatpush3.bf16.xpose.msra.mxu0 %v4308_v24  ;;  %3402 = vmatpush3.bf16.xpose.msra.mxu1 %v1215_v58  ;;  %v1227_v43 = vsel %vm1198_vm0, %v4351_v6, 0 }
 0x14e   : > { %3385 = vmatprep.subr.bf16.mxu0 %v4335_v54  ;;  %3733 = vmatprep.subr.msk.bf16.mxu1 %vm1198_vm0, %v4335_v54  ;;  %v3605_v59 = vpop.f32.mrb[16].mxu1 }
 0x14f   : > { %v1004_v60 = vpop.f32.mrb[17].mxu1 }
 0x150   : > { %v3606_v62 = vpop.f32.mrb[18].mxu1  ;;  %v658_v12 = vpop.f32.mrb[24].mxu0 }
 0x151   : > { %v4347_v0 = vpack.c.bf16 %v3606_v62, %v3605_v59  ;;  %v1007_v2 = vpop.f32.mrb[19].mxu1  ;;  %v660_v15 = vpop.f32.mrb[25].mxu0 }
 0x152   : > { %v4349_v4 = vpack.c.bf16 %v1007_v2, %v1004_v60  ;;  %v662_v22 = vpop.f32.mrb[26].mxu0 }
 0x153   : > { %v4363_v25 = vpack.c.bf16 %v662_v22, %v658_v12  ;;  %v664_v28 = vpop.f32.mrb[27].mxu0 }
 0x154   : > { %v4367_v29 = vpack.c.bf16 %v664_v28, %v660_v15 }
 0x155   : > { %3386 = vmatpush3.bf16.xpose.msra.mxu0 %v4312_v30  ;;  %3404 = vmatpush3.bf16.xpose.msra.mxu1 %v1218_v10  ;;  %5321 = vst [vmem:[#allocation13_spill] sm:$0xff] %v4363_v25  ;;  %v1230_v45 = vsel %vm1198_vm0, %v4363_v25, 0 }
 0x156   : > { %3387 = vmatprep.subr.bf16.mxu0 %v4333_v51  ;;  %3734 = vmatprep.subr.msk.bf16.mxu1 %vm1198_vm0, %v4333_v51  ;;  %v3609_v11 = vpop.f32.mrb[20].mxu1 }
 0x157   : > { %v1020_v14 = vpop.f32.mrb[21].mxu1 }
 0x158   : > { %v3610_v18 = vpop.f32.mrb[22].mxu1  ;;  %v668_v33 = vpop.f32.mrb[28].mxu0 }
 0x159   : > { %v4361_v21 = vpack.c.bf16 %v3610_v18, %v3609_v11  ;;  %v1023_v23 = vpop.f32.mrb[23].mxu1  ;;  %v670_v34 = vpop.f32.mrb[29].mxu0 }
 0x15a   : > { %v4365_v27 = vpack.c.bf16 %v1023_v23, %v1020_v14  ;;  %v672_v35 = vpop.f32.mrb[30].mxu0 }
 0x15b   : > { %5320 = vst [vmem:[#allocation12_spill] sm:$0xff] %v4361_v21  ;;  %v4375_v36 = vpack.c.bf16 %v672_v35, %v668_v33  ;;  %v674_v37 = vpop.f32.mrb[31].mxu0 }
 0x15c   : > { %5322 = vst [vmem:[#allocation14_spill] sm:$0xff] %v4365_v27  ;;  %v4377_v39 = vpack.c.bf16 %v674_v37, %v670_v34 }
 0x15d   : > { %3388 = vmatpush3.bf16.xpose.msra.mxu0 %v4320_v42  ;;  %3406 = vmatpush3.bf16.xpose.msra.mxu1 %v1221_v31  ;;  %5323 = vst [vmem:[#allocation15_spill] sm:$0xff] %v4375_v36  ;;  %v1233_v46 = vsel %vm1198_vm0, %v4375_v36, 0 }
 0x15e   : > { %3389 = vmatprep.subr.bf16.mxu0 %v4349_v4  ;;  %3735 = vmatprep.subr.msk.bf16.mxu1 %vm1198_vm0, %v4349_v4 }
 0x165   : > { %3390 = vmatpush3.bf16.xpose.msra.mxu0 %v4337_v55  ;;  %3408 = vmatpush3.bf16.xpose.msra.mxu1 %v1224_v40 }
 0x166   : > { %3391 = vmatprep.subr.bf16.mxu0 %v4347_v0  ;;  %3736 = vmatprep.subr.msk.bf16.mxu1 %vm1198_vm0, %v4347_v0 }
 0x16d   : > { %3392 = vmatpush3.bf16.xpose.msra.mxu0 %v4351_v6  ;;  %3410 = vmatpush3.bf16.xpose.msra.mxu1 %v1227_v43 }
 0x16e   : > { %3393 = vmatprep.subr.bf16.mxu0 %v4365_v27  ;;  %3737 = vmatprep.subr.msk.bf16.mxu1 %vm1198_vm0, %v4365_v27 }
 0x175   : > { %3394 = vmatpush3.bf16.xpose.msra.mxu0 %v4363_v25  ;;  %3412 = vmatpush3.bf16.xpose.msra.mxu1 %v1230_v45 }
 0x176   : > { %3395 = vmatprep.subr.bf16.mxu0 %v4361_v21  ;;  %3738 = vmatprep.subr.msk.bf16.mxu1 %vm1198_vm0, %v4361_v21 }
 0x17d   : > { %3396 = vmatpush3.bf16.xpose.msra.mxu0 %v4375_v36  ;;  %3414 = vmatpush3.bf16.xpose.msra.mxu1 %v1233_v46 }
 0x17e   : > { %3611 = vmatprep.subr.bf16.mxu0 %v4306_v20 }
 0x184   : > { %3398 = vmatmul.mubr.bf16.vlgmr.msra.gmra.mrb[32].mxu0 %v4291_v1  ;;  %3416 = vmatmul.mubr.msk.bf16.vlgmr.msra.gmra.mrb[24].mxu1 %vm1198_vm0, %v4296_v7  ;;  %v1101_v1 = vlaneseq }
 0x185   : > { %3417 = vmatprep.mubr.msk.bf16.mxu1 %vm1198_vm0, %v4294_v5  ;;  %3612 = vmatpush3.bf16.msra.mxu0 %v4306_v20 }
 0x186   : > { %3613 = vmatprep.subr.bf16.mxu0 %v4310_v26  ;;  %v4432_v47 = vshrl.u32 %v1101_v1, 7 }
 0x188   : > { %v1334_v48 = vsub.s32 0, %v4432_v47  ;;  %v1346_v49 = vsub.s32 4, %v4432_v47 }
 0x189   : > { %3614 = vmatpush3.bf16.msra.mxu0 %v4310_v26 }
 0x18a   : > { %3615 = vmatprep.subr.bf16.mxu0 %v4314_v32 }
 0x18c   : > { %3418 = vmatmul.mubr.msk.bf16.gmra.mrb[28].mxu1 %vm1198_vm0, %v4294_v5 }
 0x18d   : > { %3419 = vmatprep.mubr.msk.bf16.mxu1 %vm1198_vm0, %v4302_v16  ;;  %3616 = vmatpush3.bf16.msra.mxu0 %v4314_v32 }
 0x18e   : > { %3617 = vmatprep.subr.bf16.mxu0 %v4322_v44 }
 0x191   : > { %3618 = vmatpush3.bf16.msra.mxu0 %v4322_v44 }
 0x192   : > { %3619 = vmatprep.subr.bf16.mxu0 %v4339_v57 }
 0x194   : > { %3420 = vmatmul.mubr.msk.bf16.gmra.mrb[32].mxu1 %vm1198_vm0, %v4302_v16 }
 0x195   : > { %3421 = vmatprep.mubr.msk.bf16.mxu1 %vm1198_vm0, %v4300_v13  ;;  %3620 = vmatpush3.bf16.msra.mxu0 %v4339_v57 }
 0x196   : > { %3621 = vmatprep.subr.bf16.mxu0 %v4353_v9 }
 0x199   : > { %3622 = vmatpush3.bf16.msra.mxu0 %v4353_v9 }
 0x19a   : > { %3623 = vmatprep.subr.bf16.mxu0 %v4367_v29 }
 0x19c   : > { %3422 = vmatmul.mubr.msk.bf16.gmra.mrb[36].mxu1 %vm1198_vm0, %v4300_v13 }
 0x19d   : > { %3624 = vmatpush3.bf16.msra.mxu0 %v4367_v29 }
 0x19e   : > { %3625 = vmatprep.subr.bf16.mxu0 %v4377_v39 }
 0x1a1   : > { %3626 = vmatpush3.bf16.msra.mxu0 %v4377_v39 }
 0x257   : > { %v4436_v50 = vpop.f32.mrb[32].mxu0  ;;  %v1293_v52 = vpop.f32.mrb[24].mxu1 }
 0x258   : > { %v1335_v53 = vrot.slane %v4436_v50, %v1334_v48  ;;  %v4439_v56 = vpop.f32.mrb[33].mxu0  ;;  %v1295_v58 = vpop.f32.mrb[25].mxu1 }
 0x259   : > { %v1347_v59 = vrot.slane %v4439_v56, %v1346_v49  ;;  %v1098_v60 = vpop.f32.mrb[34].mxu0  ;;  %v1297_v61 = vpop.f32.mrb[26].mxu1 }
 0x25a   : > { %v4442_v62 = vadd.f32 %v1335_v53, %v1293_v52  ;;  %v4444_v63 = vadd.f32 %v1335_v53, %v1297_v61  ;;  %v1099_v2 = vpop.f32.mrb[35].mxu0  ;;  %v1299_v3 = vpop.f32.mrb[27].mxu1 }
 0x25b   : > { %v1348_v8 = vadd.f32 %v1347_v59, %v1295_v58  ;;  %v1349_v10 = vadd.f32 %v1347_v59, %v1299_v3 }
 0x25d   : > { %1356 = vrot.lane.b32.xlu0 %v1348_v8, %s4017_s18 }
 0x25f   : > { %v1303_v11 = vpop.f32.mrb[28].mxu1 }
 0x260   : > { %v4447_v12 = vadd.f32 %v1335_v53, %v1303_v11  ;;  %v1305_v14 = vpop.f32.mrb[29].mxu1 }
 0x261   : > { %v1350_v15 = vadd.f32 %v1347_v59, %v1305_v14  ;;  %v1307_v18 = vpop.f32.mrb[30].mxu1  ;;  %1358 = vrot.lane.b32.xlu0 %v1349_v10, %s4017_s18 }
 0x262   : > { %v4450_v22 = vadd.f32 %v1335_v53, %v1307_v18  ;;  %v1309_v23 = vpop.f32.mrb[31].mxu1 }
 0x263   : > { %v1351_v28 = vadd.f32 %v1347_v59, %v1309_v23  ;;  %1360 = vrot.lane.b32.xlu1 %v1350_v15, %s4017_s18 }
 0x265   : > { %1612 = vrot.lane.b32.xlu0 %v4318_v41, %s4018_s20 }
 0x267   : > { %v1313_v31 = vpop.f32.mrb[32].mxu1  ;;  %1362 = vrot.lane.b32.xlu1 %v1351_v28, %s4017_s18 }
 0x268   : > { %v4456_v33 = vadd.f32 %v1335_v53, %v1313_v31  ;;  %v1315_v34 = vpop.f32.mrb[33].mxu1 }
 0x269   : > { %v1352_v35 = vadd.f32 %v1347_v59, %v1315_v34  ;;  %v1317_v37 = vpop.f32.mrb[34].mxu1  ;;  %1600 = vrot.lane.b32.xlu0 %v4312_v30, %s4018_s20 }
 0x26a   : > { %v4460_v40 = vadd.f32 %v1335_v53, %v1317_v37  ;;  %v1319_v43 = vpop.f32.mrb[35].mxu1  ;;  %v1128_v37 = vld [vmem:[%s5290_s7] sm:$0xff] }
 0x26b   : > { %v1353_v45 = vadd.f32 %v1347_v59, %v1319_v43  ;;  %1596 = vrot.lane.b32.xlu1 %v4304_v17, %s4018_s20  ;;  %vm1130_vm1 = vnez %v1128_v37 }
 0x26c   : > { %v1132_v43 = vsel %vm1130_vm1, 16843009, %v4016_v19 }
 0x26d   : > { %1364 = vrot.lane.b32.xlu0 %v1352_v35, %s4017_s18 }
 0x26f   : > { %v1323_v46 = vpop.f32.mrb[36].mxu1  ;;  %1598 = vrot.lane.b32.xlu1 %v4308_v24, %s4018_s20 }
 0x270   : > { %v4467_v48 = vadd.f32 %v1335_v53, %v1323_v46  ;;  %v1325_v49 = vpop.f32.mrb[37].mxu1 }
 0x271   : > { %v1354_v52 = vadd.f32 %v1347_v59, %v1325_v49  ;;  %v1327_v58 = vpop.f32.mrb[38].mxu1  ;;  %v1135_v49 = vunpack.c.1.s8 %v1132_v43 }
 0x272   : > { %v4469_v60 = vadd.f32 %v1335_v53, %v1327_v58  ;;  %v1329_v61 = vpop.f32.mrb[39].mxu1 }
 0x273   : > { %v1355_v2 = vadd.f32 %v1347_v59, %v1329_v61  ;;  %1614 = vrot.lane.b32.xlu1 %v4316_v38, %s4018_s20  ;;  %1368 = vrot.lane.b32.xlu0 %v1354_v52, %s4017_s18  ;;  %v1136_v52 = vunpack.c.2.s8 %v1132_v43  ;;  %v1144_v61 = vpack.c.b16 %v1135_v49, %v1135_v49 }
 0x277   : > { %1616 = vrot.lane.b32.xlu1 %v4335_v54, %s4018_s20 }
 0x27b   : > { %1366 = vrot.lane.b32.xlu1 %v1353_v45, %s4017_s18  ;;  %v1134_v45 = vunpack.c.0.s8 %v1132_v43 }
 0x27d   : > { %v1142_v46 = vpack.c.b16 %v1134_v45, %v1134_v45 }
 0x27f   : > { %1370 = vrot.lane.b32.xlu1 %v1355_v2, %s4017_s18  ;;  %v1143_v58 = vpack.c.b8 %v1142_v46, %v1142_v46  ;;  %v1146_v2 = vpack.c.b16 %v1136_v52, %v1136_v52 }
 0x281   : > { %vm1158_vm2 = vnez %v1143_v58 }
 0x2cf   : > { %v1357_v3 = vpop.permute.xlu0 %1356 }
 0x2d0   : > { %1373 = vrot.lane.b32.xlu0 %v1357_v3, %s4019_s21  ;;  %v1137_v3 = vunpack.c.3.s8 %v1132_v43  ;;  %v1104_v43 = vadd.s32 16, %v4432_v47 }
 0x2d3   : > { %v1359_v53 = vpop.permute.xlu0 %1358 }
 0x2d4   : > { %1377 = vrot.lane.b32.xlu1 %v1359_v53, %s4020_s22  ;;  %v1145_v53 = vpack.c.b8 %v1144_v61, %v1144_v61  ;;  %v1105_v61 = vadd.s32 24, %v4432_v47 }
 0x2d5   : > { %v1361_v59 = vpop.permute.xlu1 %1360 }
 0x2d6   : > { %1381 = vrot.lane.b32.xlu0 %v1361_v59, %s4021_s23  ;;  %v1147_v59 = vpack.c.b8 %v1146_v2, %v1146_v2  ;;  %vm1159_vm3 = vnez %v1145_v53 }
 0x2d7   : > { %v1613_v8 = vpop.permute.xlu0 %1612  ;;  %v1167_v45 = vsel %vm1159_vm3, 16843009, %v4016_v19 }
 0x2d8   : > { %3739 = vmatprep.subr.msk.bf16.mxu0 %vm1198_vm0, %v1613_v8  ;;  %v1148_v8 = vpack.c.b16 %v1137_v3, %v1137_v3  ;;  %vm1160_vm4 = vnez %v1147_v59  ;;  %v1175_v52 = vunpack.c.0.s8 %v1167_v45 }
 0x2d9   : > { %v1363_v10 = vpop.permute.xlu1 %1362  ;;  %v1168_v46 = vsel %vm1160_vm4, 16843009, %v4016_v19 }
 0x2da   : > { %1385 = vrot.lane.b32.xlu1 %v1363_v10, %s4022_s24  ;;  %v1166_v10 = vsel %vm1158_vm2, 16843009, %v4016_v19  ;;  %v1149_v37 = vpack.c.b8 %v1148_v8, %v1148_v8  ;;  %v1176_v58 = vunpack.c.0.s8 %v1168_v46  ;;  %vm1183_vm10 = vcmp.ne.s32.totalorder %v1175_v52, 0 }
 0x2db   : > { %v4483_v11 = vpop.permute.xlu0 %1600  ;;  %v5330_v52 = vmov 0 }
 0x2dc   : > { %vm1161_vm7 = vnez %v1149_v37  ;;  %vm1184_vm12 = vcmp.ne.s32.totalorder %v1176_v58, 0  ;;  %v1129_v58 = vld [vmem:[%s5290_s7 + $0x8] sm:$0xff] }
 0x2dd   : > { %v4485_v14 = vpop.permute.xlu1 %1596  ;;  %v1169_v53 = vsel %vm1161_vm7, 16843009, %v4016_v19  ;;  %vm1131_vm3 = vnez %v1129_v58 }
 0x2df   : > { %v1365_v15 = vpop.permute.xlu0 %1364 }
 0x2e0   : > { %1389 = vrot.lane.b32.xlu0 %v1365_v15, %s4023_s25  ;;  %v4503_v15 = vand.u32 127, %v1101_v1  ;;  %v1114_v1 = vadd.s32 64, %v1104_v43 }
 0x2e1   : > { %v4488_v18 = vpop.permute.xlu1 %1598 }
 0x2e2   : > { %vm1122_vm11 = vcmp.gt.s32.totalorder %v4503_v15, %v1114_v1 }
 0x2e3   : > { %vm4530_vm14 = vmor %vm1122_vm11, %vm1184_vm12 }
 0x2e5   : > { %v4490_v23 = vpop.permute.xlu1 %1614  ;;  %v1369_v28 = vpop.permute.xlu0 %1368 }
 0x2e6   : > { %1397 = vrot.lane.b32.xlu0 %v1369_v28, %s4024_s19  ;;  %v1112_v28 = vadd.s32 64, %v4432_v47 }
 0x2e8   : > { %vm1120_vm5 = vcmp.gt.s32.totalorder %v4503_v15, %v1112_v28  ;;  %v1177_v28 = vunpack.c.0.s8 %v1169_v53 }
 0x2e9   : > { %v4493_v31 = vpop.permute.xlu1 %1616 }
 0x2ea   : > { %vm1185_vm1 = vcmp.ne.s32.totalorder %v1177_v28, 0 }
 0x2ed   : > { %v1367_v34 = vpop.permute.xlu1 %1366 }
 0x2ee   : > { %1393 = vrot.lane.b32.xlu1 %v1367_v34, %s4025_s26  ;;  %v1174_v34 = vunpack.c.0.s8 %v1166_v10  ;;  %v1115_v10 = vadd.s32 64, %v1105_v61  ;;  %v1133_v61 = vsel %vm1131_vm3, 16843009, %v4016_v19 }
 0x2ef   : > { %v1141_v28 = vunpack.c.3.s8 %v1133_v61 }
 0x2f0   : > { %vm1182_vm6 = vcmp.ne.s32.totalorder %v1174_v34, 0  ;;  %vm1123_vm15 = vcmp.gt.s32.totalorder %v4503_v15, %v1115_v10 }
 0x2f1   : > { %v1371_v35 = vpop.permute.xlu1 %1370  ;;  %vm4512_vm8 = vmor %vm1120_vm5, %vm1182_vm6 }
 0x2f2   : > { %1401 = vrot.lane.b32.xlu1 %v1371_v35, %s4026_s10  ;;  %v1103_v35 = vadd.s32 8, %v4432_v47  ;;  %vm4546_vm2 = vmor %vm1123_vm15, %vm1185_vm1 }
 0x2f3   : > { %v5331_v52 = vsel %vm4546_vm2, 4294967295, %v5330_v52 }
 0x2f4   : > { %v1113_v49 = vadd.s32 64, %v1103_v35  ;;  %5332 = vst [vmem:[#allocation16_spill] sm:$0xff] %v5331_v52 }
 0x2f6   : > { %vm1121_vm9 = vcmp.gt.s32.totalorder %v4503_v15, %v1113_v49 }
 0x2f7   : > { %vm4525_vm13 = vmor %vm1121_vm9, %vm1183_vm10 }
 0x342   : > { %v1374_v2 = vpop.permute.xlu0 %1373 }
 0x343   : > { %v1403_v59 = vadd.f32 %v1374_v2, %v4442_v62  ;;  %v1139_v2 = vunpack.c.1.s8 %v1133_v61 }
 0x345   : > { %v4522_v8 = vsel %vm4512_vm8, -1e+30, %v1403_v59  ;;  %v1140_v59 = vunpack.c.2.s8 %v1133_v61  ;;  %v1152_v10 = vpack.c.b16 %v1139_v2, %v1139_v2 }
 0x346   : > { %v1378_v34 = vpop.permute.xlu1 %1377  ;;  %1419 = vmax.xlane.f32.xlu0 %v4522_v8 }
 0x347   : > { %v1404_v62 = vadd.f32 %v1378_v34, %v4444_v63 }
 0x348   : > { %v1382_v37 = vpop.permute.xlu0 %1381 }
 0x349   : > { %v1405_v43 = vadd.f32 %v1382_v37, %v4447_v12  ;;  %v4537_v46 = vsel %vm4525_vm13, -1e+30, %v1404_v62  ;;  %v1154_v62 = vpack.c.b16 %v1140_v59, %v1140_v59  ;;  %v1153_v37 = vpack.c.b8 %v1152_v10, %v1152_v10 }
 0x34a   : > { %1421 = vmax.xlane.f32.xlu1 %v4537_v46 }
 0x34b   : > { %v4543_v49 = vsel %vm4530_vm14, -1e+30, %v1405_v43  ;;  %v1156_v43 = vpack.c.b16 %v1141_v28, %v1141_v28  ;;  %vm1163_vm5 = vnez %v1153_v37  ;;  %v1109_v28 = vadd.s32 56, %v4432_v47 }
 0x34c   : > { %v1386_v63 = vpop.permute.xlu1 %1385  ;;  %1423 = vmax.xlane.f32.xlu0 %v4543_v49 }
 0x34d   : > { %v1406_v12 = vadd.f32 %v1386_v63, %v4450_v22  ;;  %v1138_v22 = vunpack.c.0.s8 %v1133_v61  ;;  %v1155_v63 = vpack.c.b8 %v1154_v62, %v1154_v62  ;;  %v1157_v58 = vpack.c.b8 %v1156_v43, %v1156_v43 }
 0x34e   : > { %v1108_v61 = vadd.s32 48, %v4432_v47 }
 0x34f   : > { %v4553_v1 = vsel %vm4546_vm2, -1e+30, %v1406_v12  ;;  %v1150_v53 = vpack.c.b16 %v1138_v22, %v1138_v22  ;;  %v1106_v12 = vadd.s32 32, %v4432_v47  ;;  %vm1164_vm6 = vnez %v1155_v63 }
 0x350   : > { %1425 = vmax.xlane.f32.xlu0 %v4553_v1  ;;  %v1171_v22 = vsel %vm1163_vm5, 16843009, %v4016_v19  ;;  %vm1165_vm7 = vnez %v1157_v58  ;;  %v1172_v59 = vsel %vm1164_vm6, 16843009, %v4016_v19  ;;  %v1118_v43 = vadd.s32 64, %v1108_v61 }
 0x351   : > { %v1151_v34 = vpack.c.b8 %v1150_v53, %v1150_v53  ;;  %v1179_v10 = vunpack.c.0.s8 %v1171_v22  ;;  %v1173_v37 = vsel %vm1165_vm7, 16843009, %v4016_v19  ;;  %v1180_v63 = vunpack.c.0.s8 %v1172_v59 }
 0x352   : > { %vm1126_vm1 = vcmp.gt.s32.totalorder %v4503_v15, %v1118_v43 }
 0x353   : > { %vm1162_vm4 = vnez %v1151_v34  ;;  %v1390_v34 = vpop.permute.xlu0 %1389  ;;  %vm1187_vm12 = vcmp.ne.s32.totalorder %v1179_v10, 0  ;;  %vm1188_vm3 = vcmp.ne.s32.totalorder %v1180_v63, 0 }
 0x354   : > { %vm4591_vm7 = vmor %vm1126_vm1, %vm1188_vm3 }
 0x358   : > { %v1398_v58 = vpop.permute.xlu0 %1397 }
 0x35b   : > { %1618 = vrot.lane.b32.xlu1 %v4333_v51, %s4018_s20  ;;  %v1116_v51 = vadd.s32 64, %v1106_v12  ;;  %v1181_v12 = vunpack.c.0.s8 %v1173_v37 }
 0x35d   : > { %vm1124_vm9 = vcmp.gt.s32.totalorder %v4503_v15, %v1116_v51  ;;  %vm1189_vm6 = vcmp.ne.s32.totalorder %v1181_v12, 0 }
 0x35f   : > { %1604 = vrot.lane.b32.xlu1 %v4337_v55, %s4018_s20  ;;  %v1170_v55 = vsel %vm1162_vm4, 16843009, %v4016_v19 }
 0x360   : > { %v1178_v2 = vunpack.c.0.s8 %v1170_v55  ;;  %v1394_v62 = vpop.permute.xlu1 %1393  ;;  %v1407_v55 = vadd.f32 %v1390_v34, %v4456_v33  ;;  %v1409_v33 = vadd.f32 %v1398_v58, %v4467_v48 }
 0x361   : > { %v1408_v52 = vadd.f32 %v1394_v62, %v4460_v40 }
 0x362   : > { %vm1186_vm10 = vcmp.ne.s32.totalorder %v1178_v2, 0  ;;  %v1417_v48 = vsel %vm4591_vm7, -1e+30, %v1409_v33 }
 0x363   : > { %vm4577_vm15 = vmor %vm1124_vm9, %vm1186_vm10 }
 0x364   : > { %v1402_v19 = vpop.permute.xlu1 %1401  ;;  %v1415_v2 = vsel %vm4577_vm15, -1e+30, %v1407_v55 }
 0x365   : > { %v1410_v40 = vadd.f32 %v1402_v19, %v4469_v60 }
 0x366   : > { %1602 = vrot.lane.b32.xlu0 %v4320_v42, %s4018_s20  ;;  %v1107_v42 = vadd.s32 40, %v4432_v47 }
 0x368   : > { %v1117_v53 = vadd.s32 64, %v1107_v42  ;;  %v1119_v42 = vadd.s32 64, %v1109_v28 }
 0x36a   : > { %vm1125_vm11 = vcmp.gt.s32.totalorder %v4503_v15, %v1117_v53  ;;  %vm1127_vm5 = vcmp.gt.s32.totalorder %v4503_v15, %v1119_v42 }
 0x36b   : > { %vm4583_vm4 = vmor %vm1125_vm11, %vm1187_vm12 }
 0x36c   : > { %v1416_v53 = vsel %vm4583_vm4, -1e+30, %v1408_v52  ;;  %vm4598_vm9 = vmor %vm1127_vm5, %vm1189_vm6 }
 0x36d   : > { %v1418_v15 = vsel %vm4598_vm9, -1e+30, %v1410_v40 }
 0x383   : > { %1427 = vmax.xlane.f32.xlu1 %v1415_v2 }
 0x385   : > { %1429 = vmax.xlane.f32.xlu0 %v1416_v53 }
 0x387   : > { %1431 = vmax.xlane.f32.xlu1 %v1417_v48 }
 0x389   : > { %1433 = vmax.xlane.f32.xlu0 %v1418_v15 }
 0x398   : > { %1606 = vrot.lane.b32.xlu1 %v4351_v6, %s4018_s20 }
 0x39c   : > { %1622 = vrot.lane.b32.xlu1 %v4347_v0, %s4018_s20 }
 0x39f   : > { %1620 = vrot.lane.b32.xlu0 %v4349_v4, %s4018_s20 }
 0x3d3   : > { %v1420_v60 = vpop.xlane.xlu0 %1419 }
 0x3d4   : > { %v1435_v52 = vsub.f32 %v4522_v8, %v1420_v60 }
 0x3d6   : > { %v1443_v10 = vmul.f32 1.442695, %v1435_v52 }
 0x3d7   : > { %v1422_v28 = vpop.xlane.xlu1 %1421 }
 0x3d8   : > { %3864 = vpow2.f32 %v1443_v10  ;;  %v1436_v34 = vsub.f32 %v4537_v46, %v1422_v28 }
 0x3d9   : > { %v1424_v62 = vpop.xlane.xlu0 %1423 }
 0x3da   : > { %v1445_v37 = vmul.f32 1.442695, %v1436_v34  ;;  %v1437_v43 = vsub.f32 %v4543_v49, %v1424_v62 }
 0x3db   : > { %v4620_v46 = vpop.permute.xlu1 %1618 }
 0x3dc   : > { %3866 = vpow2.f32 %v1445_v37  ;;  %v1447_v63 = vmul.f32 1.442695, %v1437_v43 }
 0x3dd   : > { %v1426_v55 = vpop.xlane.xlu0 %1425 }
 0x3de   : > { %3868 = vpow2.f32 %v1447_v63  ;;  %v1438_v42 = vsub.f32 %v4553_v1, %v1426_v55 }
 0x3df   : > { %v4622_v49 = vpop.permute.xlu1 %1604 }
 0x3e0   : > { %v1449_v12 = vmul.f32 1.442695, %v1438_v42 }
 0x3e1   : > { %v4624_v1 = vpop.permute.xlu0 %1602 }
 0x3e2   : > { %v3865_v58 = vpop.eup %3864  ;;  %3870 = vpow2.f32 %v1449_v12 }
 0x3e3   : > { %1459 = vadd.xlane.f32.xlu1 %v3865_v58 }
 0x3e6   : > { %v3867_v8 = vpop.eup %3866 }
 0x3e7   : > { %1461 = vadd.xlane.f32.xlu0 %v3867_v8 }
 0x3e8   : > { %v3869_v19 = vpop.eup %3868 }
 0x3e9   : > { %1463 = vadd.xlane.f32.xlu1 %v3869_v19 }
 0x3ec   : > { %v3871_v33 = vpop.eup %3870 }
 0x3ed   : > { %1465 = vadd.xlane.f32.xlu0 %v3871_v33 }
 0x3fa   : > { %1624 = vrot.lane.b32.xlu1 %v4365_v27, %s4018_s20 }
 0x403   : > { %1608 = vrot.lane.b32.xlu0 %v4363_v25, %s4018_s20 }
 0x410   : > { %v1428_v40 = vpop.xlane.xlu1 %1427 }
 0x411   : > { %v1439_v60 = vsub.f32 %v1415_v2, %v1428_v40 }
 0x412   : > { %v1430_v52 = vpop.xlane.xlu0 %1429 }
 0x413   : > { %v1451_v10 = vmul.f32 1.442695, %v1439_v60  ;;  %v1440_v28 = vsub.f32 %v1416_v53, %v1430_v52 }
 0x414   : > { %v1432_v34 = vpop.xlane.xlu1 %1431 }
 0x415   : > { %v1453_v62 = vmul.f32 1.442695, %v1440_v28  ;;  %v1441_v37 = vsub.f32 %v1417_v48, %v1432_v34  ;;  %3872 = vpow2.f32 %v1451_v10 }
 0x416   : > { %v1434_v43 = vpop.xlane.xlu0 %1433 }
 0x417   : > { %3874 = vpow2.f32 %v1453_v62  ;;  %v1455_v63 = vmul.f32 1.442695, %v1441_v37  ;;  %v1442_v55 = vsub.f32 %v1418_v15, %v1434_v43 }
 0x418   : > { %v1607_v48 = vpop.permute.xlu1 %1606 }
 0x419   : > { %3876 = vpow2.f32 %v1455_v63  ;;  %v1457_v42 = vmul.f32 1.442695, %v1442_v55 }
 0x41a   : > { %v1621_v40 = vpop.permute.xlu0 %1620 }
 0x41b   : > { %3878 = vpow2.f32 %v1457_v42 }
 0x41c   : > { %v1623_v15 = vpop.permute.xlu1 %1622 }
 0x41f   : > { %v4626_v12 = vpop.eup %3872 }
 0x421   : > { %v4628_v25 = vpop.eup %3874 }
 0x422   : > { %1467 = vadd.xlane.f32.xlu0 %v4626_v12  ;;  %1469 = vadd.xlane.f32.xlu1 %v4628_v25 }
 0x423   : > { %v4632_v2 = vpop.eup %3876 }
 0x425   : > { %v4635_v53 = vpop.eup %3878 }
 0x426   : > { %1471 = vadd.xlane.f32.xlu0 %v4632_v2 }
 0x42a   : > { %1473 = vadd.xlane.f32.xlu0 %v4635_v53 }
 0x433   : > { %1626 = vrot.lane.b32.xlu1 %v4361_v21, %s4018_s20 }
 0x437   : > { %1574 = vrot.lane.b32.xlu1 %v4294_v5, %s4018_s20 }
 0x43b   : > { %1578 = vrot.lane.b32.xlu1 %v4300_v13, %s4018_s20 }
 0x440   : > { %1610 = vrot.lane.b32.xlu0 %v4375_v36, %s4018_s20 }
 0x444   : > { %1572 = vrot.lane.b32.xlu0 %v4296_v7, %s4018_s20 }
 0x448   : > { %1576 = vrot.lane.b32.xlu0 %v4302_v16, %s4018_s20 }
 0x470   : > { %v1460_v60 = vpop.xlane.xlu1 %1459 }
 0x471   : > { %3880 = vrcp.f32 %v1460_v60  ;;  %v1641_v60 = vsel %vm1198_vm0, %v4485_v14, 0 }
 0x474   : > { %v1462_v52 = vpop.xlane.xlu0 %1461 }
 0x475   : > { %3882 = vrcp.f32 %v1462_v52  ;;  %v1644_v52 = vsel %vm1198_vm0, %v4488_v18, 0 }
 0x476   : > { %v1464_v10 = vpop.xlane.xlu1 %1463 }
 0x477   : > { %3884 = vrcp.f32 %v1464_v10 }
 0x47a   : > { %v1466_v28 = vpop.xlane.xlu0 %1465 }
 0x47b   : > { %3886 = vrcp.f32 %v1466_v28  ;;  %v3881_v34 = vpop.eup %3880 }
 0x47c   : > { %v1483_v37 = vmul.f32 %v3881_v34, %v3865_v58  ;;  %v1647_v58 = vsel %vm1198_vm0, %v4483_v11, 0 }
 0x47e   : > { %v1609_v14 = vpop.permute.xlu0 %1608 }
 0x47f   : > { %v3883_v62 = vpop.eup %3882 }
 0x480   : > { %v1484_v43 = vmul.f32 %v3883_v62, %v3867_v8 }
 0x481   : > { %v3885_v55 = vpop.eup %3884 }
 0x482   : > { %v1491_v63 = vpack.c.bf16 %v1484_v43, %v1483_v37  ;;  %v1485_v16 = vmul.f32 %v3885_v55, %v3869_v19 }
 0x484   : > { %3627 = vmatprep.mubr.bf16.mxu0 %v1491_v63 }
 0x485   : > { %v3887_v42 = vpop.eup %3886 }
 0x486   : > { %v1486_v7 = vmul.f32 %v3887_v42, %v3871_v33  ;;  %v1659_v33 = vsel %vm1198_vm0, %v1609_v14, 0  ;;  %v1775_v14 = vsub.s32 5, %v4432_v47 }
 0x488   : > { %v1492_v36 = vpack.c.bf16 %v1486_v7, %v1485_v16  ;;  %v1650_v7 = vsel %vm1198_vm0, %v4624_v1, 0  ;;  %v1653_v16 = vsel %vm1198_vm0, %v4622_v49, 0 }
 0x48a   : > { %3628 = vmatmul.mubr.bf16.vlgmr.msra.gmra.mrb[36].mxu0 %v1492_v36  ;;  %v1625_v36 = vpop.permute.xlu1 %1624 }
 0x48b   : > { %3436 = vmatpush3.bf16.xpose.msra.mxu0 %v1641_v60 }
 0x48c   : > { %3740 = vmatprep.subr.msk.bf16.mxu0 %vm1198_vm0, %v4490_v23  ;;  %v1656_v23 = vsel %vm1198_vm0, %v1607_v48, 0 }
 0x493   : > { %3438 = vmatpush3.bf16.xpose.msra.mxu0 %v1644_v52 }
 0x494   : > { %3741 = vmatprep.subr.msk.bf16.mxu0 %vm1198_vm0, %v4493_v31 }
 0x49b   : > { %3440 = vmatpush3.bf16.xpose.msra.mxu0 %v1647_v58 }
 0x49c   : > { %3742 = vmatprep.subr.msk.bf16.mxu0 %vm1198_vm0, %v4620_v46 }
 0x4a3   : > { %3442 = vmatpush3.bf16.xpose.msra.mxu0 %v1650_v7 }
 0x4a4   : > { %3743 = vmatprep.subr.msk.bf16.mxu0 %vm1198_vm0, %v1621_v40 }
 0x4ab   : > { %3444 = vmatpush3.bf16.xpose.msra.mxu0 %v1653_v16  ;;  %v1763_v16 = vsub.s32 1, %v4432_v47 }
 0x4ac   : > { %3744 = vmatprep.subr.msk.bf16.mxu0 %vm1198_vm0, %v1623_v15 }
 0x4af   : > { %v1470_v18 = vpop.xlane.xlu1 %1469  ;;  %v1468_v11 = vpop.xlane.xlu0 %1467 }
 0x4b0   : > { %3888 = vrcp.f32 %v1470_v18  ;;  %v1764_v18 = vrot.slane %v4436_v50, %v1763_v16 }
 0x4b1   : > { %3890 = vrcp.f32 %v1468_v11  ;;  %v1776_v11 = vrot.slane %v4439_v56, %v1775_v14 }
 0x4b3   : > { %3446 = vmatpush3.bf16.xpose.msra.mxu0 %v1656_v23  ;;  %v1472_v31 = vpop.xlane.xlu0 %1471  ;;  %v1627_v49 = vpop.permute.xlu1 %1626 }
 0x4b4   : > { %3745 = vmatprep.subr.msk.bf16.mxu0 %vm1198_vm0, %v1625_v36  ;;  %3892 = vrcp.f32 %v1472_v31 }
 0x4b7   : > { %v1474_v8 = vpop.xlane.xlu0 %1473 }
 0x4b8   : > { %3894 = vrcp.f32 %v1474_v8 }
 0x4ba   : > { %v3889_v19 = vpop.eup %3888 }
 0x4bb   : > { %v3891_v46 = vpop.eup %3890  ;;  %3448 = vmatpush3.bf16.xpose.msra.mxu0 %v1659_v33  ;;  %v1488_v1 = vmul.f32 %v3889_v19, %v4628_v25  ;;  %v1611_v40 = vpop.permute.xlu0 %1610 }
 0x4bc   : > { %3746 = vmatprep.subr.msk.bf16.mxu0 %vm1198_vm0, %v1627_v49  ;;  %v1487_v15 = vmul.f32 %v3891_v46, %v4626_v12  ;;  %v1662_v34 = vsel %vm1198_vm0, %v1611_v40, 0  ;;  %v1575_v25 = vpop.permute.xlu1 %1574 }
 0x4be   : > { %v1493_v48 = vpack.c.bf16 %v1488_v1, %v1487_v15  ;;  %v3893_v10 = vpop.eup %3892 }
 0x4bf   : > { %v1489_v62 = vmul.f32 %v3893_v10, %v4632_v2  ;;  %v1573_v63 = vpop.permute.xlu0 %1572 }
 0x4c0   : > { %3631 = vmatprep.mubr.bf16.mxu0 %v1493_v48  ;;  %v1579_v55 = vpop.permute.xlu1 %1578 }
 0x4c2   : > { %v3895_v28 = vpop.eup %3894 }
 0x4c3   : > { %3450 = vmatpush3.bf16.xpose.msra.mxu0 %v1662_v34  ;;  %v1490_v37 = vmul.f32 %v3895_v28, %v4635_v53  ;;  %v1577_v12 = vpop.permute.xlu0 %1576 }
 0x4c5   : > { %v1494_v43 = vpack.c.bf16 %v1490_v37, %v1489_v62 }
 0x4c7   : > { %3632 = vmatmul.mubr.bf16.gmra.mrb[40].mxu0 %v1494_v43 }
 0x4c8   : > { %3451 = vmatprep.mubr.msk.bf16.mxu0 %vm1198_vm0, %v1573_v63 }
 0x4cf   : > { %3452 = vmatmul.mubr.msk.bf16.vlgmr.msra.gmra.mrb[44].mxu0 %vm1198_vm0, %v1573_v63 }
 0x4d0   : > { %3453 = vmatprep.mubr.msk.bf16.mxu0 %vm1198_vm0, %v1575_v25 }
 0x4d7   : > { %3454 = vmatmul.mubr.msk.bf16.gmra.mrb[48].mxu0 %vm1198_vm0, %v1575_v25 }
 0x4d8   : > { %3455 = vmatprep.mubr.msk.bf16.mxu0 %vm1198_vm0, %v1577_v12 }
 0x4df   : > { %3456 = vmatmul.mubr.msk.bf16.gmra.mrb[52].mxu0 %vm1198_vm0, %v1577_v12 }
 0x4e0   : > { %3457 = vmatprep.mubr.msk.bf16.mxu0 %vm1198_vm0, %v1579_v55 }
 0x4e7   : > { %3458 = vmatmul.mubr.msk.bf16.gmra.mrb[56].mxu0 %vm1198_vm0, %v1579_v55 }
 0x55d   : > { %v3629_v2 = vpop.f32.mrb[36].mxu0 }
 0x55e   : > { %1562 = vst.msk [vmem:[#allocation2 + $0x10] sm:$0xff] %vm1198_vm0, %v3629_v2  ;;  %v1529_v53 = vpop.f32.mrb[37].mxu0 }
 0x55f   : > { %1560 = vst.msk [vmem:[#allocation2] sm:$0xff] %vm1198_vm0, %v1529_v53  ;;  %v3630_v42 = vpop.f32.mrb[38].mxu0 }
 0x560   : > { %1563 = vst.msk [vmem:[#allocation2 + $0x18] sm:$0xff] %vm1198_vm0, %v3630_v42  ;;  %v1532_v60 = vpop.f32.mrb[39].mxu0 }
 0x561   : > { %1561 = vst.msk [vmem:[#allocation2 + $0x8] sm:$0xff] %vm1198_vm0, %v1532_v60 }
 0x59a   : > { %v3633_v52 = vpop.f32.mrb[40].mxu0 }
 0x59b   : > { %1566 = vst.msk [vmem:[#allocation2 + $0x30] sm:$0xff] %vm1198_vm0, %v3633_v52  ;;  %v1545_v58 = vpop.f32.mrb[41].mxu0 }
 0x59c   : > { %1564 = vst.msk [vmem:[#allocation2 + $0x20] sm:$0xff] %vm1198_vm0, %v1545_v58  ;;  %v3634_v7 = vpop.f32.mrb[42].mxu0 }
 0x59d   : > { %1567 = vst.msk [vmem:[#allocation2 + $0x38] sm:$0xff] %vm1198_vm0, %v3634_v7  ;;  %v1548_v36 = vpop.f32.mrb[43].mxu0 }
 0x59e   : > { %1565 = vst.msk [vmem:[#allocation2 + $0x28] sm:$0xff] %vm1198_vm0, %v1548_v36 }
 0x5a2   : > { %v1722_v23 = vpop.f32.mrb[44].mxu0 }
 0x5a3   : > { %v4697_v31 = vadd.f32 %v1764_v18, %v1722_v23  ;;  %v1724_v8 = vpop.f32.mrb[45].mxu0 }
 0x5a4   : > { %v1777_v19 = vadd.f32 %v1776_v11, %v1724_v8  ;;  %v1726_v33 = vpop.f32.mrb[46].mxu0 }
 0x5a5   : > { %v4699_v46 = vadd.f32 %v1764_v18, %v1726_v33  ;;  %v1728_v49 = vpop.f32.mrb[47].mxu0 }
 0x5a6   : > { %v1778_v1 = vadd.f32 %v1776_v11, %v1728_v49  ;;  %1785 = vrot.lane.b32.xlu0 %v1777_v19, %s4017_s18 }
 0x5a8   : > { %1787 = vrot.lane.b32.xlu1 %v1778_v1, %s4017_s18 }
 0x5aa   : > { %v1732_v15 = vpop.f32.mrb[48].mxu0 }
 0x5ab   : > { %v4703_v48 = vadd.f32 %v1764_v18, %v1732_v15  ;;  %v1734_v40 = vpop.f32.mrb[49].mxu0 }
 0x5ac   : > { %v1779_v10 = vadd.f32 %v1776_v11, %v1734_v40  ;;  %v1736_v28 = vpop.f32.mrb[50].mxu0 }
 0x5ad   : > { %v4705_v34 = vadd.f32 %v1764_v18, %v1736_v28  ;;  %v1738_v62 = vpop.f32.mrb[51].mxu0 }
 0x5ae   : > { %v1780_v37 = vadd.f32 %v1776_v11, %v1738_v62  ;;  %1789 = vrot.lane.b32.xlu0 %v1779_v10, %s4017_s18 }
 0x5b0   : > { %1791 = vrot.lane.b32.xlu1 %v1780_v37, %s4017_s18 }
 0x5b2   : > { %1934 = vrot.lane.b32.xlu0 %v4310_v26, %s4018_s20  ;;  %v1742_v43 = vpop.f32.mrb[52].mxu0 }
 0x5b3   : > { %v4711_v63 = vadd.f32 %v1764_v18, %v1742_v43  ;;  %v1744_v25 = vpop.f32.mrb[53].mxu0 }
 0x5b4   : > { %v1781_v12 = vadd.f32 %v1776_v11, %v1744_v25  ;;  %1932 = vrot.lane.b32.xlu1 %v4306_v20, %s4018_s20  ;;  %v1746_v55 = vpop.f32.mrb[54].mxu0 }
 0x5b5   : > { %v4715_v2 = vadd.f32 %v1764_v18, %v1746_v55  ;;  %v1748_v53 = vpop.f32.mrb[55].mxu0 }
 0x5b6   : > { %v1782_v42 = vadd.f32 %v1776_v11, %v1748_v53  ;;  %1938 = vrot.lane.b32.xlu0 %v4322_v44, %s4018_s20 }
 0x5b8   : > { %1936 = vrot.lane.b32.xlu1 %v4314_v32, %s4018_s20 }
 0x5ba   : > { %2070 = vrot.lane.b32.xlu0 %v4304_v17, %s4027_s17  ;;  %v1752_v60 = vpop.f32.mrb[56].mxu0 }
 0x5bb   : > { %v4723_v52 = vadd.f32 %v1764_v18, %v1752_v60  ;;  %v1754_v58 = vpop.f32.mrb[57].mxu0 }
 0x5bc   : > { %v1783_v7 = vadd.f32 %v1776_v11, %v1754_v58  ;;  %1940 = vrot.lane.b32.xlu1 %v4339_v57, %s4018_s20  ;;  %v1756_v16 = vpop.f32.mrb[58].mxu0 }
 0x5bd   : > { %v4727_v36 = vadd.f32 %v1764_v18, %v1756_v16  ;;  %v1758_v14 = vpop.f32.mrb[59].mxu0 }
 0x5be   : > { %v1784_v23 = vadd.f32 %v1776_v11, %v1758_v14  ;;  %2072 = vrot.lane.b32.xlu0 %v4308_v24, %s4027_s17 }
 0x5c0   : > { %1942 = vrot.lane.b32.xlu1 %v4353_v9, %s4018_s20 }
 0x5c2   : > { %2074 = vrot.lane.b32.xlu0 %v4312_v30, %s4027_s17 }
 0x5c4   : > { %1944 = vrot.lane.b32.xlu1 %v4367_v29, %s4018_s20 }
 0x5c6   : > { %1793 = vrot.lane.b32.xlu0 %v1781_v12, %s4017_s18 }
 0x5c8   : > { %1946 = vrot.lane.b32.xlu1 %v4377_v39, %s4018_s20 }
 0x5ca   : > { %1797 = vrot.lane.b32.xlu0 %v1783_v7, %s4017_s18 }
 0x5cc   : > { %2086 = vrot.lane.b32.xlu1 %v4318_v41, %s4027_s17 }
 0x5d0   : > { %2088 = vrot.lane.b32.xlu1 %v4316_v38, %s4027_s17 }
 0x5d4   : > { %2090 = vrot.lane.b32.xlu1 %v4335_v54, %s4027_s17 }
 0x5d8   : > { %1795 = vrot.lane.b32.xlu1 %v1782_v42, %s4017_s18 }
 0x5dc   : > { %1799 = vrot.lane.b32.xlu1 %v1784_v23, %s4017_s18 }
 0x618   : > { %v1786_v18 = vpop.permute.xlu0 %1785 }
 0x619   : > { %1802 = vrot.lane.b32.xlu0 %v1786_v18, %s4019_s21 }
 0x61a   : > { %v1788_v11 = vpop.permute.xlu1 %1787 }
 0x61b   : > { %1806 = vrot.lane.b32.xlu1 %v1788_v11, %s4020_s22 }
 0x620   : > { %v1790_v8 = vpop.permute.xlu0 %1789 }
 0x621   : > { %1810 = vrot.lane.b32.xlu0 %v1790_v8, %s4021_s23 }
 0x622   : > { %v1792_v19 = vpop.permute.xlu1 %1791 }
 0x623   : > { %1814 = vrot.lane.b32.xlu1 %v1792_v19, %s4022_s24 }
 0x624   : > { %v1935_v33 = vpop.permute.xlu0 %1934 }
 0x626   : > { %v1933_v49 = vpop.permute.xlu1 %1932 }
 0x627   : > { %3635 = vmatprep.subr.bf16.mxu1 %v1933_v49 }
 0x628   : > { %v1939_v1 = vpop.permute.xlu0 %1938  ;;  %3636 = vmatpush3.bf16.msra.mxu1 %v1933_v49 }
 0x629   : > { %3637 = vmatprep.subr.bf16.mxu1 %v1935_v33 }
 0x62a   : > { %v1937_v15 = vpop.permute.xlu1 %1936 }
 0x62c   : > { %v4753_v40 = vpop.permute.xlu0 %2070  ;;  %3638 = vmatpush3.bf16.msra.mxu1 %v1935_v33 }
 0x62d   : > { %3639 = vmatprep.subr.bf16.mxu1 %v1937_v15 }
 0x62e   : > { %v1941_v10 = vpop.permute.xlu1 %1940 }
 0x630   : > { %v4755_v28 = vpop.permute.xlu0 %2072  ;;  %3640 = vmatpush3.bf16.msra.mxu1 %v1937_v15 }
 0x631   : > { %3641 = vmatprep.subr.bf16.mxu1 %v1939_v1 }
 0x632   : > { %v1943_v62 = vpop.permute.xlu1 %1942 }
 0x634   : > { %v4757_v37 = vpop.permute.xlu0 %2074  ;;  %3642 = vmatpush3.bf16.msra.mxu1 %v1939_v1 }
 0x635   : > { %3643 = vmatprep.subr.bf16.mxu1 %v1941_v10 }
 0x636   : > { %v1945_v43 = vpop.permute.xlu1 %1944 }
 0x638   : > { %3644 = vmatpush3.bf16.msra.mxu1 %v1941_v10  ;;  %v1794_v25 = vpop.permute.xlu0 %1793  ;;  %v5342_v10 = vld [vmem:[#allocation10_spill] sm:$0xff] }
 0x639   : > { %3645 = vmatprep.subr.bf16.mxu1 %v1943_v62  ;;  %1818 = vrot.lane.b32.xlu0 %v1794_v25, %s4023_s25 }
 0x63a   : > { %v1947_v12 = vpop.permute.xlu1 %1946 }
 0x63c   : > { %3646 = vmatpush3.bf16.msra.mxu1 %v1943_v62  ;;  %v1798_v55 = vpop.permute.xlu0 %1797  ;;  %v5343_v62 = vld [vmem:[#allocation11_spill] sm:$0xff] }
 0x63d   : > { %3647 = vmatprep.subr.bf16.mxu1 %v1945_v43  ;;  %1826 = vrot.lane.b32.xlu0 %v1798_v55, %s4024_s19 }
 0x63e   : > { %v2087_v53 = vpop.permute.xlu1 %2086 }
 0x640   : > { %3648 = vmatpush3.bf16.msra.mxu1 %v1945_v43  ;;  %v5344_v43 = vld [vmem:[#allocation9_spill] sm:$0xff] }
 0x641   : > { %3649 = vmatprep.subr.bf16.mxu1 %v1947_v12 }
 0x642   : > { %v4761_v42 = vpop.permute.xlu1 %2088 }
 0x644   : > { %3650 = vmatpush3.bf16.msra.mxu1 %v1947_v12 }
 0x645   : > { %3747 = vmatprep.subr.msk.bf16.mxu1 %vm1198_vm0, %v2087_v53 }
 0x646   : > { %v4764_v60 = vpop.permute.xlu1 %2090 }
 0x64a   : > { %v1796_v58 = vpop.permute.xlu1 %1795 }
 0x64b   : > { %1822 = vrot.lane.b32.xlu1 %v1796_v58, %s4025_s26 }
 0x64e   : > { %v1800_v7 = vpop.permute.xlu1 %1799 }
 0x64f   : > { %1830 = vrot.lane.b32.xlu1 %v1800_v7, %s4026_s10 }
 0x68b   : > { %v1803_v16 = vpop.permute.xlu0 %1802 }
 0x68c   : > { %v1832_v14 = vadd.f32 %v1803_v16, %v4697_v31 }
 0x68d   : > { %v1807_v23 = vpop.permute.xlu1 %1806 }
 0x68e   : > { %v1833_v18 = vadd.f32 %v1807_v23, %v4699_v46  ;;  %v1840_v11 = vsel %vm4512_vm8, -1e+30, %v1832_v14 }
 0x68f   : > { %1848 = vmax.xlane.f32.xlu0 %v1840_v11 }
 0x690   : > { %v1841_v8 = vsel %vm4525_vm13, -1e+30, %v1833_v18 }
 0x691   : > { %1850 = vmax.xlane.f32.xlu1 %v1841_v8 }
 0x693   : > { %v1811_v19 = vpop.permute.xlu0 %1810 }
 0x694   : > { %v1834_v33 = vadd.f32 %v1811_v19, %v4703_v48 }
 0x695   : > { %v1815_v49 = vpop.permute.xlu1 %1814 }
 0x696   : > { %v1835_v1 = vadd.f32 %v1815_v49, %v4705_v34  ;;  %v1842_v31 = vsel %vm4530_vm14, -1e+30, %v1834_v33 }
 0x697   : > { %1852 = vmax.xlane.f32.xlu0 %v1842_v31 }
 0x698   : > { %v1843_v46 = vsel %vm4546_vm2, -1e+30, %v1835_v1 }
 0x69b   : > { %1854 = vmax.xlane.f32.xlu0 %v1843_v46 }
 0x6a2   : > { %2092 = vrot.lane.b32.xlu1 %v5342_v10, %s4027_s17 }
 0x6a6   : > { %2078 = vrot.lane.b32.xlu1 %v5343_v62, %s4027_s17 }
 0x6ab   : > { %v1819_v48 = vpop.permute.xlu0 %1818 }
 0x6ac   : > { %v1836_v34 = vadd.f32 %v1819_v48, %v4711_v63 }
 0x6ae   : > { %v1844_v53 = vsel %vm4577_vm15, -1e+30, %v1836_v34 }
 0x6af   : > { %v1827_v25 = vpop.permute.xlu0 %1826 }
 0x6b0   : > { %v1838_v55 = vadd.f32 %v1827_v25, %v4723_v52 }
 0x6b1   : > { %2076 = vrot.lane.b32.xlu0 %v5344_v43, %s4027_s17 }
 0x6b2   : > { %v1846_v16 = vsel %vm4591_vm7, -1e+30, %v1838_v55 }
 0x6bd   : > { %v1823_v12 = vpop.permute.xlu1 %1822 }
 0x6be   : > { %v1837_v58 = vadd.f32 %v1823_v12, %v4715_v2 }
 0x6c0   : > { %v1845_v63 = vsel %vm4583_vm4, -1e+30, %v1837_v58 }
 0x6c1   : > { %v1831_v7 = vpop.permute.xlu1 %1830 }
 0x6c2   : > { %v1839_v14 = vadd.f32 %v1831_v7, %v4727_v36 }
 0x6c4   : > { %v1847_v52 = vsel %vm4598_vm9, -1e+30, %v1839_v14 }
 0x6ca   : > { %1856 = vmax.xlane.f32.xlu1 %v1844_v53 }
 0x6ce   : > { %1860 = vmax.xlane.f32.xlu1 %v1846_v16 }
 0x6d0   : > { %1858 = vmax.xlane.f32.xlu0 %v1845_v63 }
 0x6d4   : > { %1862 = vmax.xlane.f32.xlu0 %v1847_v52 }
 0x6df   : > { %2080 = vrot.lane.b32.xlu1 %v4351_v6, %s4027_s17 }
 0x6e3   : > { %2096 = vrot.lane.b32.xlu1 %v4347_v0, %s4027_s17 }
 0x6ea   : > { %2094 = vrot.lane.b32.xlu0 %v4349_v4, %s4027_s17 }
 0x71c   : > { %v1849_v2 = vpop.xlane.xlu0 %1848 }
 0x71d   : > { %v1864_v23 = vsub.f32 %v1840_v11, %v1849_v2 }
 0x71e   : > { %v1851_v36 = vpop.xlane.xlu1 %1850 }
 0x71f   : > { %v1872_v18 = vmul.f32 1.442695, %v1864_v23  ;;  %v1865_v19 = vsub.f32 %v1841_v8, %v1851_v36 }
 0x721   : > { %3896 = vpow2.f32 %v1872_v18  ;;  %v1874_v33 = vmul.f32 1.442695, %v1865_v19 }
 0x722   : > { %v4806_v8 = vpop.permute.xlu1 %2092 }
 0x723   : > { %3898 = vpow2.f32 %v1874_v33 }
 0x724   : > { %v1853_v49 = vpop.xlane.xlu0 %1852 }
 0x725   : > { %v1866_v1 = vsub.f32 %v1842_v31, %v1853_v49  ;;  %v5345_v31 = vld [vmem:[#allocation13_spill] sm:$0xff] }
 0x726   : > { %v4810_v14 = vpop.permute.xlu1 %2078 }
 0x727   : > { %v1876_v48 = vmul.f32 1.442695, %v1866_v1 }
 0x728   : > { %v1855_v34 = vpop.xlane.xlu0 %1854 }
 0x729   : > { %3900 = vpow2.f32 %v1876_v48  ;;  %v1867_v25 = vsub.f32 %v1843_v46, %v1855_v34 }
 0x72b   : > { %v3897_v12 = vpop.eup %3896  ;;  %v1878_v55 = vmul.f32 1.442695, %v1867_v25 }
 0x72c   : > { %1888 = vadd.xlane.f32.xlu1 %v3897_v12  ;;  %v2077_v2 = vpop.permute.xlu0 %2076 }
 0x72d   : > { %v3899_v58 = vpop.eup %3898  ;;  %3902 = vpow2.f32 %v1878_v55 }
 0x72e   : > { %1890 = vadd.xlane.f32.xlu0 %v3899_v58 }
 0x733   : > { %v3901_v7 = vpop.eup %3900 }
 0x734   : > { %1892 = vadd.xlane.f32.xlu0 %v3901_v7 }
 0x737   : > { %v3903_v11 = vpop.eup %3902 }
 0x738   : > { %1894 = vadd.xlane.f32.xlu0 %v3903_v11 }
 0x73d   : > { %2098 = vrot.lane.b32.xlu1 %v4365_v27, %s4027_s17 }
 0x74e   : > { %2082 = vrot.lane.b32.xlu0 %v5345_v31, %s4027_s17 }
 0x757   : > { %v1857_v46 = vpop.xlane.xlu1 %1856 }
 0x758   : > { %v1868_v23 = vsub.f32 %v1844_v53, %v1857_v46  ;;  %v5348_v46 = vld [vmem:[#allocation8_spill] sm:$0xff] }
 0x75a   : > { %v1880_v18 = vmul.f32 1.442695, %v1868_v23 }
 0x75b   : > { %v1861_v36 = vpop.xlane.xlu1 %1860 }
 0x75c   : > { %v1870_v33 = vsub.f32 %v1846_v16, %v1861_v36  ;;  %3904 = vpow2.f32 %v1880_v18 }
 0x75d   : > { %v1859_v19 = vpop.xlane.xlu0 %1858 }
 0x75e   : > { %v1869_v49 = vsub.f32 %v1845_v63, %v1859_v19  ;;  %v1884_v34 = vmul.f32 1.442695, %v1870_v33  ;;  %v5346_v63 = vld [vmem:[#allocation15_spill] sm:$0xff] }
 0x75f   : > { %v2081_v23 = vpop.permute.xlu1 %2080 }
 0x760   : > { %v1882_v1 = vmul.f32 1.442695, %v1869_v49 }
 0x761   : > { %v1863_v48 = vpop.xlane.xlu0 %1862 }
 0x762   : > { %3906 = vpow2.f32 %v1882_v1  ;;  %v1871_v25 = vsub.f32 %v1847_v52, %v1863_v48  ;;  %v5347_v52 = vld [vmem:[#allocation6_spill] sm:$0xff] }
 0x763   : > { %3908 = vpow2.f32 %v1884_v34  ;;  %v2097_v36 = vpop.permute.xlu1 %2096 }
 0x764   : > { %v1886_v55 = vmul.f32 1.442695, %v1871_v25 }
 0x765   : > { %v2095_v18 = vpop.permute.xlu0 %2094 }
 0x766   : > { %3910 = vpow2.f32 %v1886_v55  ;;  %v4812_v31 = vpop.eup %3904 }
 0x76c   : > { %v4814_v27 = vpop.eup %3906 }
 0x76d   : > { %1898 = vadd.xlane.f32.xlu1 %v4814_v27  ;;  %1896 = vadd.xlane.f32.xlu0 %v4812_v31  ;;  %v4818_v53 = vpop.eup %3908 }
 0x770   : > { %v4821_v16 = vpop.eup %3910 }
 0x771   : > { %1900 = vadd.xlane.f32.xlu0 %v4818_v53 }
 0x775   : > { %1902 = vadd.xlane.f32.xlu0 %v4821_v16 }
 0x77e   : > { %2100 = vrot.lane.b32.xlu1 %v4361_v21, %s4027_s17 }
 0x782   : > { %2064 = vrot.lane.b32.xlu1 %v4294_v5, %s4027_s17 }
 0x786   : > { %2068 = vrot.lane.b32.xlu1 %v4300_v13, %s4027_s17 }
 0x78b   : > { %2084 = vrot.lane.b32.xlu0 %v5346_v63, %s4027_s17 }
 0x78f   : > { %2062 = vrot.lane.b32.xlu0 %v5347_v52, %s4027_s17 }
 0x793   : > { %2066 = vrot.lane.b32.xlu0 %v5348_v46, %s4027_s17 }
 0x7b9   : > { %v1889_v19 = vpop.xlane.xlu1 %1888 }
 0x7ba   : > { %3912 = vrcp.f32 %v1889_v19  ;;  %v2115_v19 = vsel %vm1198_vm0, %v4753_v40, 0 }
 0x7bb   : > { %v1891_v33 = vpop.xlane.xlu0 %1890 }
 0x7bc   : > { %3914 = vrcp.f32 %v1891_v33  ;;  %v2118_v33 = vsel %vm1198_vm0, %v4755_v28, 0 }
 0x7c1   : > { %v1893_v49 = vpop.xlane.xlu0 %1892 }
 0x7c2   : > { %3916 = vrcp.f32 %v1893_v49 }
 0x7c4   : > { %v3913_v1 = vpop.eup %3912 }
 0x7c5   : > { %v1895_v48 = vpop.xlane.xlu0 %1894  ;;  %v1912_v25 = vmul.f32 %v3913_v1, %v3897_v12  ;;  %v2121_v12 = vsel %vm1198_vm0, %v4757_v37, 0  ;;  %v2130_v37 = vsel %vm1198_vm0, %v2081_v23, 0 }
 0x7c6   : > { %v3915_v34 = vpop.eup %3914  ;;  %3918 = vrcp.f32 %v1895_v48 }
 0x7c7   : > { %v1913_v55 = vmul.f32 %v3915_v34, %v3899_v58 }
 0x7c9   : > { %v1920_v63 = vpack.c.bf16 %v1913_v55, %v1912_v25  ;;  %v2083_v40 = vpop.permute.xlu0 %2082 }
 0x7cb   : > { %3651 = vmatprep.mubr.bf16.mxu1 %v1920_v63 }
 0x7cc   : > { %v3917_v52 = vpop.eup %3916 }
 0x7cd   : > { %v1914_v46 = vmul.f32 %v3917_v52, %v3901_v7 }
 0x7d0   : > { %v3919_v13 = vpop.eup %3918 }
 0x7d1   : > { %v1915_v5 = vmul.f32 %v3919_v13, %v3903_v11  ;;  %v2127_v13 = vsel %vm1198_vm0, %v4810_v14, 0  ;;  %v2133_v11 = vsel %vm1198_vm0, %v2083_v40, 0  ;;  %v2249_v40 = vsub.s32 6, %v4432_v47 }
 0x7d3   : > { %v1921_v21 = vpack.c.bf16 %v1915_v5, %v1914_v46  ;;  %v2124_v5 = vsel %vm1198_vm0, %v2077_v2, 0 }
 0x7d5   : > { %3652 = vmatmul.mubr.bf16.vlgmr.msra.gmra.mrb[40].mxu1 %v1921_v21  ;;  %v2099_v21 = vpop.permute.xlu1 %2098 }
 0x7d6   : > { %3472 = vmatpush3.bf16.xpose.msra.mxu1 %v2115_v19 }
 0x7d7   : > { %3748 = vmatprep.subr.msk.bf16.mxu1 %vm1198_vm0, %v4761_v42 }
 0x7de   : > { %3474 = vmatpush3.bf16.xpose.msra.mxu1 %v2118_v33 }
 0x7df   : > { %3749 = vmatprep.subr.msk.bf16.mxu1 %vm1198_vm0, %v4764_v60 }
 0x7e6   : > { %3476 = vmatpush3.bf16.xpose.msra.mxu1 %v2121_v12 }
 0x7e7   : > { %3750 = vmatprep.subr.msk.bf16.mxu1 %vm1198_vm0, %v4806_v8 }
 0x7ee   : > { %3478 = vmatpush3.bf16.xpose.msra.mxu1 %v2124_v5 }
 0x7ef   : > { %3751 = vmatprep.subr.msk.bf16.mxu1 %vm1198_vm0, %v2095_v18 }
 0x7f6   : > { %3480 = vmatpush3.bf16.xpose.msra.mxu1 %v2127_v13  ;;  %v2237_v13 = vsub.s32 2, %v4432_v47 }
 0x7f7   : > { %3752 = vmatprep.subr.msk.bf16.mxu1 %vm1198_vm0, %v2097_v36 }
 0x7fa   : > { %v1897_v28 = vpop.xlane.xlu0 %1896  ;;  %v1899_v42 = vpop.xlane.xlu1 %1898 }
 0x7fb   : > { %3920 = vrcp.f32 %v1897_v28  ;;  %v2238_v28 = vrot.slane %v4436_v50, %v2237_v13 }
 0x7fc   : > { %3922 = vrcp.f32 %v1899_v42  ;;  %v2250_v42 = vrot.slane %v4439_v56, %v2249_v40 }
 0x7fe   : > { %3482 = vmatpush3.bf16.xpose.msra.mxu1 %v2130_v37  ;;  %v1901_v60 = vpop.xlane.xlu0 %1900  ;;  %v2101_v14 = vpop.permute.xlu1 %2100 }
 0x7ff   : > { %3753 = vmatprep.subr.msk.bf16.mxu1 %vm1198_vm0, %v2099_v21  ;;  %3924 = vrcp.f32 %v1901_v60 }
 0x802   : > { %v1903_v58 = vpop.xlane.xlu0 %1902 }
 0x803   : > { %3926 = vrcp.f32 %v1903_v58 }
 0x805   : > { %v3921_v7 = vpop.eup %3920 }
 0x806   : > { %v3923_v8 = vpop.eup %3922  ;;  %3484 = vmatpush3.bf16.xpose.msra.mxu1 %v2133_v11  ;;  %v1916_v2 = vmul.f32 %v3921_v7, %v4812_v31  ;;  %v2085_v46 = vpop.permute.xlu0 %2084 }
 0x807   : > { %3754 = vmatprep.subr.msk.bf16.mxu1 %vm1198_vm0, %v2101_v14  ;;  %v1917_v63 = vmul.f32 %v3923_v8, %v4814_v27  ;;  %v2136_v18 = vsel %vm1198_vm0, %v2085_v46, 0  ;;  %v2065_v31 = vpop.permute.xlu1 %2064 }
 0x809   : > { %v1922_v52 = vpack.c.bf16 %v1917_v63, %v1916_v2  ;;  %v3925_v23 = vpop.eup %3924 }
 0x80a   : > { %v1918_v49 = vmul.f32 %v3925_v23, %v4818_v53  ;;  %v2063_v34 = vpop.permute.xlu0 %2062 }
 0x80b   : > { %3655 = vmatprep.mubr.bf16.mxu1 %v1922_v52  ;;  %v2069_v25 = vpop.permute.xlu1 %2068 }
 0x80d   : > { %v3927_v36 = vpop.eup %3926 }
 0x80e   : > { %3486 = vmatpush3.bf16.xpose.msra.mxu1 %v2136_v18  ;;  %v1919_v1 = vmul.f32 %v3927_v36, %v4821_v16  ;;  %v2067_v27 = vpop.permute.xlu0 %2066 }
 0x810   : > { %v1923_v48 = vpack.c.bf16 %v1919_v1, %v1918_v49 }
 0x812   : > { %3656 = vmatmul.mubr.bf16.gmra.mrb[44].mxu1 %v1923_v48 }
 0x813   : > { %3487 = vmatprep.mubr.msk.bf16.mxu1 %vm1198_vm0, %v2063_v34 }
 0x81a   : > { %3488 = vmatmul.mubr.msk.bf16.vlgmr.msra.gmra.mrb[48].mxu1 %vm1198_vm0, %v2063_v34 }
 0x81b   : > { %3489 = vmatprep.mubr.msk.bf16.mxu1 %vm1198_vm0, %v2065_v31 }
 0x822   : > { %3490 = vmatmul.mubr.msk.bf16.gmra.mrb[52].mxu1 %vm1198_vm0, %v2065_v31 }
 0x823   : > { %3491 = vmatprep.mubr.msk.bf16.mxu1 %vm1198_vm0, %v2067_v27 }
 0x82a   : > { %3492 = vmatmul.mubr.msk.bf16.gmra.mrb[56].mxu1 %vm1198_vm0, %v2067_v27 }
 0x82b   : > { %3493 = vmatprep.mubr.msk.bf16.mxu1 %vm1198_vm0, %v2069_v25 }
 0x832   : > { %3494 = vmatmul.mubr.msk.bf16.gmra.mrb[60].mxu1 %vm1198_vm0, %v2069_v25 }
 0x8a8   : > { %v4870_v53 = vpop.f32.mrb[40].mxu1 }
 0x8a9   : > { %v4872_v16 = vpop.f32.mrb[41].mxu1 }
 0x8aa   : > { %v4874_v55 = vpop.f32.mrb[42].mxu1 }
 0x8ab   : > { %v4876_v19 = vpop.f32.mrb[43].mxu1 }
 0x8e5   : > { %v4878_v33 = vpop.f32.mrb[44].mxu1 }
 0x8e6   : > { %v4880_v12 = vpop.f32.mrb[45].mxu1 }
 0x8e7   : > { %v4882_v5 = vpop.f32.mrb[46].mxu1 }
 0x8e8   : > { %v4885_v21 = vpop.f32.mrb[47].mxu1 }
 0x8ed   : > { %v2196_v37 = vpop.f32.mrb[48].mxu1 }
 0x8ee   : > { %v4890_v60 = vadd.f32 %v2238_v28, %v2196_v37  ;;  %v2198_v58 = vpop.f32.mrb[49].mxu1 }
 0x8ef   : > { %v2251_v7 = vadd.f32 %v2250_v42, %v2198_v58  ;;  %v2200_v11 = vpop.f32.mrb[50].mxu1 }
 0x8f0   : > { %v4892_v8 = vadd.f32 %v2238_v28, %v2200_v11  ;;  %v2202_v14 = vpop.f32.mrb[51].mxu1 }
 0x8f1   : > { %v2252_v2 = vadd.f32 %v2250_v42, %v2202_v14  ;;  %2259 = vrot.lane.b32.xlu0 %v2251_v7, %s4017_s18 }
 0x8f3   : > { %2261 = vrot.lane.b32.xlu1 %v2252_v2, %s4017_s18 }
 0x8f5   : > { %v2206_v63 = vpop.f32.mrb[52].mxu1 }
 0x8f6   : > { %v4896_v52 = vadd.f32 %v2238_v28, %v2206_v63  ;;  %v2208_v46 = vpop.f32.mrb[53].mxu1 }
 0x8f7   : > { %v2253_v23 = vadd.f32 %v2250_v42, %v2208_v46  ;;  %v2210_v36 = vpop.f32.mrb[54].mxu1 }
 0x8f8   : > { %v4898_v18 = vadd.f32 %v2238_v28, %v2210_v36  ;;  %v2212_v49 = vpop.f32.mrb[55].mxu1 }
 0x8f9   : > { %v2254_v1 = vadd.f32 %v2250_v42, %v2212_v49  ;;  %2263 = vrot.lane.b32.xlu0 %v2253_v23, %s4017_s18 }
 0x8fb   : > { %2265 = vrot.lane.b32.xlu1 %v2254_v1, %s4017_s18 }
 0x8fd   : > { %2400 = vrot.lane.b32.xlu0 %v4310_v26, %s4027_s17  ;;  %v2216_v48 = vpop.f32.mrb[56].mxu1 }
 0x8fe   : > { %v4904_v34 = vadd.f32 %v2238_v28, %v2216_v48  ;;  %v2218_v31 = vpop.f32.mrb[57].mxu1 }
 0x8ff   : > { %v2255_v27 = vadd.f32 %v2250_v42, %v2218_v31  ;;  %2398 = vrot.lane.b32.xlu1 %v4306_v20, %s4027_s17  ;;  %v2220_v25 = vpop.f32.mrb[58].mxu1 }
 0x900   : > { %v4908_v13 = vadd.f32 %v2238_v28, %v2220_v25  ;;  %v2222_v40 = vpop.f32.mrb[59].mxu1 }
 0x901   : > { %v2256_v37 = vadd.f32 %v2250_v42, %v2222_v40  ;;  %2404 = vrot.lane.b32.xlu0 %v4322_v44, %s4027_s17 }
 0x903   : > { %2402 = vrot.lane.b32.xlu1 %v4314_v32, %s4027_s17 }
 0x905   : > { %2536 = vrot.lane.b32.xlu0 %v4304_v17, %s4028_s14  ;;  %v2226_v58 = vpop.f32.mrb[60].mxu1 }
 0x906   : > { %v4916_v7 = vadd.f32 %v2238_v28, %v2226_v58  ;;  %v2228_v11 = vpop.f32.mrb[61].mxu1 }
 0x907   : > { %v2257_v14 = vadd.f32 %v2250_v42, %v2228_v11  ;;  %2406 = vrot.lane.b32.xlu1 %v4339_v57, %s4027_s17  ;;  %v2230_v2 = vpop.f32.mrb[62].mxu1 }
 0x908   : > { %v4920_v63 = vadd.f32 %v2238_v28, %v2230_v2  ;;  %v2232_v46 = vpop.f32.mrb[63].mxu1 }
 0x909   : > { %v2258_v23 = vadd.f32 %v2250_v42, %v2232_v46  ;;  %2538 = vrot.lane.b32.xlu0 %v4308_v24, %s4028_s14 }
 0x90b   : > { %2408 = vrot.lane.b32.xlu1 %v4353_v9, %s4027_s17 }
 0x90d   : > { %2540 = vrot.lane.b32.xlu0 %v4312_v30, %s4028_s14 }
 0x90f   : > { %2410 = vrot.lane.b32.xlu1 %v4367_v29, %s4027_s17 }
 0x911   : > { %2267 = vrot.lane.b32.xlu0 %v2255_v27, %s4017_s18 }
 0x913   : > { %2412 = vrot.lane.b32.xlu1 %v4377_v39, %s4027_s17 }
 0x915   : > { %2271 = vrot.lane.b32.xlu0 %v2257_v14, %s4017_s18 }
 0x917   : > { %2552 = vrot.lane.b32.xlu1 %v4318_v41, %s4028_s14 }
 0x91b   : > { %2554 = vrot.lane.b32.xlu1 %v4316_v38, %s4028_s14 }
 0x91f   : > { %2556 = vrot.lane.b32.xlu1 %v4335_v54, %s4028_s14 }
 0x923   : > { %2269 = vrot.lane.b32.xlu1 %v2256_v37, %s4017_s18 }
 0x927   : > { %2273 = vrot.lane.b32.xlu1 %v2258_v23, %s4017_s18 }
 0x963   : > { %v2260_v17 = vpop.permute.xlu0 %2259 }
 0x964   : > { %2276 = vrot.lane.b32.xlu0 %v2260_v17, %s4019_s21 }
 0x965   : > { %v2262_v24 = vpop.permute.xlu1 %2261 }
 0x966   : > { %2280 = vrot.lane.b32.xlu1 %v2262_v24, %s4020_s22 }
 0x96b   : > { %v2264_v30 = vpop.permute.xlu0 %2263 }
 0x96c   : > { %2284 = vrot.lane.b32.xlu0 %v2264_v30, %s4021_s23 }
 0x96d   : > { %v2266_v41 = vpop.permute.xlu1 %2265 }
 0x96e   : > { %2288 = vrot.lane.b32.xlu1 %v2266_v41, %s4022_s24 }
 0x96f   : > { %v2401_v38 = vpop.permute.xlu0 %2400 }
 0x971   : > { %v2399_v28 = vpop.permute.xlu1 %2398 }
 0x972   : > { %3659 = vmatprep.subr.bf16.mxu0 %v2399_v28 }
 0x973   : > { %v2405_v54 = vpop.permute.xlu0 %2404  ;;  %3660 = vmatpush3.bf16.msra.mxu0 %v2399_v28 }
 0x974   : > { %3661 = vmatprep.subr.bf16.mxu0 %v2401_v38 }
 0x975   : > { %v2403_v42 = vpop.permute.xlu1 %2402 }
 0x977   : > { %v4946_v36 = vpop.permute.xlu0 %2536  ;;  %3662 = vmatpush3.bf16.msra.mxu0 %v2401_v38 }
 0x978   : > { %3663 = vmatprep.subr.bf16.mxu0 %v2403_v42 }
 0x979   : > { %v2407_v49 = vpop.permute.xlu1 %2406 }
 0x97b   : > { %v4948_v1 = vpop.permute.xlu0 %2538  ;;  %3664 = vmatpush3.bf16.msra.mxu0 %v2403_v42 }
 0x97c   : > { %3665 = vmatprep.subr.bf16.mxu0 %v2405_v54 }
 0x97d   : > { %v2409_v48 = vpop.permute.xlu1 %2408 }
 0x97f   : > { %v4950_v31 = vpop.permute.xlu0 %2540  ;;  %3666 = vmatpush3.bf16.msra.mxu0 %v2405_v54 }
 0x980   : > { %3667 = vmatprep.subr.bf16.mxu0 %v2407_v49 }
 0x981   : > { %v2411_v27 = vpop.permute.xlu1 %2410 }
 0x983   : > { %v2268_v25 = vpop.permute.xlu0 %2267  ;;  %3668 = vmatpush3.bf16.msra.mxu0 %v2407_v49 }
 0x984   : > { %2292 = vrot.lane.b32.xlu0 %v2268_v25, %s4023_s25  ;;  %3669 = vmatprep.subr.bf16.mxu0 %v2409_v48 }
 0x985   : > { %v2413_v40 = vpop.permute.xlu1 %2412 }
 0x987   : > { %v2272_v37 = vpop.permute.xlu0 %2271  ;;  %3670 = vmatpush3.bf16.msra.mxu0 %v2409_v48 }
 0x988   : > { %2300 = vrot.lane.b32.xlu0 %v2272_v37, %s4024_s19  ;;  %3671 = vmatprep.subr.bf16.mxu0 %v2411_v27 }
 0x989   : > { %v2553_v58 = vpop.permute.xlu1 %2552 }
 0x98b   : > { %3672 = vmatpush3.bf16.msra.mxu0 %v2411_v27 }
 0x98c   : > { %3673 = vmatprep.subr.bf16.mxu0 %v2413_v40 }
 0x98d   : > { %v4954_v11 = vpop.permute.xlu1 %2554 }
 0x98f   : > { %3674 = vmatpush3.bf16.msra.mxu0 %v2413_v40 }
 0x990   : > { %3755 = vmatprep.subr.msk.bf16.mxu0 %vm1198_vm0, %v2553_v58 }
 0x991   : > { %v4957_v14 = vpop.permute.xlu1 %2556 }
 0x995   : > { %v2270_v2 = vpop.permute.xlu1 %2269 }
 0x996   : > { %2296 = vrot.lane.b32.xlu1 %v2270_v2, %s4025_s26 }
 0x999   : > { %v2274_v46 = vpop.permute.xlu1 %2273 }
 0x99a   : > { %2304 = vrot.lane.b32.xlu1 %v2274_v46, %s4026_s10 }
 0x9d6   : > { %v2277_v23 = vpop.permute.xlu0 %2276 }
 0x9d7   : > { %v2306_v17 = vadd.f32 %v2277_v23, %v4890_v60 }
 0x9d8   : > { %v2281_v24 = vpop.permute.xlu1 %2280 }
 0x9d9   : > { %v2307_v30 = vadd.f32 %v2281_v24, %v4892_v8  ;;  %v2314_v41 = vsel %vm4512_vm8, -1e+30, %v2306_v17 }
 0x9da   : > { %2322 = vmax.xlane.f32.xlu0 %v2314_v41 }
 0x9db   : > { %v2315_v38 = vsel %vm4525_vm13, -1e+30, %v2307_v30 }
 0x9dc   : > { %2324 = vmax.xlane.f32.xlu1 %v2315_v38 }
 0x9de   : > { %v2285_v28 = vpop.permute.xlu0 %2284 }
 0x9df   : > { %v2308_v54 = vadd.f32 %v2285_v28, %v4896_v52 }
 0x9e0   : > { %v2289_v42 = vpop.permute.xlu1 %2288 }
 0x9e1   : > { %v2309_v49 = vadd.f32 %v2289_v42, %v4898_v18  ;;  %v2316_v60 = vsel %vm4530_vm14, -1e+30, %v2308_v54 }
 0x9e2   : > { %2326 = vmax.xlane.f32.xlu0 %v2316_v60 }
 0x9e3   : > { %v2317_v8 = vsel %vm4546_vm2, -1e+30, %v2309_v49 }
 0x9e6   : > { %2328 = vmax.xlane.f32.xlu0 %v2317_v8 }
 0x9ed   : > { %2558 = vrot.lane.b32.xlu1 %v5342_v10, %s4028_s14 }
 0x9f1   : > { %2544 = vrot.lane.b32.xlu1 %v5343_v62, %s4028_s14 }
 0x9f6   : > { %v2293_v52 = vpop.permute.xlu0 %2292 }
 0x9f7   : > { %v2310_v18 = vadd.f32 %v2293_v52, %v4904_v34 }
 0x9f9   : > { %v2318_v40 = vsel %vm4577_vm15, -1e+30, %v2310_v18 }
 0x9fa   : > { %v2301_v48 = vpop.permute.xlu0 %2300 }
 0x9fb   : > { %v2312_v25 = vadd.f32 %v2301_v48, %v4916_v7 }
 0x9fc   : > { %2542 = vrot.lane.b32.xlu0 %v5344_v43, %s4028_s14 }
 0x9fd   : > { %v2320_v62 = vsel %vm4591_vm7, -1e+30, %v2312_v25 }
 0xa08   : > { %v2297_v27 = vpop.permute.xlu1 %2296 }
 0xa09   : > { %v2311_v37 = vadd.f32 %v2297_v27, %v4908_v13 }
 0xa0b   : > { %v2319_v34 = vsel %vm4583_vm4, -1e+30, %v2311_v37 }
 0xa0c   : > { %v2305_v10 = vpop.permute.xlu1 %2304 }
 0xa0d   : > { %v2313_v43 = vadd.f32 %v2305_v10, %v4920_v63 }
 0xa0f   : > { %v2321_v7 = vsel %vm4598_vm9, -1e+30, %v2313_v43 }
 0xa15   : > { %2330 = vmax.xlane.f32.xlu1 %v2318_v40 }
 0xa19   : > { %2334 = vmax.xlane.f32.xlu1 %v2320_v62 }
 0xa1b   : > { %2332 = vmax.xlane.f32.xlu0 %v2319_v34 }
 0xa1f   : > { %2336 = vmax.xlane.f32.xlu0 %v2321_v7 }
 0xa2a   : > { %2546 = vrot.lane.b32.xlu1 %v4351_v6, %s4028_s14 }
 0xa2e   : > { %2562 = vrot.lane.b32.xlu1 %v4347_v0, %s4028_s14 }
 0xa35   : > { %2560 = vrot.lane.b32.xlu0 %v4349_v4, %s4028_s14 }
 0xa67   : > { %v2323_v13 = vpop.xlane.xlu0 %2322 }
 0xa68   : > { %v2338_v58 = vsub.f32 %v2314_v41, %v2323_v13 }
 0xa69   : > { %v2325_v63 = vpop.xlane.xlu1 %2324 }
 0xa6a   : > { %v2346_v2 = vmul.f32 1.442695, %v2338_v58  ;;  %v2339_v46 = vsub.f32 %v2315_v38, %v2325_v63  ;;  %v5349_v38 = vld [vmem:[#allocation14_spill] sm:$0xff] }
 0xa6c   : > { %3928 = vpow2.f32 %v2346_v2  ;;  %v2348_v23 = vmul.f32 1.442695, %v2339_v46 }
 0xa6d   : > { %v4999_v49 = vpop.permute.xlu1 %2558 }
 0xa6e   : > { %3930 = vpow2.f32 %v2348_v23 }
 0xa6f   : > { %v2327_v17 = vpop.xlane.xlu0 %2326 }
 0xa70   : > { %v2340_v24 = vsub.f32 %v2316_v60, %v2327_v17  ;;  %v5350_v60 = vld [vmem:[#allocation13_spill] sm:$0xff] }
 0xa71   : > { %v5003_v52 = vpop.permute.xlu1 %2544 }
 0xa72   : > { %v2350_v30 = vmul.f32 1.442695, %v2340_v24  ;;  %v5353_v24 = vld [vmem:[#allocation7_spill] sm:$0xff] }
 0xa73   : > { %v2329_v28 = vpop.xlane.xlu0 %2328 }
 0xa74   : > { %3932 = vpow2.f32 %v2350_v30  ;;  %v2341_v6 = vsub.f32 %v2317_v8, %v2329_v28  ;;  %v5354_v30 = vld [vmem:[#allocation15_spill] sm:$0xff]  ;;  %v5355_v28 = vld [vmem:[#allocation6_spill] sm:$0xff] }
 0xa76   : > { %v3929_v54 = vpop.eup %3928  ;;  %v2352_v42 = vmul.f32 1.442695, %v2341_v6  ;;  %v5356_v6 = vld [vmem:[#allocation8_spill] sm:$0xff] }
 0xa77   : > { %2362 = vadd.xlane.f32.xlu1 %v3929_v54  ;;  %v2543_v18 = vpop.permute.xlu0 %2542 }
 0xa78   : > { %v3931_v0 = vpop.eup %3930  ;;  %3934 = vpow2.f32 %v2352_v42 }
 0xa79   : > { %2364 = vadd.xlane.f32.xlu0 %v3931_v0 }
 0xa7e   : > { %v3933_v4 = vpop.eup %3932 }
 0xa7f   : > { %2366 = vadd.xlane.f32.xlu0 %v3933_v4 }
 0xa82   : > { %v3935_v41 = vpop.eup %3934 }
 0xa83   : > { %2368 = vadd.xlane.f32.xlu0 %v3935_v41 }
 0xa88   : > { %2564 = vrot.lane.b32.xlu1 %v5349_v38, %s4028_s14 }
 0xa99   : > { %2548 = vrot.lane.b32.xlu0 %v5350_v60, %s4028_s14 }
 0xaa2   : > { %v2331_v8 = vpop.xlane.xlu1 %2330 }
 0xaa3   : > { %v2342_v48 = vsub.f32 %v2318_v40, %v2331_v8 }
 0xaa5   : > { %v2354_v25 = vmul.f32 1.442695, %v2342_v48 }
 0xaa6   : > { %v2335_v27 = vpop.xlane.xlu1 %2334 }
 0xaa7   : > { %v2344_v10 = vsub.f32 %v2320_v62, %v2335_v27  ;;  %3936 = vpow2.f32 %v2354_v25 }
 0xaa8   : > { %v2333_v37 = vpop.xlane.xlu0 %2332 }
 0xaa9   : > { %v2343_v43 = vsub.f32 %v2319_v34, %v2333_v37  ;;  %v2358_v63 = vmul.f32 1.442695, %v2344_v10  ;;  %v5351_v34 = vld [vmem:[#allocation12_spill] sm:$0xff] }
 0xaaa   : > { %v2547_v42 = vpop.permute.xlu1 %2546 }
 0xaab   : > { %v2356_v13 = vmul.f32 1.442695, %v2343_v43 }
 0xaac   : > { %v2337_v58 = vpop.xlane.xlu0 %2336 }
 0xaad   : > { %3938 = vpow2.f32 %v2356_v13  ;;  %v2345_v2 = vsub.f32 %v2321_v7, %v2337_v58  ;;  %v5352_v7 = vld [vmem:[#allocation5_spill] sm:$0xff] }
 0xaae   : > { %3940 = vpow2.f32 %v2358_v63  ;;  %v2563_v38 = vpop.permute.xlu1 %2562 }
 0xaaf   : > { %v2360_v46 = vmul.f32 1.442695, %v2345_v2 }
 0xab0   : > { %v2561_v60 = vpop.permute.xlu0 %2560 }
 0xab1   : > { %3942 = vpow2.f32 %v2360_v46  ;;  %v5005_v23 = vpop.eup %3936 }
 0xab7   : > { %v5007_v17 = vpop.eup %3938 }
 0xab8   : > { %2372 = vadd.xlane.f32.xlu1 %v5007_v17  ;;  %2370 = vadd.xlane.f32.xlu0 %v5005_v23  ;;  %v5011_v40 = vpop.eup %3940 }
 0xabb   : > { %v5014_v62 = vpop.eup %3942 }
 0xabc   : > { %2374 = vadd.xlane.f32.xlu0 %v5011_v40 }
 0xac0   : > { %2376 = vadd.xlane.f32.xlu0 %v5014_v62 }
 0xac9   : > { %2566 = vrot.lane.b32.xlu1 %v5351_v34, %s4028_s14 }
 0xacd   : > { %2530 = vrot.lane.b32.xlu1 %v5352_v7, %s4028_s14 }
 0xad1   : > { %2534 = vrot.lane.b32.xlu1 %v5353_v24, %s4028_s14  ;;  %v2581_v24 = vsel %vm1198_vm0, %v4946_v36, 0  ;;  %v2590_v36 = vsel %vm1198_vm0, %v2543_v18, 0 }
 0xad6   : > { %2550 = vrot.lane.b32.xlu0 %v5354_v30, %s4028_s14  ;;  %v2584_v30 = vsel %vm1198_vm0, %v4948_v1, 0 }
 0xada   : > { %2528 = vrot.lane.b32.xlu0 %v5355_v28, %s4028_s14 }
 0xade   : > { %2532 = vrot.lane.b32.xlu0 %v5356_v6, %s4028_s14 }
 0xb04   : > { %v2363_v8 = vpop.xlane.xlu1 %2362 }
 0xb05   : > { %3944 = vrcp.f32 %v2363_v8 }
 0xb06   : > { %v2365_v48 = vpop.xlane.xlu0 %2364 }
 0xb07   : > { %3946 = vrcp.f32 %v2365_v48 }
 0xb08   : > { %v2565_v1 = vpop.permute.xlu1 %2564 }
 0xb0c   : > { %v2367_v27 = vpop.xlane.xlu0 %2366 }
 0xb0d   : > { %3948 = vrcp.f32 %v2367_v27 }
 0xb0f   : > { %v3945_v25 = vpop.eup %3944 }
 0xb10   : > { %v2369_v37 = vpop.xlane.xlu0 %2368  ;;  %v2386_v43 = vmul.f32 %v3945_v25, %v3929_v54  ;;  %v2587_v54 = vsel %vm1198_vm0, %v4950_v31, 0  ;;  %v2596_v31 = vsel %vm1198_vm0, %v2547_v42, 0 }
 0xb11   : > { %v3947_v10 = vpop.eup %3946  ;;  %3950 = vrcp.f32 %v2369_v37 }
 0xb12   : > { %v2387_v13 = vmul.f32 %v3947_v10, %v3931_v0 }
 0xb14   : > { %v2394_v58 = vpack.c.bf16 %v2387_v13, %v2386_v43  ;;  %v2549_v0 = vpop.permute.xlu0 %2548 }
 0xb16   : > { %3675 = vmatprep.mubr.bf16.mxu0 %v2394_v58 }
 0xb17   : > { %v3949_v63 = vpop.eup %3948 }
 0xb18   : > { %v2388_v46 = vmul.f32 %v3949_v63, %v3933_v4 }
 0xb1b   : > { %v3951_v2 = vpop.eup %3950 }
 0xb1c   : > { %v2389_v34 = vmul.f32 %v3951_v2, %v3935_v41 }
 0xb1e   : > { %v2395_v7 = vpack.c.bf16 %v2389_v34, %v2388_v46 }
 0xb20   : > { %3676 = vmatmul.mubr.bf16.vlgmr.msra.gmra.mrb[60].mxu0 %v2395_v7 }
 0xb21   : > { %3508 = vmatpush3.bf16.xpose.msra.mxu0 %v2581_v24  ;;  %v2703_v24 = vsub.s32 3, %v4432_v47 }
 0xb22   : > { %3756 = vmatprep.subr.msk.bf16.mxu0 %vm1198_vm0, %v4954_v11  ;;  %v2593_v11 = vsel %vm1198_vm0, %v5003_v52, 0  ;;  %v2599_v52 = vsel %vm1198_vm0, %v2549_v0, 0 }
 0xb29   : > { %3510 = vmatpush3.bf16.xpose.msra.mxu0 %v2584_v30 }
 0xb2a   : > { %3757 = vmatprep.subr.msk.bf16.mxu0 %vm1198_vm0, %v4957_v14 }
 0xb31   : > { %3512 = vmatpush3.bf16.xpose.msra.mxu0 %v2587_v54  ;;  %v2715_v54 = vsub.s32 7, %v4432_v47 }
 0xb32   : > { %3758 = vmatprep.subr.msk.bf16.mxu0 %vm1198_vm0, %v4999_v49 }
 0xb39   : > { %3514 = vmatpush3.bf16.xpose.msra.mxu0 %v2590_v36  ;;  %v2704_v36 = vrot.slane %v4436_v50, %v2703_v24 }
 0xb3a   : > { %3759 = vmatprep.subr.msk.bf16.mxu0 %vm1198_vm0, %v2561_v60 }
 0xb41   : > { %3516 = vmatpush3.bf16.xpose.msra.mxu0 %v2593_v11  ;;  %v2716_v11 = vrot.slane %v4439_v56, %v2715_v54 }
 0xb42   : > { %3760 = vmatprep.subr.msk.bf16.mxu0 %vm1198_vm0, %v2563_v38 }
 0xb45   : > { %v2371_v14 = vpop.xlane.xlu0 %2370  ;;  %v2373_v4 = vpop.xlane.xlu1 %2372 }
 0xb46   : > { %3952 = vrcp.f32 %v2371_v14 }
 0xb47   : > { %3954 = vrcp.f32 %v2373_v4 }
 0xb49   : > { %3518 = vmatpush3.bf16.xpose.msra.mxu0 %v2596_v31  ;;  %v2375_v41 = vpop.xlane.xlu0 %2374  ;;  %v2567_v6 = vpop.permute.xlu1 %2566 }
 0xb4a   : > { %3761 = vmatprep.subr.msk.bf16.mxu0 %vm1198_vm0, %v2565_v1  ;;  %3956 = vrcp.f32 %v2375_v41 }
 0xb4d   : > { %v2377_v49 = vpop.xlane.xlu0 %2376 }
 0xb4e   : > { %3958 = vrcp.f32 %v2377_v49 }
 0xb50   : > { %v3953_v18 = vpop.eup %3952 }
 0xb51   : > { %v3955_v28 = vpop.eup %3954  ;;  %3520 = vmatpush3.bf16.xpose.msra.mxu0 %v2599_v52  ;;  %v2390_v38 = vmul.f32 %v3953_v18, %v5005_v23  ;;  %v2551_v8 = vpop.permute.xlu0 %2550 }
 0xb52   : > { %3762 = vmatprep.subr.msk.bf16.mxu0 %vm1198_vm0, %v2567_v6  ;;  %v2391_v60 = vmul.f32 %v3955_v28, %v5007_v17  ;;  %v2602_v25 = vsel %vm1198_vm0, %v2551_v8, 0  ;;  %v2531_v23 = vpop.permute.xlu1 %2530 }
 0xb54   : > { %v2396_v42 = vpack.c.bf16 %v2391_v60, %v2390_v38  ;;  %v3957_v48 = vpop.eup %3956 }
 0xb55   : > { %v2392_v37 = vmul.f32 %v3957_v48, %v5011_v40  ;;  %v2529_v13 = vpop.permute.xlu0 %2528 }
 0xb56   : > { %3679 = vmatprep.mubr.bf16.mxu0 %v2396_v42  ;;  %v2535_v58 = vpop.permute.xlu1 %2534 }
 0xb58   : > { %v3959_v27 = vpop.eup %3958 }
 0xb59   : > { %3522 = vmatpush3.bf16.xpose.msra.mxu0 %v2602_v25  ;;  %v2393_v10 = vmul.f32 %v3959_v27, %v5014_v62  ;;  %v2533_v17 = vpop.permute.xlu0 %2532 }
 0xb5b   : > { %v2397_v43 = vpack.c.bf16 %v2393_v10, %v2392_v37 }
 0xb5d   : > { %3680 = vmatmul.mubr.bf16.gmra.mrb[64].mxu0 %v2397_v43 }
 0xb5e   : > { %3523 = vmatprep.mubr.msk.bf16.mxu0 %vm1198_vm0, %v2529_v13 }
 0xb65   : > { %3524 = vmatmul.mubr.msk.bf16.vlgmr.msra.gmra.mrb[68].mxu0 %vm1198_vm0, %v2529_v13 }
 0xb66   : > { %3525 = vmatprep.mubr.msk.bf16.mxu0 %vm1198_vm0, %v2531_v23 }
 0xb6d   : > { %3526 = vmatmul.mubr.msk.bf16.gmra.mrb[72].mxu0 %vm1198_vm0, %v2531_v23 }
 0xb6e   : > { %3527 = vmatprep.mubr.msk.bf16.mxu0 %vm1198_vm0, %v2533_v17 }
 0xb75   : > { %3528 = vmatmul.mubr.msk.bf16.gmra.mrb[76].mxu0 %vm1198_vm0, %v2533_v17 }
 0xb76   : > { %3529 = vmatprep.mubr.msk.bf16.mxu0 %vm1198_vm0, %v2535_v58 }
 0xb7d   : > { %3530 = vmatmul.mubr.msk.bf16.gmra.mrb[80].mxu0 %vm1198_vm0, %v2535_v58  ;;  %vm2053_vm0 = vcmask 523520  }
 0xbf3   : > { %v5063_v40 = vpop.f32.mrb[60].mxu0 }
 0xbf4   : > { %v5065_v62 = vpop.f32.mrb[61].mxu0 }
 0xbf5   : > { %v5067_v63 = vpop.f32.mrb[62].mxu0 }
 0xbf6   : > { %v5069_v2 = vpop.f32.mrb[63].mxu0 }
 0xc30   : > { %v5071_v46 = vpop.f32.mrb[64].mxu0 }
 0xc31   : > { %v5073_v34 = vpop.f32.mrb[65].mxu0 }
 0xc32   : > { %v5075_v7 = vpop.f32.mrb[66].mxu0 }
 0xc33   : > { %v5078_v30 = vpop.f32.mrb[67].mxu0 }
 0xc38   : > { %v2662_v1 = vpop.f32.mrb[68].mxu0 }
 0xc39   : > { %v2705_v0 = vadd.f32 %v2704_v36, %v2662_v1  ;;  %v2664_v14 = vpop.f32.mrb[69].mxu0 }
 0xc3a   : > { %v2717_v4 = vadd.f32 %v2716_v11, %v2664_v14  ;;  %v2666_v31 = vpop.f32.mrb[70].mxu0 }
 0xc3b   : > { %v2706_v41 = vadd.f32 %v2704_v36, %v2666_v31  ;;  %v2668_v49 = vpop.f32.mrb[71].mxu0 }
 0xc3c   : > { %v2718_v18 = vadd.f32 %v2716_v11, %v2668_v49  ;;  %2725 = vrot.lane.b32.xlu0 %v2717_v4, %s4017_s18 }
 0xc3e   : > { %2727 = vrot.lane.b32.xlu1 %v2718_v18, %s4017_s18 }
 0xc40   : > { %v2672_v52 = vpop.f32.mrb[72].mxu0 }
 0xc41   : > { %v2707_v28 = vadd.f32 %v2704_v36, %v2672_v52  ;;  %v2674_v6 = vpop.f32.mrb[73].mxu0 }
 0xc42   : > { %v2719_v47 = vadd.f32 %v2716_v11, %v2674_v6  ;;  %v2676_v38 = vpop.f32.mrb[74].mxu0 }
 0xc43   : > { %v2708_v50 = vadd.f32 %v2704_v36, %v2676_v38  ;;  %v2678_v60 = vpop.f32.mrb[75].mxu0 }
 0xc44   : > { %v2720_v56 = vadd.f32 %v2716_v11, %v2678_v60  ;;  %2729 = vrot.lane.b32.xlu0 %v2719_v47, %s4017_s18 }
 0xc46   : > { %2731 = vrot.lane.b32.xlu1 %v2720_v56, %s4017_s18 }
 0xc48   : > { %v2682_v42 = vpop.f32.mrb[76].mxu0 }
 0xc49   : > { %v2709_v8 = vadd.f32 %v2704_v36, %v2682_v42  ;;  %v2684_v48 = vpop.f32.mrb[77].mxu0 }
 0xc4a   : > { %v2721_v27 = vadd.f32 %v2716_v11, %v2684_v48  ;;  %v2686_v25 = vpop.f32.mrb[78].mxu0 }
 0xc4b   : > { %v2710_v37 = vadd.f32 %v2704_v36, %v2686_v25  ;;  %v2688_v10 = vpop.f32.mrb[79].mxu0 }
 0xc4c   : > { %v2722_v43 = vadd.f32 %v2716_v11, %v2688_v10  ;;  %2733 = vrot.lane.b32.xlu0 %v2721_v27, %s4017_s18 }
 0xc4e   : > { %2735 = vrot.lane.b32.xlu1 %v2722_v43, %s4017_s18 }
 0xc50   : > { %v2692_v13 = vpop.f32.mrb[80].mxu0 }
 0xc51   : > { %v2711_v23 = vadd.f32 %v2704_v36, %v2692_v13  ;;  %v2694_v17 = vpop.f32.mrb[81].mxu0 }
 0xc52   : > { %v2723_v58 = vadd.f32 %v2716_v11, %v2694_v17  ;;  %v2696_v24 = vpop.f32.mrb[82].mxu0 }
 0xc53   : > { %v2712_v54 = vadd.f32 %v2704_v36, %v2696_v24  ;;  %v2698_v1 = vpop.f32.mrb[83].mxu0 }
 0xc54   : > { %v2724_v14 = vadd.f32 %v2716_v11, %v2698_v1  ;;  %2737 = vrot.lane.b32.xlu0 %v2723_v58, %s4017_s18 }
 0xc56   : > { %2739 = vrot.lane.b32.xlu1 %v2724_v14, %s4017_s18 }
 0xcae   : > { %v2726_v4 = vpop.permute.xlu0 %2725 }
 0xcaf   : > { %2742 = vrot.lane.b32.xlu0 %v2726_v4, %s4019_s21 }
 0xcb0   : > { %v2728_v31 = vpop.permute.xlu1 %2727 }
 0xcb1   : > { %2746 = vrot.lane.b32.xlu1 %v2728_v31, %s4020_s22 }
 0xcb6   : > { %v2730_v49 = vpop.permute.xlu0 %2729 }
 0xcb7   : > { %2750 = vrot.lane.b32.xlu0 %v2730_v49, %s4021_s23 }
 0xcb8   : > { %v2732_v18 = vpop.permute.xlu1 %2731 }
 0xcb9   : > { %2754 = vrot.lane.b32.xlu1 %v2732_v18, %s4022_s24 }
 0xcbe   : > { %v2734_v52 = vpop.permute.xlu0 %2733 }
 0xcbf   : > { %2758 = vrot.lane.b32.xlu0 %v2734_v52, %s4023_s25 }
 0xcc0   : > { %v2736_v36 = vpop.permute.xlu1 %2735 }
 0xcc1   : > { %2762 = vrot.lane.b32.xlu1 %v2736_v36, %s4025_s26 }
 0xcc5   : > { %2864 = vrot.lane.b32.xlu1 %v4306_v20, %s4028_s14 }
 0xcc6   : > { %v2738_v11 = vpop.permute.xlu0 %2737 }
 0xcc7   : > { %2766 = vrot.lane.b32.xlu0 %v2738_v11, %s4024_s19 }
 0xcc8   : > { %v2740_v6 = vpop.permute.xlu1 %2739 }
 0xcc9   : > { %2866 = vrot.lane.b32.xlu1 %v4310_v26, %s4028_s14 }
 0xccd   : > { %2770 = vrot.lane.b32.xlu1 %v2740_v6, %s4026_s10 }
 0xd21   : > { %v2743_v47 = vpop.permute.xlu0 %2742 }
 0xd22   : > { %v2772_v38 = vadd.f32 %v2743_v47, %v2705_v0 }
 0xd23   : > { %v2747_v60 = vpop.permute.xlu1 %2746 }
 0xd24   : > { %v2773_v56 = vadd.f32 %v2747_v60, %v2706_v41  ;;  %v2780_v42 = vsel %vm4512_vm8, -1e+30, %v2772_v38  ;;  %vm2519_vm8 = vcmask 785920  }
 0xd25   : > { %2788 = vmax.xlane.f32.xlu0 %v2780_v42 }
 0xd26   : > { %v2781_v20 = vsel %vm4525_vm13, -1e+30, %v2773_v56  ;;  %vm2985_vm13 = vcmask 1048320  }
 0xd27   : > { %2790 = vmax.xlane.f32.xlu1 %v2781_v20 }
 0xd29   : > { %v2751_v48 = vpop.permute.xlu0 %2750 }
 0xd2a   : > { %v2774_v27 = vadd.f32 %v2751_v48, %v2707_v28 }
 0xd2b   : > { %v2755_v25 = vpop.permute.xlu1 %2754 }
 0xd2c   : > { %v2775_v10 = vadd.f32 %v2755_v25, %v2708_v50  ;;  %v2782_v26 = vsel %vm4530_vm14, -1e+30, %v2774_v27 }
 0xd2d   : > { %2792 = vmax.xlane.f32.xlu0 %v2782_v26 }
 0xd2e   : > { %v2783_v0 = vsel %vm4546_vm2, -1e+30, %v2775_v10 }
 0xd31   : > { %v2759_v41 = vpop.permute.xlu0 %2758  ;;  %2794 = vmax.xlane.f32.xlu0 %v2783_v0 }
 0xd32   : > { %v2776_v3 = vadd.f32 %v2759_v41, %v2709_v8 }
 0xd33   : > { %v2763_v43 = vpop.permute.xlu1 %2762 }
 0xd34   : > { %v2777_v13 = vadd.f32 %v2763_v43, %v2710_v37  ;;  %v2784_v35 = vsel %vm4577_vm15, -1e+30, %v2776_v3 }
 0xd35   : > { %2796 = vmax.xlane.f32.xlu1 %v2784_v35 }
 0xd36   : > { %v2785_v28 = vsel %vm4583_vm4, -1e+30, %v2777_v13 }
 0xd37   : > { %2798 = vmax.xlane.f32.xlu0 %v2785_v28  ;;  %v2865_v50 = vpop.permute.xlu1 %2864 }
 0xd38   : > { %3683 = vmatprep.subr.bf16.mxu1 %v2865_v50 }
 0xd39   : > { %v2767_v45 = vpop.permute.xlu0 %2766  ;;  %3684 = vmatpush3.bf16.msra.mxu1 %v2865_v50 }
 0xd3a   : > { %v2778_v17 = vadd.f32 %v2767_v45, %v2711_v23 }
 0xd3b   : > { %v2867_v15 = vpop.permute.xlu1 %2866 }
 0xd3c   : > { %3685 = vmatprep.subr.bf16.mxu1 %v2867_v15  ;;  %v2786_v8 = vsel %vm4591_vm7, -1e+30, %v2778_v17 }
 0xd3d   : > { %2800 = vmax.xlane.f32.xlu1 %v2786_v8  ;;  %3686 = vmatpush3.bf16.msra.mxu1 %v2867_v15 }
 0xd3f   : > { %v2771_v37 = vpop.permute.xlu1 %2770 }
 0xd40   : > { %v2779_v22 = vadd.f32 %v2771_v37, %v2712_v54 }
 0xd42   : > { %v2787_v58 = vsel %vm4598_vm9, -1e+30, %v2779_v22 }
 0xd43   : > { %2802 = vmax.xlane.f32.xlu0 %v2787_v58 }
 0xd4e   : > { %2870 = vrot.lane.b32.xlu1 %v4322_v44, %s4028_s14 }
 0xd59   : > { %2868 = vrot.lane.b32.xlu0 %v4314_v32, %s4028_s14 }
 0xdb2   : > { %v2789_v51 = vpop.xlane.xlu0 %2788 }
 0xdb3   : > { %v2804_v23 = vsub.f32 %v2780_v42, %v2789_v51 }
 0xdb4   : > { %v2791_v24 = vpop.xlane.xlu1 %2790 }
 0xdb5   : > { %v2812_v1 = vmul.f32 1.442695, %v2804_v23  ;;  %v2805_v61 = vsub.f32 %v2781_v20, %v2791_v24 }
 0xdb7   : > { %3960 = vpow2.f32 %v2812_v1  ;;  %v2814_v14 = vmul.f32 1.442695, %v2805_v61 }
 0xdb9   : > { %3962 = vpow2.f32 %v2814_v14 }
 0xdba   : > { %v2793_v4 = vpop.xlane.xlu0 %2792 }
 0xdbb   : > { %v2806_v54 = vsub.f32 %v2782_v26, %v2793_v4 }
 0xdbd   : > { %v2816_v31 = vmul.f32 1.442695, %v2806_v54 }
 0xdbe   : > { %v2795_v59 = vpop.xlane.xlu0 %2794 }
 0xdbf   : > { %3964 = vpow2.f32 %v2816_v31  ;;  %v2807_v49 = vsub.f32 %v2783_v0, %v2795_v59 }
 0xdc1   : > { %v5123_v18 = vpop.eup %3960  ;;  %v2818_v44 = vmul.f32 1.442695, %v2807_v49 }
 0xdc2   : > { %2828 = vadd.xlane.f32.xlu0 %v5123_v18  ;;  %v2797_v32 = vpop.xlane.xlu1 %2796 }
 0xdc3   : > { %3966 = vpow2.f32 %v2818_v44  ;;  %v2808_v52 = vsub.f32 %v2784_v35, %v2797_v32  ;;  %v3963_v11 = vpop.eup %3962 }
 0xdc4   : > { %v2799_v36 = vpop.xlane.xlu0 %2798 }
 0xdc5   : > { %v2820_v6 = vmul.f32 1.442695, %v2808_v52  ;;  %v2809_v47 = vsub.f32 %v2785_v28, %v2799_v36 }
 0xdc6   : > { %2830 = vadd.xlane.f32.xlu0 %v3963_v11 }
 0xdc7   : > { %3968 = vpow2.f32 %v2820_v6  ;;  %v2822_v38 = vmul.f32 1.442695, %v2809_v47  ;;  %v3856_v47 = vld [vmem:[%s5288_s5] sm:$0xff]  }
 0xdc9   : > { %v5126_v60 = vpop.eup %3964  ;;  %3970 = vpow2.f32 %v2822_v38  ;;  %v3857_v38 = vld [vmem:[%s5288_s5 + $0x8] sm:$0xff]  }
 0xdca   : > { %2832 = vadd.xlane.f32.xlu0 %v5126_v60  ;;  %v2801_v42 = vpop.xlane.xlu1 %2800 }
 0xdcb   : > { %v2810_v26 = vsub.f32 %v2786_v8, %v2801_v42  ;;  %v3860_v42 = vld [vmem:[%s5288_s5 + $0x20] sm:$0xff]  }
 0xdcd   : > { %v5129_v56 = vpop.eup %3966 }
 0xdce   : > { %2834 = vadd.xlane.f32.xlu0 %v5129_v56  ;;  %v2871_v10 = vpop.permute.xlu1 %2870 }
 0xdd0   : > { %v2803_v20 = vpop.xlane.xlu0 %2802 }
 0xdd1   : > { %v5132_v48 = vpop.eup %3968  ;;  %v2811_v0 = vsub.f32 %v2787_v58, %v2803_v20  ;;  %v3861_v20 = vld [vmem:[%s5288_s5 + $0x28] sm:$0xff]  }
 0xdd2   : > { %2836 = vadd.xlane.f32.xlu1 %v5132_v48 }
 0xdd3   : > { %v5135_v27 = vpop.eup %3970 }
 0xdd4   : > { %v2869_v25 = vpop.permute.xlu0 %2868  ;;  %2838 = vadd.xlane.f32.xlu0 %v5135_v27 }
 0xdd5   : > { %3687 = vmatprep.subr.bf16.mxu1 %v2869_v25 }
 0xdd6   : > { %3688 = vmatpush3.bf16.msra.mxu1 %v2869_v25  ;;  %v3863_v25 = vld [vmem:[%s5288_s5 + $0x38] sm:$0xff]  }
 0xdd7   : > { %3689 = vmatprep.subr.bf16.mxu1 %v2871_v10 }
 0xdda   : > { %3690 = vmatpush3.bf16.msra.mxu1 %v2871_v10 }
 0xde3   : > { %2874 = vrot.lane.b32.xlu1 %v4353_v9, %s4028_s14  ;;  %v2824_v9 = vmul.f32 1.442695, %v2810_v26 }
 0xde5   : > { %3972 = vpow2.f32 %v2824_v9 }
 0xde7   : > { %2876 = vrot.lane.b32.xlu1 %v4367_v29, %s4028_s14 }
 0xdea   : > { %2872 = vrot.lane.b32.xlu0 %v4339_v57, %s4028_s14  ;;  %v2826_v57 = vmul.f32 1.442695, %v2811_v0 }
 0xdec   : > { %3974 = vpow2.f32 %v2826_v57 }
 0xdee   : > { %2029 = vrot.lane.b32.xlu0 %v4872_v16, %s4028_s14 }
 0xdef   : > { %v5158_v29 = vpop.eup %3972 }
 0xdf2   : > { %2033 = vrot.lane.b32.xlu0 %v4870_v53, %s4028_s14 }
 0xdf6   : > { %2495 = vrot.lane.b32.xlu0 %v5065_v62, %s4027_s17  ;;  %v5161_v53 = vpop.eup %3974 }
 0xdfa   : > { %2499 = vrot.lane.b32.xlu0 %v5063_v40, %s4027_s17 }
 0xdfe   : > { %2037 = vrot.lane.b32.xlu0 %v4880_v12, %s4028_s14 }
 0xe02   : > { %2041 = vrot.lane.b32.xlu0 %v4878_v33, %s4028_s14 }
 0xe06   : > { %2503 = vrot.lane.b32.xlu0 %v5073_v34, %s4027_s17 }
 0xe0b   : > { %2840 = vadd.xlane.f32.xlu1 %v5158_v29 }
 0xe0f   : > { %2842 = vadd.xlane.f32.xlu1 %v5161_v53 }
 0xe20   : > { %2878 = vrot.lane.b32.xlu1 %v4377_v39, %s4028_s14 }
 0xe24   : > { %2031 = vrot.lane.b32.xlu1 %v4876_v19, %s4028_s14 }
 0xe28   : > { %2035 = vrot.lane.b32.xlu1 %v4874_v55, %s4028_s14 }
 0xe2c   : > { %2497 = vrot.lane.b32.xlu1 %v5069_v2, %s4027_s17 }
 0xe30   : > { %2501 = vrot.lane.b32.xlu1 %v5067_v63, %s4027_s17 }
 0xe34   : > { %2039 = vrot.lane.b32.xlu1 %v4885_v21, %s4028_s14 }
 0xe38   : > { %2043 = vrot.lane.b32.xlu1 %v4882_v5, %s4028_s14 }
 0xe3c   : > { %2505 = vrot.lane.b32.xlu1 %v5078_v30, %s4027_s17 }
 0xe4f   : > { %v2829_v39 = vpop.xlane.xlu0 %2828 }
 0xe50   : > { %3976 = vrcp.f32 %v2829_v39 }
 0xe53   : > { %v2831_v16 = vpop.xlane.xlu0 %2830 }
 0xe54   : > { %3978 = vrcp.f32 %v2831_v16 }
 0xe57   : > { %v2833_v55 = vpop.xlane.xlu0 %2832 }
 0xe5a   : > { %v3977_v19 = vpop.eup %3976 }
 0xe5b   : > { %v2835_v33 = vpop.xlane.xlu0 %2834  ;;  %v2852_v62 = vmul.f32 %v3977_v19, %v5123_v18 }
 0xe5c   : > { %3980 = vrcp.f32 %v2835_v33 }
 0xe5e   : > { %v3979_v12 = vpop.eup %3978 }
 0xe5f   : > { %v2837_v40 = vpop.xlane.xlu1 %2836  ;;  %v2853_v63 = vmul.f32 %v3979_v12, %v3963_v11 }
 0xe61   : > { %v2839_v2 = vpop.xlane.xlu0 %2838  ;;  %v2860_v21 = vpack.c.bf16 %v2853_v63, %v2852_v62 }
 0xe62   : > { %3982 = vrcp.f32 %v2839_v2 }
 0xe63   : > { %3699 = vmatprep.mubr.bf16.mxu1 %v2860_v21  ;;  %v2875_v34 = vpop.permute.xlu1 %2874  ;;  %3984 = vrcp.f32 %v2833_v55 }
 0xe64   : > { %3986 = vrcp.f32 %v2837_v40 }
 0xe65   : > { %v2873_v5 = vpop.permute.xlu0 %2872 }
 0xe66   : > { %3691 = vmatprep.subr.bf16.mxu1 %v2873_v5  ;;  %v3981_v17 = vpop.eup %3980 }
 0xe67   : > { %3692 = vmatpush3.bf16.msra.mxu1 %v2873_v5  ;;  %v2877_v41 = vpop.permute.xlu1 %2876  ;;  %v2855_v58 = vmul.f32 %v3981_v17, %v5129_v56  ;;  %v3859_v56 = vld [vmem:[%s5288_s5 + $0x18] sm:$0xff]  }
 0xe68   : > { %3693 = vmatprep.subr.bf16.mxu1 %v2875_v34 }
 0xe69   : > { %v2030_v30 = vpop.permute.xlu0 %2029 }
 0xe6a   : > { %2054 = vst.msk [vmem:[#allocation2] sm:$0xff] %vm2053_vm0, %v2030_v30 }
 0xe6b   : > { %3694 = vmatpush3.bf16.msra.mxu1 %v2875_v34 }
 0xe6c   : > { %3695 = vmatprep.subr.bf16.mxu1 %v2877_v41  ;;  %v3983_v8 = vpop.eup %3982 }
 0xe6d   : > { %v2034_v3 = vpop.permute.xlu0 %2033  ;;  %v3985_v37 = vpop.eup %3984  ;;  %v2857_v23 = vmul.f32 %v3983_v8, %v5135_v27 }
 0xe6e   : > { %2056 = vst.msk [vmem:[#allocation2 + $0x10] sm:$0xff] %vm2053_vm0, %v2034_v3  ;;  %v3987_v22 = vpop.eup %3986  ;;  %v2854_v24 = vmul.f32 %v3985_v37, %v5126_v60  ;;  %v3858_v60 = vld [vmem:[%s5288_s5 + $0x10] sm:$0xff]  }
 0xe6f   : > { %3696 = vmatpush3.bf16.msra.mxu1 %v2877_v41  ;;  %v2856_v1 = vmul.f32 %v3987_v22, %v5132_v48  ;;  %v3862_v48 = vld [vmem:[%s5288_s5 + $0x30] sm:$0xff]  }
 0xe70   : > { %v2861_v61 = vpack.c.bf16 %v2855_v58, %v2854_v24 }
 0xe71   : > { %v2496_v43 = vpop.permute.xlu0 %2495  ;;  %v2862_v4 = vpack.c.bf16 %v2857_v23, %v2856_v1 }
 0xe72   : > { %2520 = vst.msk [vmem:[#allocation2] sm:$0xff] %vm2519_vm8, %v2496_v43 }
 0xe75   : > { %v2500_v13 = vpop.permute.xlu0 %2499 }
 0xe76   : > { %2522 = vst.msk [vmem:[#allocation2 + $0x10] sm:$0xff] %vm2519_vm8, %v2500_v13 }
 0xe79   : > { %v2038_v35 = vpop.permute.xlu0 %2037 }
 0xe7a   : > { %2058 = vst.msk [vmem:[#allocation2 + $0x20] sm:$0xff] %vm2053_vm0, %v2038_v35 }
 0xe7d   : > { %v2042_v28 = vpop.permute.xlu0 %2041 }
 0xe7e   : > { %2060 = vst.msk [vmem:[#allocation2 + $0x30] sm:$0xff] %vm2053_vm0, %v2042_v28 }
 0xe81   : > { %v2504_v50 = vpop.permute.xlu0 %2503 }
 0xe82   : > { %2524 = vst.msk [vmem:[#allocation2 + $0x20] sm:$0xff] %vm2519_vm8, %v2504_v50 }
 0xe98   : > { %v2841_v45 = vpop.xlane.xlu1 %2840 }
 0xe99   : > { %3988 = vrcp.f32 %v2841_v45 }
 0xe9c   : > { %v2843_v15 = vpop.xlane.xlu1 %2842 }
 0xe9d   : > { %3990 = vrcp.f32 %v2843_v15 }
 0xea0   : > { %v2879_v51 = vpop.permute.xlu1 %2878 }
 0xea1   : > { %3697 = vmatprep.subr.bf16.mxu1 %v2879_v51 }
 0xea2   : > { %3698 = vmatpush3.bf16.msra.mxu1 %v2879_v51 }
 0xea3   : > { %v3989_v54 = vpop.eup %3988  ;;  %3707 = vmatprep.subr.bf16.mxu1 %v3856_v47 }
 0xea4   : > { %v2032_v14 = vpop.permute.xlu1 %2031  ;;  %v2858_v49 = vmul.f32 %v3989_v54, %v5158_v29 }
 0xea5   : > { %2055 = vst.msk [vmem:[#allocation2 + $0x8] sm:$0xff] %vm2053_vm0, %v2032_v14  ;;  %3700 = vmatmul.mubr.bf16.vlgmr.msra.gmra.mrb[64].mxu1 %v2861_v61 }
 0xea6   : > { %3703 = vmatprep.mubr.bf16.mxu1 %v2862_v4  ;;  %3708 = vmatpush3.bf16.msra.mxu1 %v3856_v47 }
 0xea7   : > { %v3991_v31 = vpop.eup %3990  ;;  %3709 = vmatprep.subr.bf16.mxu1 %v3857_v38 }
 0xea8   : > { %v2036_v59 = vpop.permute.xlu1 %2035  ;;  %v2859_v18 = vmul.f32 %v3991_v31, %v5161_v53 }
 0xea9   : > { %2057 = vst.msk [vmem:[#allocation2 + $0x18] sm:$0xff] %vm2053_vm0, %v2036_v59 }
 0xeaa   : > { %v2863_v44 = vpack.c.bf16 %v2859_v18, %v2858_v49  ;;  %3710 = vmatpush3.bf16.msra.mxu1 %v3857_v38 }
 0xeab   : > { %3711 = vmatprep.subr.bf16.mxu1 %v3858_v60 }
 0xeac   : > { %v2498_v32 = vpop.permute.xlu1 %2497 }
 0xead   : > { %2521 = vst.msk [vmem:[#allocation2 + $0x8] sm:$0xff] %vm2519_vm8, %v2498_v32  ;;  %3704 = vmatmul.mubr.bf16.gmra.mrb[68].mxu1 %v2863_v44 }
 0xeae   : > { %3712 = vmatpush3.bf16.msra.mxu1 %v3858_v60 }
 0xeaf   : > { %3713 = vmatprep.subr.bf16.mxu1 %v3859_v56 }
 0xeb0   : > { %v2502_v52 = vpop.permute.xlu1 %2501 }
 0xeb1   : > { %2523 = vst.msk [vmem:[#allocation2 + $0x18] sm:$0xff] %vm2519_vm8, %v2502_v52 }
 0xeb2   : > { %3714 = vmatpush3.bf16.msra.mxu1 %v3859_v56 }
 0xeb3   : > { %3715 = vmatprep.subr.bf16.mxu1 %v3860_v42 }
 0xeb4   : > { %v2040_v36 = vpop.permute.xlu1 %2039 }
 0xeb5   : > { %2059 = vst.msk [vmem:[#allocation2 + $0x28] sm:$0xff] %vm2053_vm0, %v2040_v36 }
 0xeb6   : > { %3716 = vmatpush3.bf16.msra.mxu1 %v3860_v42 }
 0xeb7   : > { %3717 = vmatprep.subr.bf16.mxu1 %v3861_v20 }
 0xeb8   : > { %v2044_v11 = vpop.permute.xlu1 %2043 }
 0xeb9   : > { %2061 = vst.msk [vmem:[#allocation2 + $0x38] sm:$0xff] %vm2053_vm0, %v2044_v11 }
 0xeba   : > { %3718 = vmatpush3.bf16.msra.mxu1 %v3861_v20 }
 0xebb   : > { %3719 = vmatprep.subr.bf16.mxu1 %v3862_v48 }
 0xebc   : > { %v2506_v6 = vpop.permute.xlu1 %2505 }
 0xebd   : > { %2525 = vst.msk [vmem:[#allocation2 + $0x28] sm:$0xff] %vm2519_vm8, %v2506_v6 }
 0xebe   : > { %3720 = vmatpush3.bf16.msra.mxu1 %v3862_v48 }
 0xebf   : > { %3721 = vmatprep.subr.bf16.mxu1 %v3863_v25 }
 0xec2   : > { %3722 = vmatpush3.bf16.msra.mxu1 %v3863_v25 }
 0xf78   : > { %v3701_v27 = vpop.f32.mrb[64].mxu1 }
 0xf79   : > { %2965 = vrot.lane.b32.xlu0 %v3701_v27, %s4018_s20  ;;  %v2922_v10 = vpop.f32.mrb[65].mxu1 }
 0xf7a   : > { %v3702_v26 = vpop.f32.mrb[66].mxu1 }
 0xf7b   : > { %2967 = vrot.lane.b32.xlu1 %v3702_v26, %s4018_s20  ;;  %v2925_v9 = vpop.f32.mrb[67].mxu1 }
 0xf7d   : > { %2961 = vrot.lane.b32.xlu0 %v2922_v10, %s4018_s20 }
 0xf7f   : > { %2963 = vrot.lane.b32.xlu1 %v2925_v9, %s4018_s20 }
 0xf80   : > { %v3705_v0 = vpop.f32.mrb[68].mxu1 }
 0xf81   : > { %2507 = vrot.lane.b32.xlu0 %v5071_v46, %s4027_s17  ;;  %v2938_v57 = vpop.f32.mrb[69].mxu1 }
 0xf82   : > { %v3706_v29 = vpop.f32.mrb[70].mxu1 }
 0xf83   : > { %2509 = vrot.lane.b32.xlu1 %v5075_v7, %s4027_s17  ;;  %v2941_v53 = vpop.f32.mrb[71].mxu1 }
 0xf85   : > { %2969 = vrot.lane.b32.xlu0 %v2938_v57, %s4018_s20 }
 0xf87   : > { %2971 = vrot.lane.b32.xlu1 %v2941_v53, %s4018_s20 }
 0xf89   : > { %2973 = vrot.lane.b32.xlu0 %v3705_v0, %s4018_s20 }
 0xf8b   : > { %2975 = vrot.lane.b32.xlu1 %v3706_v29, %s4018_s20  ;;  %s5248_s20 = scalar_lea.vmem [#allocation4], %s4144_s11  ;;  %s3350_s11 = sshll.u32 (%p4104_p5), %s3268_s30, 3 }
 0xf8c   : > { %s3151_s24 = scalar_lea.vmem (%p4104_p5), %s5291_s8, %s3350_s11 }
 0xfeb   : > { %v2966_v39 = vpop.permute.xlu0 %2965 }
 0xfec   : > { %2988 = vst.msk [vmem:[#allocation2 + $0x10] sm:$0xff] %vm2985_vm13, %v2966_v39 }
 0xfed   : > { %v2968_v16 = vpop.permute.xlu1 %2967 }
 0xfee   : > { %2989 = vst.msk [vmem:[#allocation2 + $0x18] sm:$0xff] %vm2985_vm13, %v2968_v16 }
 0xfef   : > { %v2962_v46 = vpop.permute.xlu0 %2961 }
 0xff0   : > { %2986 = vst.msk [vmem:[#allocation2] sm:$0xff] %vm2985_vm13, %v2962_v46 }
 0xff1   : > { %v2964_v7 = vpop.permute.xlu1 %2963 }
 0xff2   : > { %2987 = vst.msk [vmem:[#allocation2 + $0x8] sm:$0xff] %vm2985_vm13, %v2964_v7 }
 0xff3   : > { %v2508_v55 = vpop.permute.xlu0 %2507  ;;  %v2996_v21 = vld [vmem:[#allocation2 + $0x10] sm:$0xff] }
 0xff4   : > { %2526 = vst.msk [vmem:[#allocation2 + $0x30] sm:$0xff] %vm2519_vm8, %v2508_v55 }
 0xff5   : > { %v2510_v19 = vpop.permute.xlu1 %2509  ;;  %v2997_v12 = vld [vmem:[#allocation2 + $0x18] sm:$0xff] }
 0xff6   : > { %2527 = vst.msk [vmem:[#allocation2 + $0x38] sm:$0xff] %vm2519_vm8, %v2510_v19  ;;  %v3003_v5 = vpack.c.bf16 %v2997_v12, %v2996_v21 }
 0xff7   : > { %v2970_v33 = vpop.permute.xlu0 %2969  ;;  %v2994_v62 = vld [vmem:[#allocation2] sm:$0xff] }
 0xff8   : > { %2990 = vst.msk [vmem:[#allocation2 + $0x20] sm:$0xff] %vm2985_vm13, %v2970_v33 }
 0xff9   : > { %v2972_v40 = vpop.permute.xlu1 %2971  ;;  %v2995_v63 = vld [vmem:[#allocation2 + $0x8] sm:$0xff] }
 0xffa   : > { %2991 = vst.msk [vmem:[#allocation2 + $0x28] sm:$0xff] %vm2985_vm13, %v2972_v40  ;;  %v3002_v2 = vpack.c.bf16 %v2995_v63, %v2994_v62 }
 0xffb   : > { %v2974_v34 = vpop.permute.xlu0 %2973 }
 0xffc   : > { %2992 = vst.msk [vmem:[#allocation2 + $0x30] sm:$0xff] %vm2985_vm13, %v2974_v34  ;;  %3723 = vmatprep.mubr.bf16.mxu1 %v3002_v2 }
 0xffd   : > { %3724 = vmatmul.mubr.bf16.vlgmr.msra.gmra.mrb[72].mxu1 %v3003_v5  ;;  %v2976_v30 = vpop.permute.xlu1 %2975 }
 0xffe   : > { %2993 = vst.msk [vmem:[#allocation2 + $0x38] sm:$0xff] %vm2985_vm13, %v2976_v30 }
 0xfff   : > { %v2998_v41 = vld [vmem:[#allocation2 + $0x20] sm:$0xff] }
0x1001   : > { %v2999_v3 = vld [vmem:[#allocation2 + $0x28] sm:$0xff] }
0x1002   : > { %v3004_v43 = vpack.c.bf16 %v2999_v3, %v2998_v41 }
0x1003   : > { %v3000_v13 = vld [vmem:[#allocation2 + $0x30] sm:$0xff] }
0x1004   : > { %3727 = vmatprep.mubr.bf16.mxu1 %v3004_v43 }
0x1005   : > { %v3001_v35 = vld [vmem:[#allocation2 + $0x38] sm:$0xff] }
0x1006   : > { %v3005_v28 = vpack.c.bf16 %v3001_v35, %v3000_v13 }
0x1008   : > { %3728 = vmatmul.mubr.bf16.gmra.mrb[76].mxu1 %v3005_v28 }
0x10d0   : > { %v3725_v50 = vpop.f32.mrb[72].mxu1 }
0x10d1   : > { %3137 = vst [vmem:[%s5248_s20 + $0x10] sm:$0xff] %v3725_v50  ;;  %v3104_v45 = vpop.f32.mrb[73].mxu1 }
0x10d2   : > { %3135 = vst [vmem:[%s5248_s20] sm:$0xff] %v3104_v45  ;;  %v3726_v17 = vpop.f32.mrb[74].mxu1 }
0x10d3   : > { %3138 = vst [vmem:[%s5248_s20 + $0x18] sm:$0xff] %v3726_v17  ;;  %v3107_v15 = vpop.f32.mrb[75].mxu1 }
0x10d4   : > { %3136 = vst [vmem:[%s5248_s20 + $0x8] sm:$0xff] %v3107_v15 }
0x10d8   : > { %v3197_v24 = vld [vmem:[%s5248_s20 + $0x10] sm:$0xff] (%p4104_p5) }
0x10d9   : > { %3149 = sbr.rel (!%p4104_p5) target bundleno = 4328 (0x10e8), region = 97  ;;  %v3193_v51 = vld [vmem:[%s5248_s20] sm:$0xff] (%p4104_p5)  ;;  %3198 = vst [vmem:[%s3151_s24 + $0x20] sm:$0xff] (%p4104_p5), %v3197_v24 }
0x10da   : > { %v3199_v1 = vld [vmem:[%s5248_s20 + $0x18] sm:$0xff] (%p4104_p5)  ;;  %3194 = vst [vmem:[%s3151_s24] sm:$0xff] (%p4104_p5), %v3193_v51 }
0x10db   : > { %v3729_v8 = vpop.f32.mrb[76].mxu1  ;;  %v3195_v23 = vld [vmem:[%s5248_s20 + $0x8] sm:$0xff] (%p4104_p5)  ;;  %3200 = vst [vmem:[%s3151_s24 + $0x30] sm:$0xff] (%p4104_p5), %v3199_v1 }
0x10dc   : > { %3141 = vst [vmem:[%s5248_s20 + $0x30] sm:$0xff] %v3729_v8  ;;  %v3120_v37 = vpop.f32.mrb[77].mxu1  ;;  %3196 = vst [vmem:[%s3151_s24 + $0x10] sm:$0xff] (%p4104_p5), %v3195_v23 }
0x10dd   : > { %3139 = vst [vmem:[%s5248_s20 + $0x20] sm:$0xff] %v3120_v37  ;;  %v3730_v22 = vpop.f32.mrb[78].mxu1 }
0x10de   : > { %3142 = vst [vmem:[%s5248_s20 + $0x38] sm:$0xff] %v3730_v22  ;;  %v3123_v58 = vpop.f32.mrb[79].mxu1 }
0x10df   : > { %3140 = vst [vmem:[%s5248_s20 + $0x28] sm:$0xff] %v3123_v58 }
0x10e3   : > { %v3205_v4 = vld [vmem:[%s5248_s20 + $0x30] sm:$0xff] }
0x10e4   : > { %v3201_v61 = vld [vmem:[%s5248_s20 + $0x20] sm:$0xff]  ;;  %3206 = vst [vmem:[%s3151_s24 + $0x60] sm:$0xff] %v3205_v4 }
0x10e5   : > { %3202 = vst [vmem:[%s3151_s24 + $0x40] sm:$0xff] %v3201_v61  ;;  %v3207_v54 = vld [vmem:[%s5248_s20 + $0x38] sm:$0xff] }
0x10e6   : > { %v3203_v14 = vld [vmem:[%s5248_s20 + $0x28] sm:$0xff]  ;;  %3208 = vst [vmem:[%s3151_s24 + $0x70] sm:$0xff] %v3207_v54 }
0x10e7   : > { %3204 = vst [vmem:[%s3151_s24 + $0x50] sm:$0xff] %v3203_v14 }
0x10e8 PF: > { %p15_p10 = scmp.ge.s32.totalorder %s4091_s9, 4   ;;  %s5357_s27 = smov %s4010_s28 }
0x10e9   : > { %s5358_s28 = smov %s4102_s12  ;;  %s5359_s29 = smov %s4091_s9 }
0x10ea   :  { %17 = sbr.rel (!%p15_p10) target bundleno = 2 (0x2), region = 166 }

</bundles_post_ra>
